<compile_context>
chip_gen: v6e
topology: v6e:2x2x1
jax: 0.10.0
libtpu: 0.0.40
codegen_flags: <defaults>
</compile_context>

<pallas_src>
import functools
import math

import jax
import jax.numpy as jnp
from jax.experimental import pallas as pl
from jax.experimental.pallas import tpu as pltpu


# ----------------------------------------------------------------------------
# RoPE / parameter setup (plain JAX, computed once outside the kernels)
# ----------------------------------------------------------------------------
def precompute_freqs_cis(dim, end, theta=10000.0):
    """Matches lingua's precompute_freqs_cis: (end, dim//2, 2, 2)."""
    freqs = 1.0 / (theta ** (jnp.arange(0, dim, 2)[: dim // 2].astype(jnp.float32) / dim))
    t = jnp.arange(end, dtype=jnp.float32)
    freqs = jnp.outer(t, freqs)
    cos, sin = jnp.cos(freqs), jnp.sin(freqs)
    return jnp.stack([cos, -sin, sin, cos], axis=-1).reshape(end, dim // 2, 2, 2)


def make_rope_tables(freq_cis, n_heads):
    """Full-width (S, n_heads*head_dim) tables for interleaved RoPE.

        out = t * cos_tab + roll(t, -1) * sa_tab + roll(t, +1) * sb_tab
        cos_tab : [c0, c0, c1, c1, ...]   (per head, tiled n_heads times)
        sa_tab  : [-s0, 0, -s1, 0, ...]   (zero on odd lanes -> roll wrap harmless)
        sb_tab  : [ 0, s0,  0, s1, ...]   (zero on even lanes)
    so out[2i]   = t[2i]*cos_i - t[2i+1]*sin_i
       out[2i+1] = t[2i]*sin_i + t[2i+1]*cos_i   (lingua's apply_rotary_emb).
    """
    cos = freq_cis[:, :, 0, 0]                       # (S, hd//2)
    sin = freq_cis[:, :, 1, 0]                       # (S, hd//2)
    s, half = cos.shape
    zeros = jnp.zeros_like(sin)
    cos_head = jnp.repeat(cos, 2, axis=-1)
    sa_head = jnp.stack([-sin, zeros], axis=-1).reshape(s, 2 * half)
    sb_head = jnp.stack([zeros, sin], axis=-1).reshape(s, 2 * half)
    tile = lambda t: jnp.tile(t, (1, n_heads))
    return tile(cos_head), tile(sa_head), tile(sb_head)


def init_params(key, dim, n_heads, n_kv_heads, head_dim,
                multiple_of=256, ffn_dim_multiplier=None):
    # FeedForward hidden_dim exactly as in lingua
    hidden = 4 * dim
    hidden = int(2 * hidden / 3)
    if ffn_dim_multiplier is not None:
        hidden = int(ffn_dim_multiplier * hidden)
    hidden = multiple_of * ((hidden + multiple_of - 1) // multiple_of)

    ks = jax.random.split(key, 7)
    std = 0.02

    def lin(k, fan_in, fan_out):  # stored transposed: (in, out)
        return std * jax.random.normal(k, (fan_in, fan_out), jnp.float32)

    params = dict(
        wq=lin(ks[0], dim, n_heads * head_dim),
        wk=lin(ks[1], dim, n_kv_heads * head_dim),
        wv=lin(ks[2], dim, n_kv_heads * head_dim),
        wo=lin(ks[3], n_heads * head_dim, dim),
        w1=lin(ks[4], dim, hidden),
        w3=lin(ks[5], dim, hidden),
        w2=lin(ks[6], hidden, dim),
        attn_norm_w=jnp.ones((1, dim), jnp.float32),  # RMSNorm init = ones
        ffn_norm_w=jnp.ones((1, dim), jnp.float32),
    )
    return params, hidden


# ----------------------------------------------------------------------------
# Kernel 1: RMSNorm + fused QKV projection (bf16 MXU) + interleaved RoPE
# ----------------------------------------------------------------------------
def qkv_rope_kernel(x_ref, cos_ref, sa_ref, sb_ref, nw_ref, wqkv_ref,
                    q_ref, k_ref, v_ref, *, dq, dkv, eps):
    x = x_ref[0]                                              # (TS, D) f32
    ms = jnp.mean(x * x, axis=-1, keepdims=True)
    xn = (x * jax.lax.rsqrt(ms + eps)) * nw_ref[...]
    xnb = xn.astype(jnp.bfloat16)

    # One wide matmul for q|k|v (keeps the MXU fed), slice lanes afterwards.
    qkv = jnp.dot(xnb, wqkv_ref[...], preferred_element_type=jnp.float32)
    q = qkv[:, :dq]
    k = qkv[:, dq:dq + dkv]
    v = qkv[:, dq + dkv:]

    cos = cos_ref[...]                                        # (TS, dq) f32
    sa = sa_ref[...]
    sb = sb_ref[...]

    def rope(t):
        w = t.shape[-1]
        nxt = pltpu.roll(t, w - 1, 1)    # nxt[j] = t[j+1]; wrap killed by sa=0 on odd lanes
        prv = pltpu.roll(t, 1, 1)        # prv[j] = t[j-1]; wrap killed by sb=0 on even lanes
        return t * cos[:, :w] + nxt * sa[:, :w] + prv * sb[:, :w]

    q_ref[0] = rope(q).astype(q_ref.dtype)
    k_ref[0] = rope(k).astype(k_ref.dtype)
    v_ref[0] = v.astype(v_ref.dtype)


# ----------------------------------------------------------------------------
# Kernel 2: flash attention — online softmax, GQA group per step, causal skip
# ----------------------------------------------------------------------------
def flash_attn_kernel(q_ref, k_ref, v_ref, o_ref, m_s, l_s, acc_s,
                      *, scale, causal, n_rep, hd, tq, tk):
    qi = pl.program_id(2)
    ki = pl.program_id(3)

    @pl.when(ki == 0)
    def _init():
        m_s[...] = jnp.full(m_s.shape, -1e30, m_s.dtype)
        l_s[...] = jnp.zeros(l_s.shape, l_s.dtype)
        acc_s[...] = jnp.zeros(acc_s.shape, acc_s.dtype)

    def body(apply_mask):
        q = q_ref[0]                                          # (TQ, n_rep*hd) bf16
        k = k_ref[0]                                          # (TK, hd) bf16
        v = v_ref[0]                                          # (TK, hd) bf16
        if apply_mask:
            row = qi * tq + jax.lax.broadcasted_iota(jnp.int32, (tq, tk), 0)
            col = ki * tk + jax.lax.broadcasted_iota(jnp.int32, (tq, tk), 1)
            keep = col <= row
        # All query heads that share this KV head -> K/V loaded once per step.
        for h in range(n_rep):
            qh = q[:, h * hd:(h + 1) * hd]
            s = jax.lax.dot_general(qh, k, (((1,), (1,)), ((), ())),
                                    preferred_element_type=jnp.float32) * scale
            if apply_mask:
                s = jnp.where(keep, s, -1e30)
            m_prev = m_s[h]                                   # (TQ, 1)
            m_new = jnp.maximum(m_prev, jnp.max(s, axis=-1, keepdims=True))
            alpha = jnp.exp(m_prev - m_new)
            p = jnp.exp(s - m_new)
            l_s[h] = alpha * l_s[h] + jnp.sum(p, axis=-1, keepdims=True)
            acc_s[h] = alpha * acc_s[h] + jnp.dot(
                p.astype(jnp.bfloat16), v, preferred_element_type=jnp.float32)
            m_s[h] = m_new

    if causal:
        q_first = qi * tq
        q_last = q_first + (tq - 1)
        k_first = ki * tk
        k_last = k_first + (tk - 1)

        # KV tile entirely at-or-below the diagonal: no mask needed.
        @pl.when(k_last <= q_first)
        def _():
            body(False)

        # Diagonal-straddling tile: mask. Tiles fully above the diagonal are
        # skipped entirely (and their DMA is avoided via the clamped index_map).
        @pl.when(jnp.logical_and(k_first <= q_last, k_last > q_first))
        def _():
            body(True)
    else:
        body(False)

    @pl.when(ki == pl.num_programs(3) - 1)
    def _finalize():
        out = jnp.concatenate(
            [acc_s[h] * pl.reciprocal(l_s[h], approx=True) for h in range(n_rep)],
            axis=-1)                                          # (TQ, n_rep*hd)
        o_ref[0] = out.astype(o_ref.dtype)


# ----------------------------------------------------------------------------
# Kernel 3: Wo + residual, RMSNorm, fused SwiGLU FFN tiled over hidden, +resid
# ----------------------------------------------------------------------------
def out_ffn_kernel(x_ref, attn_ref, wo_ref, nw_ref, w13_ref, w2_ref,
                   out_ref, h_s, hn_s, acc_s, *, th, eps):
    hi = pl.program_id(2)

    @pl.when(hi == 0)
    def _init():
        proj = jnp.dot(attn_ref[0], wo_ref[...],
                       preferred_element_type=jnp.float32)    # (TS, D) f32
        h = x_ref[0] + proj                                   # residual 1
        h_s[...] = h
        ms = jnp.mean(h * h, axis=-1, keepdims=True)
        hn = (h * jax.lax.rsqrt(ms + eps)) * nw_ref[...]
        hn_s[...] = hn.astype(hn_s.dtype)                     # bf16 for MXU
        acc_s[...] = jnp.zeros(acc_s.shape, acc_s.dtype)

    # fused w1|w3 matmul for this hidden tile
    g13 = jnp.dot(hn_s[...], w13_ref[...], preferred_element_type=jnp.float32)
    g1 = g13[:, :th]
    g3 = g13[:, th:]
    act = (g1 * jax.nn.sigmoid(g1)) * g3                      # SwiGLU, f32
    acc_s[...] += jnp.dot(act.astype(jnp.bfloat16), w2_ref[...],
                          preferred_element_type=jnp.float32)

    @pl.when(hi == pl.num_programs(2) - 1)
    def _finalize():
        out_ref[0] = (h_s[...] + acc_s[...]).astype(out_ref.dtype)


# ----------------------------------------------------------------------------
# Wrapper: three pallas_calls
# ----------------------------------------------------------------------------
def transformer_block(x, cos_tab, sa_tab, sb_tab, params, *, n_heads, n_kv_heads,
                      head_dim, eps=1e-5, causal=True,
                      ts=128, tq=128, tk=128, th=512):
    B, S, D = x.shape
    hd = head_dim
    dq = n_heads * hd
    dkv = n_kv_heads * hd
    hidden = params["w1"].shape[1]
    n_rep = n_heads // n_kv_heads

    ts = min(ts, S)
    tq = min(tq, S)
    tk = min(tk, S)
    th = min(th, hidden)
    assert S % ts == 0 and S % tq == 0 and S % tk == 0 and hidden % th == 0

    bf = jnp.bfloat16
    # Fused QKV weight: (D, dq + 2*dkv)
    w_qkv = jnp.concatenate([params["wq"], params["wk"], params["wv"]],
                            axis=1).astype(bf)
    wo = params["wo"].astype(bf)
    # Fused w1|w3, laid out per hidden tile: columns [hi*2*th, (hi+1)*2*th) are
    # [w1 tile hi | w3 tile hi].
    n_ht = hidden // th
    w13 = jnp.concatenate([params["w1"].reshape(D, n_ht, th),
                           params["w3"].reshape(D, n_ht, th)], axis=-1)
    w13 = w13.reshape(D, n_ht * 2 * th).astype(bf)
    w2 = params["w2"].astype(bf)
    attn_nw, ffn_nw = params["attn_norm_w"], params["ffn_norm_w"]  # f32

    # Explicit scoped-VMEM limit (raises v5e's 16 MiB default; matches v6e/v7x).
    vmem_bytes = 32 * 1024 * 1024

    # ---------------- K1: rmsnorm + fused QKV projection + RoPE -----------
    k1 = pl.pallas_call(
        functools.partial(qkv_rope_kernel, dq=dq, dkv=dkv, eps=eps),
        out_shape=(jax.ShapeDtypeStruct((B, S, dq), bf),
                   jax.ShapeDtypeStruct((B, S, dkv), bf),
                   jax.ShapeDtypeStruct((B, S, dkv), bf)),
        grid_spec=pltpu.PrefetchScalarGridSpec(
            num_scalar_prefetch=0,
            grid=(B, S // ts),
            in_specs=[
                pl.BlockSpec((1, ts, D), lambda b, s: (b, s, 0)),
                pl.BlockSpec((ts, dq), lambda b, s: (s, 0)),
                pl.BlockSpec((ts, dq), lambda b, s: (s, 0)),
                pl.BlockSpec((ts, dq), lambda b, s: (s, 0)),
                pl.BlockSpec((1, D), lambda b, s: (0, 0)),
                pl.BlockSpec((D, dq + 2 * dkv), lambda b, s: (0, 0)),
            ],
            out_specs=[
                pl.BlockSpec((1, ts, dq), lambda b, s: (b, s, 0)),
                pl.BlockSpec((1, ts, dkv), lambda b, s: (b, s, 0)),
                pl.BlockSpec((1, ts, dkv), lambda b, s: (b, s, 0)),
            ]),
        compiler_params=pltpu.CompilerParams(
            dimension_semantics=("parallel", "parallel"),
            vmem_limit_bytes=vmem_bytes),
    )
    q, k, v = k1(x, cos_tab, sa_tab, sb_tab, attn_nw, w_qkv)

    # ---------------- K2: flash attention (GQA group, causal DMA skip) ----
    scale = 1.0 / math.sqrt(hd)

    if causal:
        def kv_map(b, g, qi, ki):
            # Clamp to the causal boundary so skipped KV tiles repeat the
            # previous block index and issue no new DMA.
            ki_c = jnp.minimum(ki, (qi * tq + tq - 1) // tk)
            return (b, ki_c, g)
    else:
        def kv_map(b, g, qi, ki):
            return (b, ki, g)

    k2 = pl.pallas_call(
        functools.partial(flash_attn_kernel, scale=scale, causal=causal,
                          n_rep=n_rep, hd=hd, tq=tq, tk=tk),
        out_shape=jax.ShapeDtypeStruct((B, S, dq), bf),
        grid_spec=pltpu.PrefetchScalarGridSpec(
            num_scalar_prefetch=0,
            grid=(B, n_kv_heads, S // tq, S // tk),
            in_specs=[
                pl.BlockSpec((1, tq, n_rep * hd), lambda b, g, qi, ki: (b, qi, g)),
                pl.BlockSpec((1, tk, hd), kv_map),
                pl.BlockSpec((1, tk, hd), kv_map),
            ],
            out_specs=pl.BlockSpec((1, tq, n_rep * hd),
                                   lambda b, g, qi, ki: (b, qi, g)),
            scratch_shapes=[pltpu.VMEM((n_rep, tq, 1), jnp.float32),
                            pltpu.VMEM((n_rep, tq, 1), jnp.float32),
                            pltpu.VMEM((n_rep, tq, hd), jnp.float32)]),
        compiler_params=pltpu.CompilerParams(
            dimension_semantics=("parallel", "parallel", "parallel", "arbitrary"),
            vmem_limit_bytes=vmem_bytes),
    )
    attn = k2(q, k, v)

    # ---------------- K3: Wo + residual + SwiGLU FFN (hidden-tiled) -------
    k3 = pl.pallas_call(
        functools.partial(out_ffn_kernel, th=th, eps=eps),
        out_shape=jax.ShapeDtypeStruct((B, S, D), x.dtype),
        grid_spec=pltpu.PrefetchScalarGridSpec(
            num_scalar_prefetch=0,
            grid=(B, S // ts, hidden // th),
            in_specs=[
                pl.BlockSpec((1, ts, D), lambda b, s, hi: (b, s, 0)),
                pl.BlockSpec((1, ts, dq), lambda b, s, hi: (b, s, 0)),
                pl.BlockSpec((dq, D), lambda b, s, hi: (0, 0)),
                pl.BlockSpec((1, D), lambda b, s, hi: (0, 0)),
                pl.BlockSpec((D, 2 * th), lambda b, s, hi: (0, hi)),
                pl.BlockSpec((th, D), lambda b, s, hi: (hi, 0)),
            ],
            out_specs=pl.BlockSpec((1, ts, D), lambda b, s, hi: (b, s, 0)),
            scratch_shapes=[pltpu.VMEM((ts, D), jnp.float32),
                            pltpu.VMEM((ts, D), jnp.bfloat16),
                            pltpu.VMEM((ts, D), jnp.float32)]),
        compiler_params=pltpu.CompilerParams(
            dimension_semantics=("parallel", "parallel", "arbitrary"),
            vmem_limit_bytes=vmem_bytes),
    )
    return k3(x, attn, wo, ffn_nw, w13, w2)


# ----------------------------------------------------------------------------
# Pure-JAX reference (faithful to the PyTorch forward, f32) for verification
# ----------------------------------------------------------------------------
def reference_block(x, freq_cis, params, *, n_heads, n_kv_heads, head_dim,
                    eps=1e-5, causal=True):
    hp = jax.lax.Precision.HIGHEST
    B, S, D = x.shape

    def rmsnorm(v, w):
        ms = jnp.mean(v * v, axis=-1, keepdims=True)
        return v * jax.lax.rsqrt(ms + eps) * w

    xn = rmsnorm(x, params["attn_norm_w"][0])
    q = jnp.einsum("bsd,de->bse", xn, params["wq"], precision=hp).reshape(B, S, n_heads, head_dim)
    k = jnp.einsum("bsd,de->bse", xn, params["wk"], precision=hp).reshape(B, S, n_kv_heads, head_dim)
    v = jnp.einsum("bsd,de->bse", xn, params["wv"], precision=hp).reshape(B, S, n_kv_heads, head_dim)

    # interleaved RoPE exactly as lingua's apply_rotary_emb
    fc = freq_cis.reshape(1, S, 1, head_dim // 2, 2, 2)

    def rope(t):
        t_ = t.reshape(*t.shape[:-1], head_dim // 2, 1, 2)
        return (t_ * fc).sum(-1).reshape(t.shape)

    q, k = rope(q), rope(k)

    n_rep = n_heads // n_kv_heads
    k = jnp.repeat(k, n_rep, axis=2)
    v = jnp.repeat(v, n_rep, axis=2)

    s = jnp.einsum("bqhd,bkhd->bhqk", q, k, precision=hp) / math.sqrt(head_dim)
    if causal:
        mask = jnp.tril(jnp.ones((S, S), bool))
        s = jnp.where(mask, s, -jnp.inf)
    p = jax.nn.softmax(s, axis=-1)
    o = jnp.einsum("bhqk,bkhd->bqhd", p, v, precision=hp).reshape(B, S, n_heads * head_dim)
    attn = jnp.einsum("bse,ed->bsd", o, params["wo"], precision=hp)

    h = x + attn
    hn = rmsnorm(h, params["ffn_norm_w"][0])
    g1 = jnp.einsum("bsd,dh->bsh", hn, params["w1"], precision=hp)
    g3 = jnp.einsum("bsd,dh->bsh", hn, params["w3"], precision=hp)
    ffn = jnp.einsum("bsh,hd->bsd", jax.nn.silu(g1) * g3, params["w2"], precision=hp)
    return h + ffn


# ----------------------------------------------------------------------------
if __name__ == "__main__":
    # Shapes consistent with BaseTransformerArgs defaults (dim=512) and TPU
    # lane tiling (head_dim = 128); S=256 exercises multi-tile grids, the
    # causal DMA-skip clamp and the masked/unmasked attention paths.
    dim, n_heads, n_kv_heads = 512, 4, 2
    head_dim = dim // n_heads            # 128
    multiple_of = 256
    eps = 1e-5
    rope_theta = 10000.0
    B, S = 2, 256

    key = jax.random.PRNGKey(0)
    kx, kp = jax.random.split(key)
    params, hidden = init_params(kp, dim, n_heads, n_kv_heads, head_dim,
                                 multiple_of=multiple_of)          # hidden = 1536
    x = jax.random.normal(kx, (B, S, dim), jnp.float32)
    freq_cis = precompute_freqs_cis(head_dim, S, rope_theta)
    cos_tab, sa_tab, sb_tab = make_rope_tables(freq_cis, n_heads)  # (S, n_heads*hd)

    out = transformer_block(x, cos_tab, sa_tab, sb_tab, params,
                            n_heads=n_heads, n_kv_heads=n_kv_heads,
                            head_dim=head_dim, eps=eps, causal=True,
                            ts=128, tq=128, tk=128, th=512)
    out = jax.block_until_ready(out)

    ref = reference_block(x, freq_cis, params,
                          n_heads=n_heads, n_kv_heads=n_kv_heads,
                          head_dim=head_dim, eps=eps, causal=True)
    err = float(jnp.max(jnp.abs(out - ref)))
    # bf16 MXU matmuls + bf16 intermediates vs f32 reference
    assert err < 5e-2, f"max abs error too large: {err}"
    print("KERNEL_OK")
</pallas_src>

<mosaic_0001>
module attributes {stable_mosaic.version = 11 : i64} {
  func.func @qkv_rope_kernel(%arg0: i32, %arg1: i32, %arg2: memref<1x128x512xf32, #tpu.memory_space<vmem>>, %arg3: memref<128x512xf32, #tpu.memory_space<vmem>>, %arg4: memref<128x512xf32, #tpu.memory_space<vmem>>, %arg5: memref<128x512xf32, #tpu.memory_space<vmem>>, %arg6: memref<1x512xf32, #tpu.memory_space<vmem>>, %arg7: memref<512x1024xbf16, #tpu.memory_space<vmem>>, %arg8: memref<1x128x512xbf16, #tpu.memory_space<vmem>>, %arg9: memref<1x128x256xbf16, #tpu.memory_space<vmem>>, %arg10: memref<1x128x256xbf16, #tpu.memory_space<vmem>>) attributes {dimension_semantics = [#tpu.dimension_semantics<parallel>, #tpu.dimension_semantics<parallel>], iteration_bounds = array<i64: 2, 2>, scalar_prefetch = 0 : i64, scratch_operands = 0 : i64, tpu.core_type = #tpu.core_type<tc>, window_params = [{transform_indices = @transform_0, window_bounds = array<i64: 1, 128, 512>}, {transform_indices = @transform_1, window_bounds = array<i64: 128, 512>}, {transform_indices = @transform_2, window_bounds = array<i64: 128, 512>}, {transform_indices = @transform_3, window_bounds = array<i64: 128, 512>}, {pipeline_mode = #tpu.pipeline_mode<synchronous>, transform_indices = @transform_4, window_bounds = array<i64: 1, 512>}, {pipeline_mode = #tpu.pipeline_mode<synchronous>, transform_indices = @transform_5, window_bounds = array<i64: 512, 1024>}, {transform_indices = @transform_6, window_bounds = array<i64: 1, 128, 512>}, {transform_indices = @transform_7, window_bounds = array<i64: 1, 128, 256>}, {transform_indices = @transform_8, window_bounds = array<i64: 1, 128, 256>}]} {
    %c0 = arith.constant 0 : index
    %c0_0 = arith.constant 0 : index
    %c0_1 = arith.constant 0 : index
    %0 = vector.load %arg2[%c0, %c0_0, %c0_1] : memref<1x128x512xf32, #tpu.memory_space<vmem>>, vector<1x128x512xf32>
    %1 = vector.shape_cast %0 : vector<1x128x512xf32> to vector<128x512xf32>
    %2 = arith.mulf %1, %1 : vector<128x512xf32>
    %cst = arith.constant dense<0.000000e+00> : vector<128xf32>
    %3 = vector.multi_reduction <add>, %2, %cst [1] : vector<128x512xf32> to vector<128xf32>
    %4 = vector.shape_cast %3 : vector<128xf32> to vector<128x1xf32>
    %cst_2 = arith.constant 5.120000e+02 : f32
    %5 = vector.broadcast %cst_2 : f32 to vector<128x1xf32>
    %6 = arith.divf %4, %5 : vector<128x1xf32>
    %cst_3 = arith.constant 9.99999974E-6 : f32
    %7 = vector.broadcast %cst_3 : f32 to vector<128x1xf32>
    %8 = arith.addf %6, %7 : vector<128x1xf32>
    %9 = math.rsqrt %8 : vector<128x1xf32>
    %10 = vector.broadcast %9 : vector<128x1xf32> to vector<128x512xf32>
    %11 = arith.mulf %1, %10 : vector<128x512xf32>
    %c0_4 = arith.constant 0 : index
    %c0_5 = arith.constant 0 : index
    %12 = vector.load %arg6[%c0_4, %c0_5] : memref<1x512xf32, #tpu.memory_space<vmem>>, vector<1x512xf32>
    %13 = vector.broadcast %12 : vector<1x512xf32> to vector<128x512xf32>
    %14 = arith.mulf %11, %13 : vector<128x512xf32>
    %15 = arith.truncf %14 : vector<128x512xf32> to vector<128x512xbf16>
    %c0_6 = arith.constant 0 : index
    %c0_7 = arith.constant 0 : index
    %16 = vector.load %arg7[%c0_6, %c0_7] : memref<512x1024xbf16, #tpu.memory_space<vmem>>, vector<512x1024xbf16>
    %cst_8 = arith.constant dense<0.000000e+00> : vector<128x1024xf32>
    %17 = tpu.matmul %15, %16, %cst_8 {dimension_numbers = #tpu.dot_dimension_numbers<[1], [0], [0], [1], [0, 0, 1, 1], [], []>} : vector<128x512xbf16>, vector<512x1024xbf16>, vector<128x1024xf32> -> vector<128x1024xf32>
    %18 = vector.extract_strided_slice %17 {offsets = [0, 0], sizes = [128, 512], strides = [1, 1]} : vector<128x1024xf32> to vector<128x512xf32>
    %19 = vector.extract_strided_slice %17 {offsets = [0, 512], sizes = [128, 256], strides = [1, 1]} : vector<128x1024xf32> to vector<128x256xf32>
    %20 = vector.extract_strided_slice %17 {offsets = [0, 768], sizes = [128, 256], strides = [1, 1]} : vector<128x1024xf32> to vector<128x256xf32>
    %c0_9 = arith.constant 0 : index
    %c0_10 = arith.constant 0 : index
    %21 = vector.load %arg3[%c0_9, %c0_10] : memref<128x512xf32, #tpu.memory_space<vmem>>, vector<128x512xf32>
    %c0_11 = arith.constant 0 : index
    %c0_12 = arith.constant 0 : index
    %22 = vector.load %arg4[%c0_11, %c0_12] : memref<128x512xf32, #tpu.memory_space<vmem>>, vector<128x512xf32>
    %c0_13 = arith.constant 0 : index
    %c0_14 = arith.constant 0 : index
    %23 = vector.load %arg5[%c0_13, %c0_14] : memref<128x512xf32, #tpu.memory_space<vmem>>, vector<128x512xf32>
    %c511_i32 = arith.constant 511 : i32
    %24 = tpu.dynamic_rotate %18 by %c511_i32 dim 1 : vector<128x512xf32>, i32 -> vector<128x512xf32>
    %c1_i32 = arith.constant 1 : i32
    %25 = tpu.dynamic_rotate %18 by %c1_i32 dim 1 : vector<128x512xf32>, i32 -> vector<128x512xf32>
    %26 = arith.mulf %18, %21 : vector<128x512xf32>
    %27 = arith.mulf %24, %22 : vector<128x512xf32>
    %28 = arith.addf %26, %27 : vector<128x512xf32>
    %29 = arith.mulf %25, %23 : vector<128x512xf32>
    %30 = arith.addf %28, %29 : vector<128x512xf32>
    %31 = arith.truncf %30 : vector<128x512xf32> to vector<128x512xbf16>
    %c0_15 = arith.constant 0 : index
    %c0_16 = arith.constant 0 : index
    %c0_17 = arith.constant 0 : index
    %32 = vector.load %arg8[%c0_15, %c0_16, %c0_17] : memref<1x128x512xbf16, #tpu.memory_space<vmem>>, vector<1x128x512xbf16>
    %33 = vector.shape_cast %32 : vector<1x128x512xbf16> to vector<128x512xbf16>
    %34 = vector.shape_cast %31 : vector<128x512xbf16> to vector<1x128x512xbf16>
    tpu.vector_store %arg8[%c0_15, %c0_16, %c0_17], %34 {strides = array<i32>} : memref<1x128x512xbf16, #tpu.memory_space<vmem>>, vector<1x128x512xbf16>,
    %c255_i32 = arith.constant 255 : i32
    %35 = tpu.dynamic_rotate %19 by %c255_i32 dim 1 : vector<128x256xf32>, i32 -> vector<128x256xf32>
    %c1_i32_18 = arith.constant 1 : i32
    %36 = tpu.dynamic_rotate %19 by %c1_i32_18 dim 1 : vector<128x256xf32>, i32 -> vector<128x256xf32>
    %37 = vector.extract_strided_slice %21 {offsets = [0, 0], sizes = [128, 256], strides = [1, 1]} : vector<128x512xf32> to vector<128x256xf32>
    %38 = arith.mulf %19, %37 : vector<128x256xf32>
    %39 = vector.extract_strided_slice %22 {offsets = [0, 0], sizes = [128, 256], strides = [1, 1]} : vector<128x512xf32> to vector<128x256xf32>
    %40 = arith.mulf %35, %39 : vector<128x256xf32>
    %41 = arith.addf %38, %40 : vector<128x256xf32>
    %42 = vector.extract_strided_slice %23 {offsets = [0, 0], sizes = [128, 256], strides = [1, 1]} : vector<128x512xf32> to vector<128x256xf32>
    %43 = arith.mulf %36, %42 : vector<128x256xf32>
    %44 = arith.addf %41, %43 : vector<128x256xf32>
    %45 = arith.truncf %44 : vector<128x256xf32> to vector<128x256xbf16>
    %c0_19 = arith.constant 0 : index
    %c0_20 = arith.constant 0 : index
    %c0_21 = arith.constant 0 : index
    %46 = vector.load %arg9[%c0_19, %c0_20, %c0_21] : memref<1x128x256xbf16, #tpu.memory_space<vmem>>, vector<1x128x256xbf16>
    %47 = vector.shape_cast %46 : vector<1x128x256xbf16> to vector<128x256xbf16>
    %48 = vector.shape_cast %45 : vector<128x256xbf16> to vector<1x128x256xbf16>
    tpu.vector_store %arg9[%c0_19, %c0_20, %c0_21], %48 {strides = array<i32>} : memref<1x128x256xbf16, #tpu.memory_space<vmem>>, vector<1x128x256xbf16>,
    %49 = arith.truncf %20 : vector<128x256xf32> to vector<128x256xbf16>
    %c0_22 = arith.constant 0 : index
    %c0_23 = arith.constant 0 : index
    %c0_24 = arith.constant 0 : index
    %50 = vector.load %arg10[%c0_22, %c0_23, %c0_24] : memref<1x128x256xbf16, #tpu.memory_space<vmem>>, vector<1x128x256xbf16>
    %51 = vector.shape_cast %50 : vector<1x128x256xbf16> to vector<128x256xbf16>
    %52 = vector.shape_cast %49 : vector<128x256xbf16> to vector<1x128x256xbf16>
    tpu.vector_store %arg10[%c0_22, %c0_23, %c0_24], %52 {strides = array<i32>} : memref<1x128x256xbf16, #tpu.memory_space<vmem>>, vector<1x128x256xbf16>,
    return
  }
  func.func @transform_0(%arg0: i32, %arg1: i32) -> (i32, i32, i32) {
    %c0_i32 = arith.constant 0 : i32
    %c0_i32_0 = arith.constant 0 : i32
    return %arg0, %arg1, %c0_i32 : i32, i32, i32
  }
  func.func @transform_1(%arg0: i32, %arg1: i32) -> (i32, i32) {
    %c0_i32 = arith.constant 0 : i32
    %c0_i32_0 = arith.constant 0 : i32
    return %arg1, %c0_i32 : i32, i32
  }
  func.func @transform_2(%arg0: i32, %arg1: i32) -> (i32, i32) {
    %c0_i32 = arith.constant 0 : i32
    %c0_i32_0 = arith.constant 0 : i32
    return %arg1, %c0_i32 : i32, i32
  }
  func.func @transform_3(%arg0: i32, %arg1: i32) -> (i32, i32) {
    %c0_i32 = arith.constant 0 : i32
    %c0_i32_0 = arith.constant 0 : i32
    return %arg1, %c0_i32 : i32, i32
  }
  func.func @transform_4(%arg0: i32, %arg1: i32) -> (i32, i32) {
    %c0_i32 = arith.constant 0 : i32
    %c0_i32_0 = arith.constant 0 : i32
    %c0_i32_1 = arith.constant 0 : i32
    return %c0_i32, %c0_i32_0 : i32, i32
  }
  func.func @transform_5(%arg0: i32, %arg1: i32) -> (i32, i32) {
    %c0_i32 = arith.constant 0 : i32
    %c0_i32_0 = arith.constant 0 : i32
    %c0_i32_1 = arith.constant 0 : i32
    return %c0_i32, %c0_i32_0 : i32, i32
  }
  func.func @transform_6(%arg0: i32, %arg1: i32) -> (i32, i32, i32) {
    %c0_i32 = arith.constant 0 : i32
    %c0_i32_0 = arith.constant 0 : i32
    return %arg0, %arg1, %c0_i32 : i32, i32, i32
  }
  func.func @transform_7(%arg0: i32, %arg1: i32) -> (i32, i32, i32) {
    %c0_i32 = arith.constant 0 : i32
    %c0_i32_0 = arith.constant 0 : i32
    return %arg0, %arg1, %c0_i32 : i32, i32, i32
  }
  func.func @transform_8(%arg0: i32, %arg1: i32) -> (i32, i32, i32) {
    %c0_i32 = arith.constant 0 : i32
    %c0_i32_0 = arith.constant 0 : i32
    return %arg0, %arg1, %c0_i32 : i32, i32, i32
  }
}

</mosaic_0001>

<bundles_post_ra>
// kernel: tpu_custom_call.1
= control target key start
LH: loop header
LB: loop body
LE: loop exit
PB: predicated region body
PF: predicated region fallthrough
CT: control target
= control target key end

     0   :  { %s9692_s0 = inlined_call_operand.hbm [shape: f32[2,256,512], index: 0, kind: input, shape index: {}]   ;;  %s9693_s1 = inlined_call_operand.hbm [shape: f32[256,512], index: 1, kind: input, shape index: {}]   ;;  %s9694_s2 = inlined_call_operand.hbm [shape: f32[256,512], index: 2, kind: input, shape index: {}]   ;;  %s9695_s3 = inlined_call_operand.hbm [shape: f32[256,512], index: 3, kind: input, shape index: {}]   ;;  %s9696_s4 = inlined_call_operand.vmem [shape: f32[1,512], index: 4, kind: input, shape index: {}]   ;;  %s9697_s5 = inlined_call_operand.hbm [shape: bf16[512,1024], index: 5, kind: input, shape index: {}]   ;;  %s9698_s6 = inlined_call_operand.hbm [shape: bf16[2,256,512], index: 6, kind: output, shape index: {0}]   ;;  %s9699_s7 = inlined_call_operand.hbm [shape: bf16[2,256,256], index: 7, kind: output, shape index: {1}]   ;;  %s9700_s8 = inlined_call_operand.hbm [shape: bf16[2,256,256], index: 8, kind: output, shape index: {2}]  }
   0x1   :  { %9874 = sst [smem:[#allocation156_spill]] %s9693_s1 }
   0x2   :  { %9875 = sst [smem:[#allocation157_spill]] %s9695_s3 }
   0x3   :  { %9876 = sst [smem:[#allocation158_spill]] %s9696_s4 }
   0x4   :  { %9877 = sst [smem:[#allocation159_spill]] %s9697_s5 }
   0x5   :  { %9878 = sst [smem:[#allocation160_spill]] %s9698_s6 }
   0x6   :  { %9879 = sst [smem:[#allocation161_spill]] %s9699_s7 }
   0x7   :  { %9880 = sst [smem:[#allocation162_spill]] %s9700_s8 }
   0x8   :  { %14 = vsyncpa [#allocation3], 0 }
   0x9   :  { %16 = vsyncpa [#allocation3 + $0x1], 0 }
   0xa   :  { %17 = vsyncpa [#allocation6], 0 }
   0xb   :  { %19 = vsyncpa [#allocation6 + $0x1], 0 }
   0xc   :  { %20 = vsyncpa [#allocation9], 0 }
   0xd   :  { %22 = vsyncpa [#allocation9 + $0x1], 0 }
   0xe   :  { %23 = vsyncpa [#allocation4], 0 }
   0xf   :  { %25 = vsyncpa [#allocation4 + $0x1], 0 }
  0x10   :  { %26 = vsyncpa [#allocation13], 0 }
  0x11   :  { %28 = vsyncpa [#allocation13 + $0x1], 0  ;;  %s6507_s27 = smov 0   ;;  %s6509_s28 = smov 0  }
  0x12   :  { %s6511_s29 = smov 0   ;;  %s6513_s30 = smov 0  }
  0x13   :  { %s6515_s9 = smov 0   ;;  %s6517_s10 = smov 0  }
  0x14   :  { %s6519_s11 = smov 0   ;;  %s6521_s12 = smov 0  }
  0x15   :  { %s6523_s13 = smov 0   ;;  %s6525_s14 = smov 0  }
  0x16   :  { %s6527_s15 = smov 0  }
  0x17 LB: > { %9881 = sst [smem:[#allocation21_spill]] %s6408_s28  ;;  %s6561_s16 = sadd.s32 4294967295, %s6444_s15   ;;  %s6444_s15 = sphi %s6527_s15, %s34_s15   ;;  %s6440_s14 = sphi %s6525_s14, %s10249_s14   ;;  %s6436_s13 = sphi %s6523_s13, %s10248_s13   ;;  %s6432_s12 = sphi %s6521_s12, %s10247_s12   ;;  %s6428_s11 = sphi %s6519_s11, %s10246_s11   ;;  %s6424_s10 = sphi %s6517_s10, %s10245_s10   ;;  %s6420_s9 = sphi %s6515_s9, %s10244_s9   ;;  %s6416_s30 = sphi %s6513_s30, %s10242_s30   ;;  %s6412_s29 = sphi %s6511_s29, %s10241_s29   ;;  %s6408_s28 = sphi %s6509_s28, %s10240_s28   ;;  %s6404_s27 = sphi %s6507_s27, %s10239_s27  }
  0x18   : > { %9882 = sst [smem:[#allocation22_spill]] %s6412_s29  ;;  %s9701_s17 = sadd.s32 4294967294, %s6444_s15  }
  0x19   : > { %9883 = sst [smem:[#allocation23_spill]] %s6416_s30  ;;  %p68_p0 = scmp.ne.s32.totalorder %s6420_s9, %s6416_s30 }
  0x1a   : > { %9884 = sst [smem:[#allocation24_spill]] %s6420_s9  ;;  %p9713_p1 = scmp.eq.s32.totalorder %s6561_s16, 0 }
  0x1b   : > { %9885 = sst [smem:[#allocation25_spill]] %s6428_s11  ;;  %p94_p2 = scmp.ne.s32.totalorder %s6408_s28, %s6404_s27 }
  0x1c   : > { %9886 = sst [smem:[#allocation26_spill]] %s6432_s12  ;;  %p6571_p4 = por %p9713_p1, %p68_p0 }
  0x1d   : > { %9887 = sst [smem:[#allocation27_spill]] %s6561_s16  ;;  %p220_p5 = scmp.eq.s32.totalorder %s9701_s17, 3 }
  0x1e   : > { %s9888_s18 = scalar_select %p6571_p4, 1, 0 }
  0x1f   : > { %p6579_p6 = por %p94_p2, %p9713_p1  ;;  %p5384_p7 = scmp.ge.s32.totalorder %s6444_s15, 1 }
  0x20   : > { %9889 = sst [smem:[#allocation28_spill]] %s9888_s18  ;;  %p6584_p8 = por %p220_p5, %p68_p0 }
  0x21   : > { %s9890_s19 = scalar_select %p6579_p6, 1, 0 }
  0x22   : > { %s9892_s20 = scalar_select %p6584_p8, 1, 0 }
  0x23   : > { %9891 = sst [smem:[#allocation29_spill]] %s9890_s19  ;;  %p283_p9 = scmp.lt.s32.totalorder %s6444_s15, 5 }
  0x24   : > { %9893 = sst [smem:[#allocation30_spill]] %s9892_s20  ;;  %s6446_s22 = smov [#allocation10]  }
  0x25   : > { %p6589_p10 = pnand %p5384_p7, %p283_p9  ;;  %s298_s23 = sshll.u32 %s6446_s22, 4  ;;  %s299_s23 = int_to_ptr.vmem [resolvable:$true] %s298_s23 }
  0x26   : > { %s43_s25 = sadd.s32 1, %s6436_s13  ;;  %s6129_s26 = scalar_lea.vmem %s299_s23, 32768 }
  0x27   : > { %s9894_s21 = scalar_select %p6589_p10, 1, 0 }
  0x28   : > { %p5842_p11 = pneg %p6589_p10  ;;  %p6130_p0 = scmp.ne.s32.totalorder %s299_s23, %s6129_s26 }
  0x29   : > { %9895 = sst [smem:[#allocation31_spill]] %s9894_s21  ;;  %p6137_p7 = scmp.lt.s32.totalorder %s299_s23, %s299_s23 }
  0x2a   : > { %p6597_p12 = pnand %p5842_p11, %p9713_p1  ;;  %p6138_p9 = scmp.lt.s32.totalorder %s6129_s26, %s6129_s26 }
  0x2c   : > { %p6120_p13 = pneg %p6597_p12  ;;  %p6139_p3 = por %p6138_p9, %p6137_p7 }
  0x2e   : > { %p6132_p2 = pnand %p6130_p0, %p6120_p13 }
  0x30   : > { %p6133_p5 = pneg %p6132_p2 }
  0x32   : > { %p6140_p8 = pnand %p6139_p3, %p6133_p5 }
  0x34   : > { %6143 = shalt.err (!%p6140_p8)
}
  0x35   : > { %s9704_s27 = smov 512   ;;  %s9706_s22 = smov 32  }
  0x36   : > { %s9897_s5 = sld [smem:[#allocation159_spill]]  ;;  %p6612_p3 = scmp.ge.s32.totalorder %s43_s25, 2 }
  0x37   : > { %p63_p8 = scmp.eq.s32.totalorder %s6444_s15, 0  ;;  %s81_s30 = sadd.s32 1, %s6412_s29 }
  0x38   : > { %p88_p11 = scmp.ne.s32.totalorder %s6412_s29, %s6408_s28  ;;  %s10251_s25 = smov (%p6612_p3, %s43_s25), 0 }
  0x39   : > { %9899 = sst [smem:[#allocation32_spill]] %s10251_s25  ;;  %p9714_p0 = scmp.lt.s32.totalorder %s6444_s15, 4 }
  0x3a   : > { %p90_p13 = por %p88_p11, %p63_p8  ;;  %s6629_s24 = ssub.s32 %s6436_s13, %s10251_s25 }
  0x3b   : > { %s6635_s26 = sshll.u32 %s6436_s13, 13  ;;  %s9901_s1 = sld [smem:[#allocation156_spill]] }
  0x3c   : > { %5845 = dma.hbm_to_vmem [thread:$0]  (!%p6597_p12), %s9897_s5, 32768, %s299_s23, [#allocation9], %s9704_s27, %s9704_s27, %s9706_s22  }
  0x3d   : > { %p79_p12 = scmp.eq.s32.totalorder %s6629_s24, 0  ;;  %s338_s23 = sand.u32 1, %s6412_s29  }
  0x3e   : > { %s6640_s22 = sshll.u32 %s338_s23, 9  ;;  %p6648_p2 = pnand %p9714_p0, %p90_p13 }
  0x3f   : > { %s6638_s27 = scalar_select %p79_p12, %s6412_s29, %s81_s30  }
  0x40   : > { %s340_s17 = scalar_lea.vmem [#allocation5], %s6640_s22  ;;  %s9903_s12 = sand.u32 1, %s6444_s15  }
  0x41   : > { %9900 = sst [smem:[#allocation33_spill]] %s6638_s27  ;;  %s347_s7 = scalar_lea.hbm %s9901_s1, %s6635_s26 }
  0x42   : > { %s348_s6 = sshll.u32 %s340_s17, 4  ;;  %s6655_s30 = scalar_lea.sflag [#allocation6], %s9903_s12  ;;  %s349_s6 = int_to_ptr.vmem [resolvable:$true] %s348_s6 }
  0x43   : > { %p9728_p5 = pneg %p6648_p2  ;;  %s6157_s23 = scalar_lea.vmem %s349_s6, 8192 }
  0x44   : > { %p6158_p7 = scmp.ne.s32.totalorder %s349_s6, %s6157_s23  ;;  %s6449_s5 = smov [#allocation5]  }
  0x45   : > { %s6162_s8 = sshll.u32 %s6449_s5, 4  ;;  %s6163_s8 = int_to_ptr.vmem [resolvable:$false] %s6162_s8 }
  0x46   : > { %p6160_p9 = pnand %p6158_p7, %p9728_p5  ;;  %s6164_s1 = scalar_lea.vmem %s6163_s8, 16384 }
  0x47   : > { %p6165_p13 = scmp.lt.s32.totalorder %s349_s6, %s6163_s8  ;;  %p6166_p12 = scmp.lt.s32.totalorder %s6164_s1, %s6157_s23 }
  0x48   : > { %p6161_p11 = pneg %p6160_p9 }
  0x49   : > { %p6167_p1 = por %p6166_p12, %p6165_p13 }
  0x4b   : > { %p6168_p0 = pnand %p6167_p1, %p6161_p11 }
  0x4d   : > { %6171 = shalt.err (!%p6168_p0)
}
  0x4e   : > { %s9904_s12 = smov 32   ;;  %s9905_s17 = smov 512  }
  0x4f   : > { %5852 = dma.hbm_to_vmem [thread:$0]  (!%p6648_p2), %s347_s7, 8192, %s349_s6, %s6655_s30, %s9905_s17, %s9905_s17, %s9904_s12  }
  0x50   : > { %s46_s1 = sadd.s32 1, %s6440_s14  ;;  %s55_s23 = sadd.s32 1, %s6424_s10 }
  0x51   : > { %s10253_s1 = smov (!%p6612_p3, %s46_s1), %s6440_s14  ;;  %p62_p1 = scmp.ne.s32.totalorder %s6424_s10, %s6420_s9 }
  0x52   : > { %s312_s5 = sand.u32 1, %s6424_s10   ;;  %p48_p0 = scmp.ge.s32.totalorder %s10253_s1, 2 }
  0x53   : > { %p6678_p7 = por %p63_p8, %p62_p1  ;;  %p9907_p9 = scmp.eq.s32.totalorder %s6561_s16, 3 }
  0x54   : > { %s10255_s1 = smov (%p48_p0, %s10253_s1), 0  ;;  %s5387_s6 = sshll.u32 %s312_s5, 9 }
  0x55   : > { %p6684_p11 = por %p9907_p9, %p62_p1  ;;  %s5750_s7 = sshll.u32 %s6436_s13, 6 }
  0x56   : > { %s50_s20 = ssub.s32 %s6440_s14, %s10255_s1  ;;  %s5390_s11 = sshll.u32 %s6440_s14, 7 }
  0x57   : > { %s9908_s27 = scalar_select %p6684_p11, 1, 0 }
  0x58   : > { %s52_s29 = sor.u32 %s6629_s24, %s50_s20  ;;  %s323_s4 = sadd.s32 %s5750_s7, %s5390_s11 }
  0x59   : > { %9909 = sst [smem:[#allocation34_spill]] %s9908_s27  ;;  %p53_p3 = scmp.eq.s32.totalorder %s52_s29, 0 }
  0x5a   : > { %s5391_s19 = sshll.u32 %s323_s4, 7  ;;  %s316_s28 = scalar_lea.vmem [#allocation2], %s5387_s6 }
  0x5b   : > { %s326_s16 = sshll.u32 %s316_s28, 4  ;;  %s325_s27 = scalar_lea.hbm %s9692_s0, %s5391_s19  ;;  %s327_s16 = int_to_ptr.vmem [resolvable:$true] %s326_s16 }
  0x5c   : > { %s6696_s18 = scalar_select %p53_p3, %s6424_s10, %s55_s23  }
  0x5d   : > { %p9910_p8 = scmp.lt.s32.totalorder %s6444_s15, 4  ;;  %s369_s4 = scalar_lea.hbm %s9694_s2, %s6635_s26 }
  0x5e   : > { %s362_s29 = scalar_lea.vmem [#allocation7], %s6640_s22  ;;  %s313_s11 = scalar_lea.sflag [#allocation3], %s312_s5 }
  0x5f   : > { %p6705_p13 = pnand %p9910_p8, %p6678_p7  ;;  %s370_s28 = sshll.u32 %s362_s29, 4  ;;  %s6714_s28 = int_to_ptr.vmem [resolvable:$true] %s370_s28 }
  0x60   : > { %s6185_s9 = scalar_lea.vmem %s327_s16, 8192  ;;  %s6450_s19 = smov [#allocation2]  }
  0x61   : > { %p6174_p12 = pneg %p6705_p13  ;;  %p6186_p1 = scmp.ne.s32.totalorder %s327_s16, %s6185_s9 }
  0x62   : > { %s6190_s21 = sshll.u32 %s6450_s19, 4  ;;  %s6191_s21 = int_to_ptr.vmem [resolvable:$false] %s6190_s21 }
  0x63   : > { %p6188_p0 = pnand %p6186_p1, %p6174_p12  ;;  %s6192_s23 = scalar_lea.vmem %s6191_s21, 16384 }
  0x64   : > { %p6193_p7 = scmp.lt.s32.totalorder %s327_s16, %s6191_s21  ;;  %p6194_p3 = scmp.lt.s32.totalorder %s6192_s23, %s6185_s9 }
  0x65   : > { %p6189_p9 = pneg %p6188_p0 }
  0x66   : > { %p6195_p8 = por %p6194_p3, %p6193_p7 }
  0x68   : > { %p6196_p5 = pnand %p6195_p8, %p6189_p9 }
  0x6a   : > { %6199 = shalt.err (!%p6196_p5)
}
  0x6b   : > { %5849 = dma.hbm_to_vmem [thread:$0]  (!%p6705_p13), %s325_s27, 8192, %s327_s16, %s313_s11, %s9905_s17, %s9905_s17, %s9904_s12  }
  0x6c   : > { %s6213_s5 = scalar_lea.vmem %s6714_s28, 8192  ;;  %p9912_p1 = pneg %p6648_p2 }
  0x6d   : > { %p6214_p12 = scmp.ne.s32.totalorder %s6714_s28, %s6213_s5  ;;  %s6451_s8 = smov [#allocation7]  }
  0x6e   : > { %s6218_s6 = sshll.u32 %s6451_s8, 4  ;;  %s6219_s6 = int_to_ptr.vmem [resolvable:$false] %s6218_s6 }
  0x6f   : > { %p6216_p0 = pnand %p6214_p12, %p9912_p1  ;;  %s6220_s7 = scalar_lea.vmem %s6219_s6, 16384 }
  0x70   : > { %p6221_p5 = scmp.lt.s32.totalorder %s6714_s28, %s6219_s6  ;;  %p6222_p9 = scmp.lt.s32.totalorder %s6220_s7, %s6213_s5 }
  0x71   : > { %p6217_p11 = pneg %p6216_p0 }
  0x72   : > { %p6223_p7 = por %p6222_p9, %p6221_p5 }
  0x74   : > { %p6224_p3 = pnand %p6223_p7, %p6217_p11 }
  0x76   : > { %6227 = shalt.err (!%p6224_p3)
}
  0x77   : > { %5855 = dma.hbm_to_vmem [thread:$0]  (!%p6648_p2), %s369_s4, 8192, %s6714_s28, %s6655_s30, %s9905_s17, %s9905_s17, %s9904_s12  }
  0x78   : > { %s9913_s20 = sld [smem:[#allocation157_spill]]  ;;  %s384_s11 = scalar_lea.vmem [#allocation8], %s6640_s22 }
  0x79   : > { %s392_s9 = sshll.u32 %s384_s11, 4  ;;  %s9914_s19 = sand.u32 1, %s6444_s15   ;;  %s393_s9 = int_to_ptr.vmem [resolvable:$true] %s392_s9 }
  0x7a   : > { %s381_s21 = scalar_lea.sflag [#allocation9], %s9914_s19  ;;  %s6241_s23 = scalar_lea.vmem %s393_s9, 8192 }
  0x7b   : > { %p6242_p11 = scmp.ne.s32.totalorder %s393_s9, %s6241_s23  ;;  %p9915_p13 = pmov %p9912_p1 }
  0x7c   : > { %s6452_s5 = smov [#allocation8]  }
  0x7d   : > { %p6244_p8 = pnand %p6242_p11, %p9915_p13  ;;  %s6246_s8 = sshll.u32 %s6452_s5, 4  ;;  %s6247_s8 = int_to_ptr.vmem [resolvable:$false] %s6246_s8 }
  0x7e   : > { %s391_s29 = scalar_lea.hbm %s9913_s20, %s6635_s26  ;;  %s6248_s6 = scalar_lea.vmem %s6247_s8, 16384 }
  0x7f   : > { %p6245_p12 = pneg %p6244_p8  ;;  %p6249_p1 = scmp.lt.s32.totalorder %s393_s9, %s6247_s8 }
  0x80   : > { %p6250_p0 = scmp.lt.s32.totalorder %s6248_s6, %s6241_s23 }
  0x82   : > { %p6251_p5 = por %p6250_p0, %p6249_p1 }
  0x84   : > { %p6252_p9 = pnand %p6251_p5, %p6245_p12 }
  0x86   : > { %6255 = shalt.err (!%p6252_p9)
}
  0x87   : > { %5858 = dma.hbm_to_vmem [thread:$0]  (!%p6648_p2), %s391_s29, 8192, %s393_s9, %s381_s21, %s9905_s17, %s9905_s17, %s9904_s12  }
  0x88   : > { %404 = sbr.rel (%p6589_p10) target bundleno = 1105 (0x451), region = 44 }
  0x8d   : > { %s9917_s26 = sld [smem:[#allocation24_spill]] }
  0x93   : > { %s6759_s4 = sand.u32 1, %s9917_s26  }
  0x94   : > { %s5405_s28 = sshll.u32 %s6759_s4, 9  ;;  %s407_s7 = scalar_lea.sflag [#allocation3], %s6759_s4 }
  0x95   : > { %s6763_s3 = scalar_lea.vmem [#allocation2], %s5405_s28 }
  0x96   : > { %6379 = dma.done.wait (%p6571_p4), %s407_s7, 8192  }
  0x97   : > { %6381 = vsyncadd (%p6571_p4), %s407_s7, 4294959104  ;;  %s9919_s25 = sld [smem:[#allocation27_spill]] }
  0x98   : > { %s9920_s12 = sld [smem:[#allocation21_spill]] }
  0x9d   : > { %s6770_s16 = sand.u32 1, %s9919_s25  }
  0x9e   : > { %s417_s27 = sand.u32 1, %s9920_s12   ;;  %s416_s20 = scalar_lea.sflag [#allocation6], %s6770_s16 }
  0x9f   : > { %s5406_s24 = sshll.u32 %s417_s27, 9 }
  0xa0   : > { %s6774_s29 = scalar_lea.vmem [#allocation5], %s5406_s24 }
  0xa1   : > { %6383 = dma.done.wait (%p6579_p6), %s416_s20, 16384  }
  0xa2   : > { %6385 = vsyncadd (%p6579_p6), %s416_s20, 4294950912  ;;  %s6780_s11 = scalar_lea.vmem [#allocation7], %s5406_s24  ;;  %s434_s9 = scalar_lea.sflag [#allocation9], %s6770_s16 }
  0xa3   : > { %s6783_s19 = scalar_lea.vmem [#allocation8], %s5406_s24 }
  0xa4   : > { %6387 = dma.done.wait (%p6579_p6), %s434_s9, 8192  }
  0xa5   : > { %6389 = vsyncadd (%p6579_p6), %s434_s9, 4294959104  ;;  %p9922_p4 = scmp.eq.s32.totalorder %s9919_s25, 0 }
  0xa7   : > { %6391 = dma.done.wait (%p9922_p4), [#allocation9], 32768   ;;  %p9923_p10 = pmov %p9922_p4 }
  0xa8   : > { %v6794_v0 = vld [vmem:[%s6763_s3] sm:$0xff]  ;;  %v6797_v1 = vld [vmem:[%s6763_s3 + $0x8] sm:$0xff]  ;;  %v6800_v2 = vld [vmem:[%s6763_s3 + $0x10] sm:$0xff]  ;;  %s9924_s5 = sld [smem:[#allocation158_spill]]  ;;  %s6453_s8 = smov 127  }
  0xa9   : > { %6393 = vsyncadd (%p9923_p10), [#allocation9], 4294934528  ;;  %v6803_v3 = vld [vmem:[%s6763_s3 + $0x18] sm:$0xff]  ;;  %v570_v4 = vmul.f32 %v6794_v0, %v6794_v0  ;;  %v571_v5 = vmul.f32 %v6797_v1, %v6797_v1  ;;  %v572_v6 = vmul.f32 %v6800_v2, %v6800_v2  ;;  %v6812_v7 = vld [vmem:[%s6763_s3 + $0x20] sm:$0xff]  ;;  %s6454_s6 = smov 1   ;;  %s5411_s22 = sshll.u32 %s6759_s4, 7 }
  0xaa   : > { %v6815_v8 = vld [vmem:[%s6763_s3 + $0x28] sm:$0xff]  ;;  %v6818_v9 = vld [vmem:[%s6763_s3 + $0x30] sm:$0xff]  ;;  %v6821_v10 = vld [vmem:[%s6763_s3 + $0x38] sm:$0xff]  ;;  %v574_v11 = vmul.f32 %v6812_v7, %v6812_v7  ;;  %v573_v14 = vmul.f32 %v6803_v3, %v6803_v3  ;;  %s8196_s26 = scalar_lea.vmem [#allocation14], %s5411_s22  ;;  %s5410_s30 = sshll.u32 %s6759_s4, 8 }
  0xab   : > { %v575_v12 = vmul.f32 %v6815_v8, %v6815_v8  ;;  %v6828_v13 = vld [vmem:[%s6763_s3 + $0x40] sm:$0xff]  ;;  %v634_v15 = vadd.f32 %v571_v5, %v570_v4  ;;  %v576_v16 = vmul.f32 %v6818_v9, %v6818_v9  ;;  %v6835_v17 = vld [vmem:[%s6763_s3 + $0x48] sm:$0xff]  ;;  %v6838_v18 = vld [vmem:[%s6763_s3 + $0x50] sm:$0xff]  ;;  %v577_v21 = vmul.f32 %v6821_v10, %v6821_v10  ;;  %s8415_s28 = scalar_lea.vmem [#allocation11], %s5410_s30  ;;  %s10205_s7 = sld [smem:[#allocation25_spill]] }
  0xac   : > { %v6841_v19 = vld [vmem:[%s6763_s3 + $0x58] sm:$0xff]  ;;  %v578_v20 = vmul.f32 %v6828_v13, %v6828_v13  ;;  %v579_v23 = vmul.f32 %v6835_v17, %v6835_v17  ;;  %v580_v24 = vmul.f32 %v6838_v18, %v6838_v18  ;;  %v6852_v25 = vld [vmem:[%s6763_s3 + $0x60] sm:$0xff]  ;;  %v6855_v26 = vld [vmem:[%s6763_s3 + $0x68] sm:$0xff]  ;;  %s9288_s12 = scalar_lea.vmem [#allocation12], %s5411_s22  ;;  %s5112_s24 = sshll.u32 %s8415_s28, 4  ;;  %s9303_s24 = int_to_ptr.vmem [resolvable:$true] %s5112_s24 }
  0xad   : > { %v639_v22 = vadd.f32 %v575_v12, %v574_v11  ;;  %v6858_v27 = vld [vmem:[%s6763_s3 + $0x70] sm:$0xff]  ;;  %v635_v28 = vadd.f32 %v634_v15, %v572_v6  ;;  %v6861_v29 = vld [vmem:[%s6763_s3 + $0x78] sm:$0xff]  ;;  %v582_v30 = vmul.f32 %v6852_v25, %v6852_v25  ;;  %v583_v31 = vmul.f32 %v6855_v26, %v6855_v26  ;;  %v526_v33 = vld [vmem:[%s6763_s3 + $0xa0] sm:$0xff]  ;;  %s10208_s23 = sld [smem:[#allocation160_spill]]  ;;  %s6256_s22 = scalar_lea.vmem %s9303_s24, 4096 }
  0xae   : > { %v584_v32 = vmul.f32 %v6858_v27, %v6858_v27  ;;  %v527_v34 = vld [vmem:[%s6763_s3 + $0xa8] sm:$0xff]  ;;  %v581_v36 = vmul.f32 %v6841_v19, %v6841_v19  ;;  %v644_v37 = vadd.f32 %v579_v23, %v578_v20  ;;  %v528_v38 = vld [vmem:[%s6763_s3 + $0xb0] sm:$0xff]  ;;  %v529_v39 = vld [vmem:[%s6763_s3 + $0xb8] sm:$0xff]  ;;  %v590_v40 = vmul.f32 %v526_v33, %v526_v33  ;;  %p6257_p6 = scmp.ne.s32.totalorder %s9303_s24, %s6256_s22  ;;  %s6455_s30 = smov [#allocation11]  }
  0xaf   : > { %v640_v35 = vadd.f32 %v639_v22, %v576_v16  ;;  %v522_v41 = vld [vmem:[%s6763_s3 + $0x80] sm:$0xff]  ;;  %v636_v42 = vadd.f32 %v635_v28, %v573_v14  ;;  %v649_v43 = vadd.f32 %v583_v31, %v582_v30  ;;  %v591_v44 = vmul.f32 %v527_v34, %v527_v34  ;;  %v6877_v46 = vld [vmem:[%s6763_s3 + $0x88] sm:$0xff]  ;;  %v524_v47 = vld [vmem:[%s6763_s3 + $0x90] sm:$0xff] }
  0xb0   : > { %v592_v45 = vmul.f32 %v528_v38, %v528_v38  ;;  %v6881_v48 = vld [vmem:[%s6763_s3 + $0x98] sm:$0xff]  ;;  %v645_v50 = vadd.f32 %v644_v37, %v580_v24  ;;  %v585_v51 = vmul.f32 %v6861_v29, %v6861_v29  ;;  %v586_v52 = vmul.f32 %v522_v41, %v522_v41  ;;  %v534_v53 = vld [vmem:[%s6763_s3 + $0xe0] sm:$0xff]  ;;  %v535_v54 = vld [vmem:[%s6763_s3 + $0xe8] sm:$0xff] }
  0xb1   : > { %v641_v49 = vadd.f32 %v640_v35, %v577_v21  ;;  %v536_v55 = vld [vmem:[%s6763_s3 + $0xf0] sm:$0xff]  ;;  %637 = vadd.xlane.f32.xlu0 %v636_v42  ;;  %v650_v56 = vadd.f32 %v649_v43, %v584_v32  ;;  %v659_v57 = vadd.f32 %v591_v44, %v590_v40  ;;  %v587_v58 = vmul.f32 %v6877_v46, %v6877_v46  ;;  %v530_v60 = vld [vmem:[%s6763_s3 + $0xc0] sm:$0xff]  ;;  %v531_v61 = vld [vmem:[%s6763_s3 + $0xc8] sm:$0xff]  ;;  %s5821_s25 = sshll.u32 %s10205_s7, 6 }
  0xb2   : > { %v588_v59 = vmul.f32 %v524_v47, %v524_v47  ;;  %v646_v62 = vadd.f32 %v645_v50, %v581_v36  ;;  %v593_v63 = vmul.f32 %v529_v39, %v529_v39  ;;  %v537_v4 = vld [vmem:[%s6763_s3 + $0xf8] sm:$0xff]  ;;  %v598_v5 = vmul.f32 %v534_v53, %v534_v53  ;;  %v532_v11 = vld [vmem:[%s6763_s3 + $0xd0] sm:$0xff]  ;;  %v542_v21 = vld [vmem:[%s6763_s3 + $0x120] sm:$0xff] }
  0xb3   : > { %v599_v6 = vmul.f32 %v535_v54, %v535_v54  ;;  %v660_v12 = vadd.f32 %v659_v57, %v592_v45  ;;  %v589_v14 = vmul.f32 %v6881_v48, %v6881_v48  ;;  %v654_v15 = vadd.f32 %v587_v58, %v586_v52  ;;  %v533_v20 = vld [vmem:[%s6763_s3 + $0xd8] sm:$0xff]  ;;  %v543_v22 = vld [vmem:[%s6763_s3 + $0x128] sm:$0xff]  ;;  %v538_v31 = vld [vmem:[%s6763_s3 + $0x100] sm:$0xff] }
  0xb4   : > { %v600_v16 = vmul.f32 %v536_v55, %v536_v55  ;;  %647 = vadd.xlane.f32.xlu1 %v646_v62  ;;  %v651_v23 = vadd.f32 %v650_v56, %v585_v51  ;;  %v594_v28 = vmul.f32 %v530_v60, %v530_v60  ;;  %v595_v30 = vmul.f32 %v531_v61, %v531_v61  ;;  %v544_v35 = vld [vmem:[%s6763_s3 + $0x130] sm:$0xff]  ;;  %v545_v36 = vld [vmem:[%s6763_s3 + $0x138] sm:$0xff]  ;;  %v539_v37 = vld [vmem:[%s6763_s3 + $0x108] sm:$0xff] }
  0xb5   : > { %v669_v24 = vadd.f32 %v599_v6, %v598_v5  ;;  %642 = vadd.xlane.f32.xlu0 %v641_v49  ;;  %v655_v32 = vadd.f32 %v654_v15, %v588_v59  ;;  %v601_v33 = vmul.f32 %v537_v4, %v537_v4  ;;  %v596_v34 = vmul.f32 %v532_v11, %v532_v11  ;;  %v540_v42 = vld [vmem:[%s6763_s3 + $0x110] sm:$0xff]  ;;  %v550_v43 = vld [vmem:[%s6763_s3 + $0x160] sm:$0xff]  ;;  %v551_v44 = vld [vmem:[%s6763_s3 + $0x168] sm:$0xff] }
  0xb6   : > { %v597_v38 = vmul.f32 %v533_v20, %v533_v20  ;;  %v664_v39 = vadd.f32 %v595_v30, %v594_v28  ;;  %v606_v40 = vmul.f32 %v542_v21, %v542_v21  ;;  %v607_v41 = vmul.f32 %v543_v22, %v543_v22  ;;  %v541_v50 = vld [vmem:[%s6763_s3 + $0x118] sm:$0xff]  ;;  %v552_v52 = vld [vmem:[%s6763_s3 + $0x170] sm:$0xff]  ;;  %v546_v57 = vld [vmem:[%s6763_s3 + $0x140] sm:$0xff] }
  0xb7   : > { %v661_v45 = vadd.f32 %v660_v12, %v593_v63  ;;  %v656_v47 = vadd.f32 %v655_v32, %v589_v14  ;;  %v670_v49 = vadd.f32 %v669_v24, %v600_v16  ;;  %v602_v51 = vmul.f32 %v538_v31, %v538_v31  ;;  %v547_v58 = vld [vmem:[%s6763_s3 + $0x148] sm:$0xff]  ;;  %v553_v61 = vld [vmem:[%s6763_s3 + $0x178] sm:$0xff]  ;;  %v548_v4 = vld [vmem:[%s6763_s3 + $0x150] sm:$0xff] }
  0xb8   : > { %652 = vadd.xlane.f32.xlu1 %v651_v23  ;;  %v665_v53 = vadd.f32 %v664_v39, %v596_v34  ;;  %v608_v54 = vmul.f32 %v544_v35, %v544_v35  ;;  %v679_v55 = vadd.f32 %v607_v41, %v606_v40  ;;  %v603_v56 = vmul.f32 %v539_v37, %v539_v37  ;;  %v549_v14 = vld [vmem:[%s6763_s3 + $0x158] sm:$0xff]  ;;  %v558_v15 = vld [vmem:[%s6763_s3 + $0x1a0] sm:$0xff]  ;;  %v559_v16 = vld [vmem:[%s6763_s3 + $0x1a8] sm:$0xff] }
  0xb9   : > { %657 = vadd.xlane.f32.xlu0 %v656_v47  ;;  %v609_v59 = vmul.f32 %v545_v36, %v545_v36  ;;  %v604_v60 = vmul.f32 %v540_v42, %v540_v42  ;;  %v614_v62 = vmul.f32 %v550_v43, %v550_v43  ;;  %v615_v63 = vmul.f32 %v551_v44, %v551_v44  ;;  %v560_v24 = vld [vmem:[%s6763_s3 + $0x1b0] sm:$0xff]  ;;  %v554_v28 = vld [vmem:[%s6763_s3 + $0x180] sm:$0xff]  ;;  %v555_v35 = vld [vmem:[%s6763_s3 + $0x188] sm:$0xff] }
  0xba   : > { %v666_v5 = vadd.f32 %v665_v53, %v597_v38  ;;  %v605_v6 = vmul.f32 %v541_v50, %v541_v50  ;;  %v674_v11 = vadd.f32 %v603_v56, %v602_v51  ;;  %v616_v12 = vmul.f32 %v552_v52, %v552_v52  ;;  %v556_v39 = vld [vmem:[%s6763_s3 + $0x190] sm:$0xff]  ;;  %v566_v40 = vld [vmem:[%s6763_s3 + $0x1e0] sm:$0xff]  ;;  %v567_v41 = vld [vmem:[%s6763_s3 + $0x1e8] sm:$0xff] }
  0xbb   : > { %v671_v20 = vadd.f32 %v670_v49, %v601_v33  ;;  %v689_v21 = vadd.f32 %v615_v63, %v614_v62  ;;  %v610_v22 = vmul.f32 %v546_v57, %v546_v57  ;;  %v611_v23 = vmul.f32 %v547_v58, %v547_v58  ;;  %v561_v44 = vld [vmem:[%s6763_s3 + $0x1b8] sm:$0xff]  ;;  %v568_v53 = vld [vmem:[%s6763_s3 + $0x1f0] sm:$0xff]  ;;  %v1001_v63 = vld [vmem:[#allocation10 + $0x1c0] sm:$0xff] }
  0xbc   : > { %662 = vadd.xlane.f32.xlu1 %v661_v45  ;;  %v680_v30 = vadd.f32 %v679_v55, %v608_v54  ;;  %v675_v31 = vadd.f32 %v674_v11, %v604_v60  ;;  %v617_v32 = vmul.f32 %v553_v61, %v553_v61  ;;  %v612_v34 = vmul.f32 %v548_v4, %v548_v4  ;;  %v557_v47 = vld [vmem:[%s6763_s3 + $0x198] sm:$0xff]  ;;  %v562_v54 = vld [vmem:[%s6763_s3 + $0x1c0] sm:$0xff]  ;;  %v563_v55 = vld [vmem:[%s6763_s3 + $0x1c8] sm:$0xff] }
  0xbd   : > { %667 = vadd.xlane.f32.xlu0 %v666_v5  ;;  %v613_v36 = vmul.f32 %v549_v14, %v549_v14  ;;  %v684_v33 = vadd.f32 %v611_v23, %v610_v22  ;;  %v622_v37 = vmul.f32 %v558_v15, %v558_v15  ;;  %v623_v38 = vmul.f32 %v559_v16, %v559_v16  ;;  %v564_v61 = vld [vmem:[%s6763_s3 + $0x1d0] sm:$0xff]  ;;  %v565_v62 = vld [vmem:[%s6763_s3 + $0x1d8] sm:$0xff]  ;;  %v1129_v14 = vld [vmem:[#allocation10 + $0x5c0] sm:$0xff] }
  0xbe   : > { %v676_v42 = vadd.f32 %v675_v31, %v605_v6  ;;  %v690_v43 = vadd.f32 %v689_v21, %v616_v12  ;;  %v624_v45 = vmul.f32 %v560_v24, %v560_v24  ;;  %v618_v49 = vmul.f32 %v554_v28, %v554_v28  ;;  %v1005_v12 = vld [vmem:[#allocation10 + $0x1e0] sm:$0xff] }
  0xbf   : > { %v685_v50 = vadd.f32 %v684_v33, %v612_v34  ;;  %v699_v51 = vadd.f32 %v623_v38, %v622_v37  ;;  %v619_v52 = vmul.f32 %v555_v35, %v555_v35  ;;  %v681_v56 = vadd.f32 %v680_v30, %v609_v59  ;;  %v1133_v15 = vld [vmem:[#allocation10 + $0x5e0] sm:$0xff] }
  0xc0   : > { %672 = vadd.xlane.f32.xlu1 %v671_v20  ;;  %v620_v57 = vmul.f32 %v556_v39, %v556_v39  ;;  %v630_v58 = vmul.f32 %v566_v40, %v566_v40  ;;  %v631_v60 = vmul.f32 %v567_v41, %v567_v41  ;;  %v625_v5 = vmul.f32 %v561_v44, %v561_v44  ;;  %v993_v59 = vld [vmem:[#allocation10 + $0x180] sm:$0xff] }
  0xc1   : > { %677 = vadd.xlane.f32.xlu0 %v676_v42  ;;  %v686_v4 = vadd.f32 %v685_v50, %v613_v36  ;;  %v621_v6 = vmul.f32 %v557_v47, %v557_v47  ;;  %v694_v11 = vadd.f32 %v619_v52, %v618_v49  ;;  %v691_v16 = vadd.f32 %v690_v43, %v617_v32  ;;  %v997_v23 = vld [vmem:[#allocation10 + $0x1a0] sm:$0xff]  ;;  %v569_v36 = vld [vmem:[%s6763_s3 + $0x1f8] sm:$0xff] }
  0xc2   : > { %v700_v21 = vadd.f32 %v699_v51, %v624_v45  ;;  %v626_v22 = vmul.f32 %v562_v54, %v562_v54  ;;  %v627_v20 = vmul.f32 %v563_v55, %v563_v55  ;;  %v632_v28 = vmul.f32 %v568_v53, %v568_v53  ;;  %v1121_v34 = vld [vmem:[#allocation10 + $0x580] sm:$0xff] }
  0xc3   : > { %v695_v24 = vadd.f32 %v694_v11, %v620_v57  ;;  %v709_v30 = vadd.f32 %v631_v60, %v630_v58  ;;  %v628_v31 = vmul.f32 %v564_v61, %v564_v61  ;;  %v1125_v35 = vld [vmem:[#allocation10 + $0x5a0] sm:$0xff]  ;;  %v629_v33 = vmul.f32 %v565_v62, %v565_v62 }
  0xc4   : > { %682 = vadd.xlane.f32.xlu1 %v681_v56  ;;  %v704_v37 = vadd.f32 %v627_v20, %v626_v22  ;;  %v5470_v38 = vcombine.high %v1001_v63, %v1005_v12  ;;  %v5598_v39 = vcombine.high %v1129_v14, %v1133_v15  ;;  %v5469_v32 = vcombine.low %v1001_v63, %v1005_v12  ;;  %v985_v43 = vld [vmem:[#allocation10 + $0x140] sm:$0xff] }
  0xc5   : > { %687 = vadd.xlane.f32.xlu0 %v686_v4  ;;  %v696_v40 = vadd.f32 %v695_v24, %v621_v6  ;;  %v5597_v41 = vcombine.low %v1129_v14, %v1133_v15  ;;  %v5462_v42 = vcombine.high %v993_v59, %v997_v23  ;;  %v989_v44 = vld [vmem:[#allocation10 + $0x160] sm:$0xff]  ;;  %v5590_v47 = vcombine.high %v1121_v34, %v1125_v35 }
  0xc6   : > { %v705_v45 = vadd.f32 %v704_v37, %v628_v31  ;;  %2481 = vmatprep.subr.bf16.mxu0 %v5470_v38  ;;  %2594 = vmatprep.subr.bf16.mxu1 %v5598_v39  ;;  %v1113_v49 = vld [vmem:[#allocation10 + $0x540] sm:$0xff]  ;;  %v633_v51 = vmul.f32 %v569_v36, %v569_v36  ;;  %v5461_v52 = vcombine.low %v993_v59, %v997_v23 }
  0xc7   : > { %v1117_v50 = vld [vmem:[#allocation10 + $0x560] sm:$0xff]  ;;  %2482 = vmatpush1.bf16.msra.mxu0 %v5469_v32  ;;  %2595 = vmatpush1.bf16.msra.mxu1 %v5597_v41  ;;  %v5589_v53 = vcombine.low %v1121_v34, %v1125_v35  ;;  %v701_v54 = vadd.f32 %v700_v21, %v625_v5  ;;  %v710_v55 = vadd.f32 %v709_v30, %v632_v28  ;;  %v6929_v32 = vld [vmem:[#allocation10 + $0x1c8] sm:$0xff] }
  0xc8   : > { %692 = vadd.xlane.f32.xlu1 %v691_v16  ;;  %2483 = vmatprep.subr.bf16.mxu0 %v5462_v42  ;;  %v5454_v56 = vcombine.high %v985_v43, %v989_v44  ;;  %v706_v57 = vadd.f32 %v705_v45, %v629_v33  ;;  %v5582_v58 = vcombine.high %v1113_v49, %v1117_v50  ;;  %v977_v60 = vld [vmem:[#allocation10 + $0x100] sm:$0xff]  ;;  %v6935_v45 = vld [vmem:[#allocation10 + $0x5e8] sm:$0xff] }
  0xc9   : > { %697 = vadd.xlane.f32.xlu0 %v696_v40  ;;  %2596 = vmatprep.subr.bf16.mxu1 %v5590_v47  ;;  %v981_v61 = vld [vmem:[#allocation10 + $0x120] sm:$0xff]  ;;  %v5453_v4 = vcombine.low %v985_v43, %v989_v44  ;;  %v5581_v6 = vcombine.low %v1113_v49, %v1117_v50  ;;  %v711_v11 = vadd.f32 %v710_v55, %v633_v51  ;;  %v6931_v43 = vld [vmem:[#allocation10 + $0x1e8] sm:$0xff] }
  0xca   : > { %v1105_v62 = vld [vmem:[#allocation10 + $0x500] sm:$0xff]  ;;  %v5446_v12 = vcombine.high %v977_v60, %v981_v61  ;;  %v5445_v22 = vcombine.low %v977_v60, %v981_v61  ;;  %v6933_v44 = vld [vmem:[#allocation10 + $0x5c8] sm:$0xff] }
  0xcb   : > { %v1109_v63 = vld [vmem:[#allocation10 + $0x520] sm:$0xff]  ;;  %2484 = vmatpush1.bf16.msra.mxu0 %v5461_v52  ;;  %2597 = vmatpush1.bf16.msra.mxu1 %v5589_v53 }
  0xcc   : > { %702 = vadd.xlane.f32.xlu1 %v701_v54  ;;  %2485 = vmatprep.subr.bf16.mxu0 %v5454_v56  ;;  %v969_v5 = vld [vmem:[#allocation10 + $0xc0] sm:$0xff]  ;;  %v5574_v14 = vcombine.high %v1105_v62, %v1109_v63  ;;  %v5573_v20 = vcombine.low %v1105_v62, %v1109_v63 }
  0xcd   : > { %707 = vadd.xlane.f32.xlu0 %v706_v57  ;;  %2598 = vmatprep.subr.bf16.mxu1 %v5582_v58  ;;  %v973_v15 = vld [vmem:[#allocation10 + $0xe0] sm:$0xff] }
  0xce   : > { %v1097_v16 = vld [vmem:[#allocation10 + $0x4c0] sm:$0xff]  ;;  %v5438_v59 = vcombine.high %v969_v5, %v973_v15  ;;  %v5437_v34 = vcombine.low %v969_v5, %v973_v15 }
  0xcf   : > { %v1101_v21 = vld [vmem:[#allocation10 + $0x4e0] sm:$0xff]  ;;  %2486 = vmatpush1.bf16.msra.mxu0 %v5453_v4  ;;  %2599 = vmatpush1.bf16.msra.mxu1 %v5581_v6 }
  0xd0   : > { %712 = vadd.xlane.f32.xlu1 %v711_v11  ;;  %2487 = vmatprep.subr.bf16.mxu0 %v5446_v12  ;;  %v5566_v23 = vcombine.high %v1097_v16, %v1101_v21  ;;  %v961_v24 = vld [vmem:[#allocation10 + $0x80] sm:$0xff]  ;;  %v5565_v35 = vcombine.low %v1097_v16, %v1101_v21 }
  0xd1   : > { %2600 = vmatprep.subr.bf16.mxu1 %v5574_v14  ;;  %v965_v28 = vld [vmem:[#allocation10 + $0xa0] sm:$0xff] }
  0xd2   : > { %v1089_v30 = vld [vmem:[#allocation10 + $0x480] sm:$0xff]  ;;  %v5430_v36 = vcombine.high %v961_v24, %v965_v28  ;;  %v5429_v41 = vcombine.low %v961_v24, %v965_v28 }
  0xd3   : > { %v1093_v31 = vld [vmem:[#allocation10 + $0x4a0] sm:$0xff]  ;;  %2488 = vmatpush1.bf16.msra.mxu0 %v5445_v22  ;;  %2601 = vmatpush1.bf16.msra.mxu1 %v5573_v20 }
  0xd4   : > { %2489 = vmatprep.subr.bf16.mxu0 %v5438_v59  ;;  %2602 = vmatprep.subr.bf16.mxu1 %v5566_v23  ;;  %v5558_v33 = vcombine.high %v1089_v30, %v1093_v31  ;;  %v953_v37 = vld [vmem:[#allocation10 + $0x40] sm:$0xff]  ;;  %v5557_v42 = vcombine.low %v1089_v30, %v1093_v31 }
  0xd5   : > { %v957_v38 = vld [vmem:[#allocation10 + $0x60] sm:$0xff] }
  0xd6   : > { %v1081_v39 = vld [vmem:[#allocation10 + $0x440] sm:$0xff]  ;;  %v5422_v47 = vcombine.high %v953_v37, %v957_v38  ;;  %v5421_v56 = vcombine.low %v953_v37, %v957_v38 }
  0xd7   : > { %v1085_v40 = vld [vmem:[#allocation10 + $0x460] sm:$0xff]  ;;  %2490 = vmatpush1.bf16.msra.mxu0 %v5437_v34  ;;  %2603 = vmatpush1.bf16.msra.mxu1 %v5565_v35 }
  0xd8   : > { %2491 = vmatprep.subr.bf16.mxu0 %v5430_v36  ;;  %2604 = vmatprep.subr.bf16.mxu1 %v5558_v33  ;;  %v5550_v49 = vcombine.high %v1081_v39, %v1085_v40  ;;  %v945_v50 = vld [vmem:[#allocation10] sm:$0xff]  ;;  %v5549_v57 = vcombine.low %v1081_v39, %v1085_v40 }
  0xd9   : > { %v949_v51 = vld [vmem:[#allocation10 + $0x20] sm:$0xff] }
  0xda   : > { %v1073_v52 = vld [vmem:[#allocation10 + $0x400] sm:$0xff]  ;;  %v5414_v58 = vcombine.high %v945_v50, %v949_v51  ;;  %v5413_v6 = vcombine.low %v945_v50, %v949_v51 }
  0xdb   : > { %v1077_v53 = vld [vmem:[#allocation10 + $0x420] sm:$0xff]  ;;  %2492 = vmatpush1.bf16.msra.mxu0 %v5429_v41  ;;  %2605 = vmatpush1.bf16.msra.mxu1 %v5557_v42 }
  0xdc   : > { %2493 = vmatprep.subr.bf16.mxu0 %v5422_v47  ;;  %2606 = vmatprep.subr.bf16.mxu1 %v5550_v49  ;;  %v5542_v60 = vcombine.high %v1073_v52, %v1077_v53  ;;  %v1065_v61 = vld [vmem:[#allocation10 + $0x3c0] sm:$0xff]  ;;  %v5541_v11 = vcombine.low %v1073_v52, %v1077_v53 }
  0xdd   : > { %v1069_v62 = vld [vmem:[#allocation10 + $0x3e0] sm:$0xff] }
  0xde   : > { %v1193_v63 = vld [vmem:[#allocation10 + $0x7c0] sm:$0xff]  ;;  %v5534_v12 = vcombine.high %v1065_v61, %v1069_v62  ;;  %v5533_v22 = vcombine.low %v1065_v61, %v1069_v62 }
  0xdf   : > { %v1197_v4 = vld [vmem:[#allocation10 + $0x7e0] sm:$0xff]  ;;  %2494 = vmatpush1.bf16.msra.mxu0 %v5421_v56  ;;  %2607 = vmatpush1.bf16.msra.mxu1 %v5549_v57 }
  0xe0   : > { %2495 = vmatprep.subr.bf16.mxu0 %v5414_v58  ;;  %2608 = vmatprep.subr.bf16.mxu1 %v5542_v60  ;;  %v5662_v5 = vcombine.high %v1193_v63, %v1197_v4  ;;  %v1057_v14 = vld [vmem:[#allocation10 + $0x380] sm:$0xff]  ;;  %v5661_v20 = vcombine.low %v1193_v63, %v1197_v4 }
  0xe1   : > { %v1061_v15 = vld [vmem:[#allocation10 + $0x3a0] sm:$0xff] }
  0xe2   : > { %v1185_v16 = vld [vmem:[#allocation10 + $0x780] sm:$0xff]  ;;  %v5526_v59 = vcombine.high %v1057_v14, %v1061_v15  ;;  %v5525_v34 = vcombine.low %v1057_v14, %v1061_v15 }
  0xe3   : > { %v1189_v21 = vld [vmem:[#allocation10 + $0x7a0] sm:$0xff]  ;;  %2496 = vmatpush1.bf16.msra.mxu0 %v5413_v6  ;;  %2609 = vmatpush1.bf16.msra.mxu1 %v5541_v11 }
  0xe4   : > { %2497 = vmatprep.subr.bf16.mxu0 %v5534_v12  ;;  %2610 = vmatprep.subr.bf16.mxu1 %v5662_v5  ;;  %v5654_v23 = vcombine.high %v1185_v16, %v1189_v21  ;;  %v1049_v24 = vld [vmem:[#allocation10 + $0x340] sm:$0xff]  ;;  %v5653_v35 = vcombine.low %v1185_v16, %v1189_v21 }
  0xe5   : > { %v1053_v28 = vld [vmem:[#allocation10 + $0x360] sm:$0xff] }
  0xe6   : > { %v1177_v30 = vld [vmem:[#allocation10 + $0x740] sm:$0xff]  ;;  %v5518_v36 = vcombine.high %v1049_v24, %v1053_v28  ;;  %v5517_v41 = vcombine.low %v1049_v24, %v1053_v28 }
  0xe7   : > { %v1181_v31 = vld [vmem:[#allocation10 + $0x760] sm:$0xff]  ;;  %2498 = vmatpush2.bf16.msra.mxu0 %v5533_v22  ;;  %2611 = vmatpush2.bf16.msra.mxu1 %v5661_v20 }
  0xe8   : > { %2499 = vmatprep.subr.bf16.mxu0 %v5526_v59  ;;  %2612 = vmatprep.subr.bf16.mxu1 %v5654_v23  ;;  %v5646_v33 = vcombine.high %v1177_v30, %v1181_v31  ;;  %v1041_v37 = vld [vmem:[#allocation10 + $0x300] sm:$0xff]  ;;  %v5645_v42 = vcombine.low %v1177_v30, %v1181_v31 }
  0xe9   : > { %v1045_v38 = vld [vmem:[#allocation10 + $0x320] sm:$0xff] }
  0xea   : > { %v1169_v39 = vld [vmem:[#allocation10 + $0x700] sm:$0xff]  ;;  %v5510_v47 = vcombine.high %v1041_v37, %v1045_v38  ;;  %v5509_v56 = vcombine.low %v1041_v37, %v1045_v38 }
  0xeb   : > { %v1173_v40 = vld [vmem:[#allocation10 + $0x720] sm:$0xff]  ;;  %2500 = vmatpush2.bf16.msra.mxu0 %v5525_v34  ;;  %2613 = vmatpush2.bf16.msra.mxu1 %v5653_v35 }
  0xec   : > { %2501 = vmatprep.subr.bf16.mxu0 %v5518_v36  ;;  %2614 = vmatprep.subr.bf16.mxu1 %v5646_v33  ;;  %v5638_v49 = vcombine.high %v1169_v39, %v1173_v40  ;;  %v1033_v50 = vld [vmem:[#allocation10 + $0x2c0] sm:$0xff]  ;;  %v5637_v57 = vcombine.low %v1169_v39, %v1173_v40  ;;  %v5472_v39 = vcombine.high %v6929_v32, %v6931_v43 }
  0xed   : > { %v1037_v51 = vld [vmem:[#allocation10 + $0x2e0] sm:$0xff]  ;;  %v5600_v40 = vcombine.high %v6933_v44, %v6935_v45 }
  0xee   : > { %v1161_v52 = vld [vmem:[#allocation10 + $0x6c0] sm:$0xff]  ;;  %v5502_v58 = vcombine.high %v1033_v50, %v1037_v51  ;;  %v5501_v6 = vcombine.low %v1033_v50, %v1037_v51 }
  0xef   : > { %v1165_v53 = vld [vmem:[#allocation10 + $0x6e0] sm:$0xff]  ;;  %2502 = vmatpush2.bf16.msra.mxu0 %v5517_v41  ;;  %2615 = vmatpush2.bf16.msra.mxu1 %v5645_v42  ;;  %v9730_v41 = vlaneseq }
  0xf0   : > { %2503 = vmatprep.subr.bf16.mxu0 %v5510_v47  ;;  %2616 = vmatprep.subr.bf16.mxu1 %v5638_v49  ;;  %v5630_v60 = vcombine.high %v1161_v52, %v1165_v53  ;;  %v1025_v61 = vld [vmem:[#allocation10 + $0x280] sm:$0xff]  ;;  %v5629_v11 = vcombine.low %v1161_v52, %v1165_v53 }
  0xf1   : > { %v1029_v62 = vld [vmem:[#allocation10 + $0x2a0] sm:$0xff]  ;;  %v830_v49 = vshrl.u32 %v9730_v41, 7  ;;  %v7019_v41 = vld [vmem:[#allocation10 + $0x488] sm:$0xff] }
  0xf2   : > { %v1153_v63 = vld [vmem:[#allocation10 + $0x680] sm:$0xff]  ;;  %v5494_v12 = vcombine.high %v1025_v61, %v1029_v62  ;;  %v5493_v22 = vcombine.low %v1025_v61, %v1029_v62 }
  0xf3   : > { %v1157_v4 = vld [vmem:[#allocation10 + $0x6a0] sm:$0xff]  ;;  %2504 = vmatpush2.bf16.msra.mxu0 %v5509_v56  ;;  %2617 = vmatpush2.bf16.msra.mxu1 %v5637_v57  ;;  %v835_v57 = vsub.s32 1, %v830_v49  ;;  %v831_v62 = vsub.s32 0, %v830_v49 }
  0xf4   : > { %2505 = vmatprep.subr.bf16.mxu0 %v5502_v58  ;;  %2618 = vmatprep.subr.bf16.mxu1 %v5630_v60  ;;  %v5622_v5 = vcombine.high %v1153_v63, %v1157_v4  ;;  %v1017_v14 = vld [vmem:[#allocation10 + $0x240] sm:$0xff]  ;;  %v5621_v20 = vcombine.low %v1153_v63, %v1157_v4  ;;  %v843_v58 = vsub.s32 3, %v830_v49  ;;  %v839_v63 = vsub.s32 2, %v830_v49 }
  0xf5   : > { %v1021_v15 = vld [vmem:[#allocation10 + $0x260] sm:$0xff] }
  0xf6   : > { %v1145_v16 = vld [vmem:[#allocation10 + $0x640] sm:$0xff]  ;;  %v5486_v59 = vcombine.high %v1017_v14, %v1021_v15  ;;  %v5485_v34 = vcombine.low %v1017_v14, %v1021_v15  ;;  %v6951_v14 = vld [vmem:[#allocation10 + $0x1a8] sm:$0xff] }
  0xf7   : > { %v1149_v21 = vld [vmem:[#allocation10 + $0x660] sm:$0xff]  ;;  %2506 = vmatpush2.bf16.msra.mxu0 %v5501_v6  ;;  %2619 = vmatpush2.bf16.msra.mxu1 %v5629_v11  ;;  %v6949_v11 = vld [vmem:[#allocation10 + $0x188] sm:$0xff] }
  0xf8   : > { %2507 = vmatprep.subr.bf16.mxu0 %v5494_v12  ;;  %2620 = vmatprep.subr.bf16.mxu1 %v5622_v5  ;;  %v5614_v23 = vcombine.high %v1145_v16, %v1149_v21  ;;  %v1009_v24 = vld [vmem:[#allocation10 + $0x200] sm:$0xff]  ;;  %v5613_v35 = vcombine.low %v1145_v16, %v1149_v21  ;;  %v6953_v15 = vld [vmem:[#allocation10 + $0x588] sm:$0xff] }
  0xf9   : > { %v1013_v28 = vld [vmem:[#allocation10 + $0x220] sm:$0xff]  ;;  %v6955_v16 = vld [vmem:[#allocation10 + $0x5a8] sm:$0xff] }
  0xfa   : > { %v1137_v30 = vld [vmem:[#allocation10 + $0x600] sm:$0xff]  ;;  %v5478_v36 = vcombine.high %v1009_v24, %v1013_v28  ;;  %v5477_v37 = vcombine.low %v1009_v24, %v1013_v28 }
  0xfb   : > { %v1141_v31 = vld [vmem:[#allocation10 + $0x620] sm:$0xff]  ;;  %2508 = vmatpush2.bf16.msra.mxu0 %v5493_v22  ;;  %2621 = vmatpush2.bf16.msra.mxu1 %v5621_v20  ;;  %v6959_v20 = vld [vmem:[#allocation10 + $0x148] sm:$0xff] }
  0xfc   : > { %2509 = vmatprep.subr.bf16.mxu0 %v5486_v59  ;;  %2622 = vmatprep.subr.bf16.mxu1 %v5614_v23  ;;  %v5606_v33 = vcombine.high %v1137_v30, %v1141_v31  ;;  %v5605_v38 = vcombine.low %v1137_v30, %v1141_v31  ;;  %v827_v61 = vld [vmem:[%s9924_s5] sm:$0xf]  ;;  %v6961_v59 = vld [vmem:[#allocation10 + $0x168] sm:$0xff] }
  0xfd   : > { %v6957_v22 = vrot.slane %v827_v61, %v835_v57  ;;  %v6963_v24 = vrot.slane %v827_v61, %v843_v58  ;;  %v6965_v28 = vrot.slane %v827_v61, %v831_v62  ;;  %v6967_v30 = vrot.slane %v827_v61, %v839_v63  ;;  %v6969_v31 = vld [vmem:[#allocation10 + $0x548] sm:$0xff] }
  0xfe   : > { %v6999_v61 = vld [vmem:[#allocation10 + $0x4c8] sm:$0xff] }
  0xff   : > { %2510 = vmatpush2.bf16.msra.mxu0 %v5485_v34  ;;  %2623 = vmatpush2.bf16.msra.mxu1 %v5613_v35  ;;  %v6971_v34 = vld [vmem:[#allocation10 + $0x568] sm:$0xff] }
 0x100   : > { %2511 = vmatprep.subr.bf16.mxu0 %v5478_v36  ;;  %2624 = vmatprep.subr.bf16.mxu1 %v5606_v33  ;;  %v7001_v62 = vld [vmem:[#allocation10 + $0x4e8] sm:$0xff] }
 0x103   : > { %2512 = vmatpush2.bf16.msra.mxu0 %v5477_v37  ;;  %2625 = vmatpush2.bf16.msra.mxu1 %v5605_v38 }
 0x104   : > { %2707 = vmatprep.subr.bf16.mxu0 %v5472_v39  ;;  %2820 = vmatprep.subr.bf16.mxu1 %v5600_v40  ;;  %v6979_v39 = vld [vmem:[#allocation10 + $0x108] sm:$0xff] }
 0x105   : > { %v6981_v40 = vld [vmem:[#allocation10 + $0x128] sm:$0xff] }
 0x13a   : > { %v638_v42 = vpop.xlane.xlu0 %637 }
 0x13b   : > { %v715_v47 = vmul.f32 0.001953125, %v638_v42  ;;  %v6983_v42 = vld [vmem:[#allocation10 + $0x508] sm:$0xff] }
 0x13d   : > { %v731_v50 = vadd.f32 1e-05, %v715_v47  ;;  %v648_v51 = vpop.xlane.xlu1 %647 }
 0x13e   : > { %v643_v52 = vpop.xlane.xlu0 %642  ;;  %v717_v53 = vmul.f32 0.001953125, %v648_v51  ;;  %v7033_v51 = vld [vmem:[#allocation10 + $0x48] sm:$0xff] }
 0x13f   : > { %5970 = vrsqrt.f32 %v731_v50  ;;  %v716_v56 = vmul.f32 0.001953125, %v643_v52  ;;  %v6989_v52 = vld [vmem:[#allocation10 + $0x528] sm:$0xff] }
 0x140   : > { %v733_v60 = vadd.f32 1e-05, %v717_v53  ;;  %v6991_v53 = vld [vmem:[#allocation10 + $0xc8] sm:$0xff] }
 0x141   : > { %v732_v4 = vadd.f32 1e-05, %v716_v56  ;;  %v653_v6 = vpop.xlane.xlu1 %652  ;;  %v6993_v56 = vld [vmem:[#allocation10 + $0xe8] sm:$0xff] }
 0x142   : > { %5972 = vrsqrt.f32 %v733_v60  ;;  %v718_v12 = vmul.f32 0.001953125, %v653_v6  ;;  %v658_v5 = vpop.xlane.xlu0 %657  ;;  %v7021_v6 = vld [vmem:[#allocation10 + $0x4a8] sm:$0xff] }
 0x143   : > { %5974 = vrsqrt.f32 %v732_v4  ;;  %v719_v21 = vmul.f32 0.001953125, %v658_v5  ;;  %v7009_v5 = vld [vmem:[#allocation10 + $0x88] sm:$0xff] }
 0x144   : > { %v734_v23 = vadd.f32 1e-05, %v718_v12 }
 0x145   : > { %v663_v35 = vpop.xlane.xlu1 %662  ;;  %v735_v36 = vadd.f32 1e-05, %v719_v21  ;;  %v7011_v21 = vld [vmem:[#allocation10 + $0xa8] sm:$0xff] }
 0x146   : > { %5976 = vrsqrt.f32 %v734_v23  ;;  %v720_v47 = vmul.f32 0.001953125, %v663_v35  ;;  %v668_v49 = vpop.xlane.xlu0 %667 }
 0x147   : > { %5978 = vrsqrt.f32 %v735_v36  ;;  %v721_v57 = vmul.f32 0.001953125, %v668_v49 }
 0x148   : > { %v736_v63 = vadd.f32 1e-05, %v720_v47 }
 0x149   : > { %v673_v23 = vpop.xlane.xlu1 %672  ;;  %v737_v35 = vadd.f32 1e-05, %v721_v57 }
 0x14a   : > { %5980 = vrsqrt.f32 %v736_v63  ;;  %v722_v12 = vmul.f32 0.001953125, %v673_v23  ;;  %v678_v60 = vpop.xlane.xlu0 %677  ;;  %v7035_v63 = vld [vmem:[#allocation10 + $0x68] sm:$0xff] }
 0x14b   : > { %v723_v36 = vmul.f32 0.001953125, %v678_v60  ;;  %5982 = vrsqrt.f32 %v737_v35 }
 0x14c   : > { %v5971_v23 = vpop.eup %5970  ;;  %v738_v38 = vadd.f32 1e-05, %v722_v12 }
 0x14d   : > { %v764_v58 = vmul.f32 %v5971_v23, %v6797_v1  ;;  %v766_v49 = vmul.f32 %v5971_v23, %v6803_v3  ;;  %v763_v47 = vmul.f32 %v5971_v23, %v6794_v0  ;;  %v765_v4 = vmul.f32 %v5971_v23, %v6800_v2  ;;  %v683_v33 = vpop.xlane.xlu1 %682 }
 0x14e   : > { %5984 = vrsqrt.f32 %v738_v38  ;;  %v724_v50 = vmul.f32 0.001953125, %v683_v33  ;;  %v739_v37 = vadd.f32 1e-05, %v723_v36 }
 0x14f   : > { %v5973_v35 = vpop.eup %5972  ;;  %v850_v57 = vmul.f32 %v6957_v22, %v764_v58  ;;  %v852_v60 = vmul.f32 %v6963_v24, %v766_v49  ;;  %v849_v1 = vmul.f32 %v6965_v28, %v763_v47  ;;  %v851_v3 = vmul.f32 %v6967_v30, %v765_v4 }
 0x150   : > { %v5975_v55 = vpop.eup %5974  ;;  %v740_v0 = vadd.f32 1e-05, %v724_v50  ;;  %5986 = vrsqrt.f32 %v739_v37  ;;  %v772_v2 = vmul.f32 %v5973_v35, %v6835_v17  ;;  %v774_v33 = vmul.f32 %v5973_v35, %v6841_v19 }
 0x151   : > { %v768_v38 = vmul.f32 %v5975_v55, %v6815_v8  ;;  %v770_v36 = vmul.f32 %v5975_v55, %v6821_v10  ;;  %v767_v23 = vmul.f32 %v5975_v55, %v6812_v7  ;;  %v769_v58 = vmul.f32 %v5975_v55, %v6818_v9  ;;  %v693_v49 = vpop.xlane.xlu1 %692 }
 0x152   : > { %5988 = vrsqrt.f32 %v740_v0  ;;  %v858_v47 = vmul.f32 %v6957_v22, %v772_v2  ;;  %v860_v4 = vmul.f32 %v6963_v24, %v774_v33  ;;  %v771_v37 = vmul.f32 %v5973_v35, %v6828_v13  ;;  %v688_v33 = vpop.xlane.xlu0 %687 }
 0x153   : > { %v5977_v50 = vpop.eup %5976  ;;  %v854_v17 = vmul.f32 %v6957_v22, %v768_v38  ;;  %v856_v19 = vmul.f32 %v6963_v24, %v770_v36  ;;  %v853_v8 = vmul.f32 %v6965_v28, %v767_v23  ;;  %v855_v10 = vmul.f32 %v6967_v30, %v769_v58 }
 0x154   : > { %v5979_v7 = vpop.eup %5978  ;;  %v776_v9 = vmul.f32 %v5977_v50, %v6855_v26  ;;  %v778_v55 = vmul.f32 %v5977_v50, %v6861_v29  ;;  %v775_v0 = vmul.f32 %v5977_v50, %v6852_v25  ;;  %v857_v2 = vmul.f32 %v6965_v28, %v771_v37 }
 0x155   : > { %v7068_v13 = vpack.c.bf16 %v854_v17, %v850_v57  ;;  %v7070_v12 = vpack.c.bf16 %v856_v19, %v852_v60  ;;  %v7072_v38 = vpack.c.bf16 %v853_v8, %v849_v1  ;;  %v7074_v36 = vpack.c.bf16 %v855_v10, %v851_v3  ;;  %v703_v23 = vpop.xlane.xlu1 %702 }
 0x156   : > { %v862_v58 = vmul.f32 %v6957_v22, %v776_v9  ;;  %v864_v26 = vmul.f32 %v6963_v24, %v778_v55  ;;  %v861_v29 = vmul.f32 %v6965_v28, %v775_v0  ;;  %v773_v25 = vmul.f32 %v5973_v35, %v6838_v18  ;;  %v6003_v0 = vld [vmem:[%s6763_s3 + $0xb8] sm:$0xff] }
 0x157   : > { %v5981_v54 = vpop.eup %5980  ;;  %2513 = vmatprep.mubr.bf16.mxu0 %v7068_v13  ;;  %2626 = vmatprep.mubr.bf16.mxu1 %v7070_v12  ;;  %v777_v57 = vmul.f32 %v5977_v50, %v6858_v27  ;;  %v726_v60 = vmul.f32 0.001953125, %v693_v49  ;;  %v725_v1 = vmul.f32 0.001953125, %v688_v33  ;;  %v780_v3 = vmul.f32 %v5979_v7, %v6877_v46  ;;  %v6004_v33 = vld [vmem:[%s6763_s3 + $0x80] sm:$0xff] }
 0x158   : > { %2514 = vmatmul.mubr.bf16.vlgmr.msra.gmra.mxu0 %v7072_v38  ;;  %2627 = vmatmul.mubr.bf16.vlgmr.msra.gmra.mxu1 %v7074_v36  ;;  %v7086_v37 = vpack.c.bf16 %v862_v58, %v858_v47  ;;  %v7088_v17 = vpack.c.bf16 %v864_v26, %v860_v4  ;;  %v7090_v18 = vpack.c.bf16 %v861_v29, %v857_v2  ;;  %v728_v35 = vmul.f32 0.001953125, %v703_v23  ;;  %v7092_v19 = vpop.eup %5982  ;;  %v698_v58 = vpop.xlane.xlu0 %697  ;;  %v6005_v29 = vld [vmem:[%s6763_s3 + $0xa0] sm:$0xff] }
 0x159   : > { %v9925_v27 = vcombine.low %v6929_v32, %v6931_v43  ;;  %v9926_v46 = vcombine.low %v6933_v44, %v6935_v45  ;;  %v859_v49 = vmul.f32 %v6967_v30, %v773_v25  ;;  %v863_v47 = vmul.f32 %v6967_v30, %v777_v57  ;;  %v6002_v43 = vld [vmem:[%s6763_s3 + $0xa8] sm:$0xff] }
 0x15a   : > { %v742_v4 = vadd.f32 1e-05, %v726_v60  ;;  %v741_v50 = vadd.f32 1e-05, %v725_v1  ;;  %v9927_v8 = vcombine.high %v6949_v11, %v6951_v14  ;;  %v9928_v32 = vcombine.high %v6953_v15, %v6955_v16  ;;  %2523 = vmatprep.mubr.bf16.mxu0 %v7086_v37  ;;  %2636 = vmatprep.mubr.bf16.mxu1 %v7088_v17 }
 0x15b   : > { %2708 = vmatpush1.bf16.msra.mxu0 %v9925_v27  ;;  %2821 = vmatpush1.bf16.msra.mxu1 %v9926_v46  ;;  %v784_v44 = vmul.f32 %v6002_v43, %v5981_v54  ;;  %v866_v45 = vmul.f32 %v6957_v22, %v780_v3  ;;  %v782_v10 = vmul.f32 %v5979_v7, %v6881_v48  ;;  %v7111_v9 = vpop.eup %5984  ;;  %v6006_v27 = vld [vmem:[%s6763_s3 + $0x90] sm:$0xff] }
 0x15c   : > { %2709 = vmatprep.subr.bf16.mxu0 %v9927_v8  ;;  %2822 = vmatprep.subr.bf16.mxu1 %v9928_v32  ;;  %v7115_v55 = vpack.c.bf16 %v863_v47, %v859_v49  ;;  %v786_v2 = vmul.f32 %v6003_v0, %v5981_v54  ;;  %v779_v23 = vmul.f32 %v6004_v33, %v5979_v7  ;;  %5990 = vrsqrt.f32 %v742_v4  ;;  %v7141_v8 = vld [vmem:[#allocation10 + $0x448] sm:$0xff] }
 0x15d   : > { %v870_v26 = vmul.f32 %v6957_v22, %v784_v44  ;;  %v868_v48 = vmul.f32 %v6963_v24, %v782_v10  ;;  %v783_v25 = vmul.f32 %v6005_v29, %v5981_v54  ;;  %v7122_v57 = vpop.eup %5986  ;;  %v9929_v60 = vcombine.low %v6949_v11, %v6951_v14  ;;  %v6008_v44 = vld [vmem:[%s6763_s3 + $0xc8] sm:$0xff]  ;;  %v6011_v29 = vld [vmem:[%s6763_s3 + $0xf8] sm:$0xff] }
 0x15e   : > { %v9930_v1 = vcombine.low %v6953_v15, %v6955_v16  ;;  %5992 = vrsqrt.f32 %v741_v50  ;;  %v872_v3 = vmul.f32 %v6963_v24, %v786_v2  ;;  %v781_v46 = vmul.f32 %v6006_v27, %v5979_v7  ;;  %v6007_v16 = vld [vmem:[%s6763_s3 + $0xb0] sm:$0xff]  ;;  %v7143_v7 = vld [vmem:[#allocation10 + $0x468] sm:$0xff] }
 0x15f   : > { %2710 = vmatpush1.bf16.msra.mxu0 %v9929_v60  ;;  %v744_v49 = vadd.f32 1e-05, %v728_v35  ;;  %v9931_v47 = vcombine.high %v6959_v20, %v6961_v59  ;;  %v9932_v11 = vcombine.high %v6969_v31, %v6971_v34  ;;  %v865_v14 = vmul.f32 %v6965_v28, %v779_v23  ;;  %v7145_v35 = vpop.eup %5988  ;;  %v6009_v0 = vld [vmem:[%s6763_s3 + $0xe8] sm:$0xff]  ;;  %v6010_v23 = vld [vmem:[%s6763_s3 + $0xd8] sm:$0xff] }
 0x160   : > { %2823 = vmatpush1.bf16.msra.mxu1 %v9930_v1  ;;  %v869_v15 = vmul.f32 %v6965_v28, %v783_v25  ;;  %v785_v4 = vmul.f32 %v6007_v16, %v5981_v54  ;;  %v727_v50 = vmul.f32 0.001953125, %v698_v58  ;;  %v7147_v32 = vpack.c.bf16 %v870_v26, %v866_v45  ;;  %2524 = vmatmul.mubr.bf16.gmra.mxu0 %v7090_v18  ;;  %v7183_v27 = vld [vmem:[#allocation10 + $0x8] sm:$0xff] }
 0x161   : > { %2711 = vmatprep.subr.bf16.mxu0 %v9931_v47  ;;  %2824 = vmatprep.subr.bf16.mxu1 %v9932_v11  ;;  %v7149_v43 = vpack.c.bf16 %v872_v3, %v868_v48  ;;  %v788_v10 = vmul.f32 %v6008_v44, %v7092_v19  ;;  %v792_v2 = vmul.f32 %v6009_v0, %v7111_v9  ;;  %v713_v47 = vpop.xlane.xlu1 %712  ;;  %5994 = vrsqrt.f32 %v744_v49  ;;  %v6013_v44 = vld [vmem:[%s6763_s3 + $0xe0] sm:$0xff]  ;;  %v6014_v0 = vld [vmem:[%s6763_s3 + $0xd0] sm:$0xff] }
 0x162   : > { %2637 = vmatmul.mubr.bf16.gmra.mxu1 %v7115_v55  ;;  %v867_v54 = vmul.f32 %v6967_v30, %v781_v46  ;;  %v871_v33 = vmul.f32 %v6967_v30, %v785_v4  ;;  %v790_v45 = vmul.f32 %v6010_v23, %v7092_v19  ;;  %v9933_v58 = vcombine.low %v6959_v20, %v6961_v59  ;;  %v7185_v46 = vld [vmem:[#allocation10 + $0x28] sm:$0xff]  ;;  %v708_v4 = vpop.xlane.xlu0 %707  ;;  %v6015_v23 = vld [vmem:[%s6763_s3 + $0xf0] sm:$0xff] }
 0x163   : > { %v9934_v26 = vcombine.low %v6969_v31, %v6971_v34  ;;  %v743_v48 = vadd.f32 1e-05, %v727_v50  ;;  %v794_v25 = vmul.f32 %v6011_v29, %v7111_v9  ;;  %v5423_v60 = vcombine.low %v7033_v51, %v7035_v63  ;;  %2533 = vmatprep.mubr.bf16.mxu0 %v7147_v32  ;;  %2646 = vmatprep.mubr.bf16.mxu1 %v7149_v43 }
 0x164   : > { %2712 = vmatpush1.bf16.msra.mxu0 %v9933_v58  ;;  %v5551_v1 = vcombine.low %v7141_v8, %v7143_v7  ;;  %v9935_v3 = vcombine.high %v6979_v39, %v6981_v40  ;;  %v9936_v20 = vcombine.high %v6983_v42, %v6989_v52  ;;  %v7179_v59 = vpack.c.bf16 %v869_v15, %v865_v14  ;;  %v6012_v15 = vld [vmem:[%s6763_s3 + $0xc0] sm:$0xff] }
 0x165   : > { %2825 = vmatpush1.bf16.msra.mxu1 %v9934_v26  ;;  %v874_v31 = vmul.f32 %v6957_v22, %v788_v10  ;;  %v878_v34 = vmul.f32 %v6957_v22, %v792_v2  ;;  %v876_v11 = vmul.f32 %v6963_v24, %v790_v45  ;;  %v880_v14 = vmul.f32 %v6963_v24, %v794_v25  ;;  %v6017_v25 = vld [vmem:[%s6763_s3 + $0x128] sm:$0xff] }
 0x166   : > { %2713 = vmatprep.subr.bf16.mxu0 %v9935_v3  ;;  %2826 = vmatprep.subr.bf16.mxu1 %v9936_v20  ;;  %v787_v16 = vmul.f32 %v6012_v15, %v7092_v19  ;;  %v7193_v50 = vpack.c.bf16 %v871_v33, %v867_v54  ;;  %v791_v10 = vmul.f32 %v6013_v44, %v7111_v9  ;;  %5996 = vrsqrt.f32 %v743_v48  ;;  %v6016_v48 = vld [vmem:[%s6763_s3 + $0x108] sm:$0xff]  ;;  %v6018_v15 = vld [vmem:[%s6763_s3 + $0x118] sm:$0xff] }
 0x167   : > { %v789_v2 = vmul.f32 %v6014_v0, %v7092_v19  ;;  %v793_v49 = vmul.f32 %v6015_v23, %v7111_v9  ;;  %v9937_v45 = vcombine.low %v6979_v39, %v6981_v40  ;;  %v9938_v58 = vcombine.low %v6983_v42, %v6989_v52  ;;  %v7219_v42 = vld [vmem:[#allocation10 + $0x408] sm:$0xff] }
 0x168   : > { %v5552_v54 = vcombine.high %v7141_v8, %v7143_v7  ;;  %v5415_v19 = vcombine.low %v7183_v27, %v7185_v46  ;;  %v730_v33 = vmul.f32 0.001953125, %v713_v47  ;;  %v9939_v9 = vcombine.high %v6991_v53, %v6993_v56  ;;  %v7221_v52 = vld [vmem:[#allocation10 + $0x428] sm:$0xff]  ;;  %2534 = vmatmul.mubr.bf16.gmra.mxu0 %v7179_v59 }
 0x169   : > { %2714 = vmatpush1.bf16.msra.mxu0 %v9937_v45  ;;  %2827 = vmatpush1.bf16.msra.mxu1 %v9938_v58  ;;  %v9940_v39 = vcombine.high %v6999_v61, %v7001_v62  ;;  %v7217_v40 = vpack.c.bf16 %v878_v34, %v874_v31  ;;  %v729_v26 = vmul.f32 0.001953125, %v708_v4  ;;  %v796_v29 = vmul.f32 %v6016_v48, %v7122_v57  ;;  %v6019_v31 = vld [vmem:[%s6763_s3 + $0x138] sm:$0xff]  ;;  %v7265_v48 = vld [vmem:[#allocation10 + $0x3c8] sm:$0xff] }
 0x16a   : > { %2715 = vmatprep.subr.bf16.mxu0 %v9939_v9  ;;  %v800_v3 = vmul.f32 %v6017_v25, %v7145_v35  ;;  %v7227_v20 = vpack.c.bf16 %v880_v14, %v876_v11  ;;  %v873_v47 = vmul.f32 %v6965_v28, %v787_v16  ;;  %v798_v44 = vmul.f32 %v6018_v15, %v7122_v57  ;;  %v7239_v14 = vpop.eup %5990  ;;  %v7267_v25 = vld [vmem:[#allocation10 + $0x3e8] sm:$0xff] }
 0x16b   : > { %2828 = vmatprep.subr.bf16.mxu1 %v9940_v39  ;;  %v802_v34 = vmul.f32 %v6019_v31, %v7145_v35  ;;  %2647 = vmatmul.mubr.bf16.gmra.mxu1 %v7193_v50  ;;  %v877_v4 = vmul.f32 %v6965_v28, %v791_v10  ;;  %v875_v0 = vmul.f32 %v6967_v30, %v789_v2  ;;  %v7253_v58 = vpop.eup %5992  ;;  %v6020_v39 = vld [vmem:[%s6763_s3 + $0x100] sm:$0xff] }
 0x16c   : > { %v879_v11 = vmul.f32 %v6967_v30, %v793_v49  ;;  %v9941_v16 = vcombine.low %v6991_v53, %v6993_v56  ;;  %v9942_v23 = vcombine.low %v6999_v61, %v7001_v62  ;;  %v5416_v45 = vcombine.high %v7183_v27, %v7185_v46  ;;  %2543 = vmatprep.mubr.bf16.mxu0 %v7217_v40  ;;  %v7382_v46 = vld [vmem:[#allocation10 + $0x748] sm:$0xff] }
 0x16d   : > { %v5543_v10 = vcombine.low %v7219_v42, %v7221_v52  ;;  %v5544_v2 = vcombine.high %v7219_v42, %v7221_v52  ;;  %v746_v49 = vadd.f32 1e-05, %v730_v33  ;;  %v9943_v53 = vcombine.high %v7009_v5, %v7011_v21  ;;  %2656 = vmatprep.mubr.bf16.mxu1 %v7227_v20  ;;  %v6032_v42 = vld [vmem:[%s6763_s3 + $0x188] sm:$0xff] }
 0x16e   : > { %2716 = vmatpush1.bf16.msra.mxu0 %v9941_v16  ;;  %2829 = vmatpush1.bf16.msra.mxu1 %v9942_v23  ;;  %v9944_v56 = vcombine.high %v7019_v41, %v7021_v6  ;;  %v745_v61 = vadd.f32 1e-05, %v729_v26  ;;  %v882_v62 = vmul.f32 %v6957_v22, %v796_v29  ;;  %v886_v9 = vmul.f32 %v6957_v22, %v800_v3  ;;  %v6021_v29 = vld [vmem:[%s6763_s3 + $0x120] sm:$0xff]  ;;  %v6022_v23 = vld [vmem:[%s6763_s3 + $0x110] sm:$0xff] }
 0x16f   : > { %2717 = vmatprep.subr.bf16.mxu0 %v9943_v53  ;;  %v795_v33 = vmul.f32 %v6020_v39, %v7122_v57  ;;  %v884_v15 = vmul.f32 %v6963_v24, %v798_v44  ;;  %v888_v26 = vmul.f32 %v6963_v24, %v802_v34  ;;  %v799_v31 = vmul.f32 %v6021_v29, %v7145_v35  ;;  %v6026_v29 = vld [vmem:[%s6763_s3 + $0x158] sm:$0xff] }
 0x170   : > { %2830 = vmatprep.subr.bf16.mxu1 %v9944_v56  ;;  %v7275_v3 = vpack.c.bf16 %v877_v4, %v873_v47  ;;  %v7277_v16 = vpack.c.bf16 %v879_v11, %v875_v0  ;;  %v797_v53 = vmul.f32 %v6022_v23, %v7122_v57  ;;  %v6023_v56 = vld [vmem:[%s6763_s3 + $0x130] sm:$0xff]  ;;  %v9945_v44 = vcombine.low %v7009_v5, %v7011_v21  ;;  %v7293_v4 = vld [vmem:[#allocation10 + $0x7c8] sm:$0xff] }
 0x171   : > { %v801_v39 = vmul.f32 %v6023_v56, %v7145_v35  ;;  %v9946_v34 = vcombine.low %v7019_v41, %v7021_v6  ;;  %5998 = vrsqrt.f32 %v746_v49  ;;  %v5535_v47 = vcombine.low %v7265_v48, %v7267_v25  ;;  %v7295_v35 = vld [vmem:[#allocation10 + $0x7e8] sm:$0xff]  ;;  %v6027_v56 = vld [vmem:[%s6763_s3 + $0x178] sm:$0xff] }
 0x172   : > { %2718 = vmatpush1.bf16.msra.mxu0 %v9945_v44  ;;  %v5536_v57 = vcombine.high %v7265_v48, %v7267_v25  ;;  %v6024_v0 = vld [vmem:[%s6763_s3 + $0x148] sm:$0xff]  ;;  %v9947_v41 = vcombine.high %v7033_v51, %v7035_v63  ;;  %6000 = vrsqrt.f32 %v745_v61  ;;  %v806_v23 = vmul.f32 %v6026_v29, %v7253_v58 }
 0x173   : > { %2831 = vmatpush1.bf16.msra.mxu1 %v9946_v34  ;;  %v804_v5 = vmul.f32 %v6024_v0, %v7253_v58  ;;  %v7302_v6 = vld [vmem:[#allocation10 + $0x388] sm:$0xff]  ;;  %v810_v44 = vmul.f32 %v6027_v56, %v7239_v14  ;;  %v7312_v34 = vpack.c.bf16 %v886_v9, %v882_v62  ;;  %v7314_v0 = vpack.c.bf16 %v888_v26, %v884_v15  ;;  %v6031_v56 = vld [vmem:[%s6763_s3 + $0x170] sm:$0xff] }
 0x174   : > { %2719 = vmatprep.subr.bf16.mxu0 %v9947_v41  ;;  %2832 = vmatprep.subr.bf16.mxu1 %v5552_v54  ;;  %v7304_v21 = vld [vmem:[#allocation10 + $0x3a8] sm:$0xff]  ;;  %v881_v54 = vmul.f32 %v6965_v28, %v795_v33  ;;  %v885_v61 = vmul.f32 %v6965_v28, %v799_v31  ;;  %v7318_v41 = vpop.eup %5994  ;;  %v887_v29 = vmul.f32 %v6967_v30, %v801_v39 }
 0x175   : > { %v6025_v11 = vld [vmem:[%s6763_s3 + $0x168] sm:$0xff]  ;;  %2544 = vmatmul.mubr.bf16.gmra.mxu0 %v7275_v3  ;;  %2657 = vmatmul.mubr.bf16.gmra.mxu1 %v7277_v16  ;;  %v5663_v62 = vcombine.low %v7293_v4, %v7295_v35  ;;  %v5664_v9 = vcombine.high %v7293_v4, %v7295_v35  ;;  %v5527_v33 = vcombine.low %v7302_v6, %v7304_v21  ;;  %v7339_v31 = vpop.eup %5996  ;;  %v6029_v35 = vld [vmem:[%s6763_s3 + $0x160] sm:$0xff] }
 0x176   : > { %v808_v49 = vmul.f32 %v6025_v11, %v7239_v14  ;;  %v883_v11 = vmul.f32 %v6967_v30, %v797_v53  ;;  %2720 = vmatpush1.bf16.msra.mxu0 %v5423_v60  ;;  %v7336_v15 = vld [vmem:[#allocation10 + $0x788] sm:$0xff]  ;;  %v890_v26 = vmul.f32 %v6957_v22, %v804_v5  ;;  %v892_v8 = vmul.f32 %v6963_v24, %v806_v23  ;;  %v6028_v53 = vld [vmem:[%s6763_s3 + $0x140] sm:$0xff] }
 0x177   : > { %2833 = vmatpush1.bf16.msra.mxu1 %v5551_v1  ;;  %2721 = vmatprep.subr.bf16.mxu0 %v5416_v45  ;;  %v7341_v51 = vld [vmem:[#allocation10 + $0x7a8] sm:$0xff]  ;;  %v896_v7 = vmul.f32 %v6963_v24, %v810_v44  ;;  %v7352_v45 = vpack.c.bf16 %v885_v61, %v881_v54  ;;  %v803_v39 = vmul.f32 %v6028_v53, %v7253_v58 }
 0x178   : > { %2834 = vmatprep.subr.bf16.mxu1 %v5544_v2  ;;  %v894_v63 = vmul.f32 %v6957_v22, %v808_v49  ;;  %v7346_v60 = vld [vmem:[#allocation10 + $0x348] sm:$0xff]  ;;  %2553 = vmatprep.mubr.bf16.mxu0 %v7312_v34  ;;  %v5528_v2 = vcombine.high %v7302_v6, %v7304_v21  ;;  %v7358_v4 = vpack.c.bf16 %v887_v29, %v883_v11  ;;  %v6030_v49 = vld [vmem:[%s6763_s3 + $0x150] sm:$0xff] }
 0x179   : > { %v7348_v1 = vld [vmem:[#allocation10 + $0x368] sm:$0xff]  ;;  %2666 = vmatprep.mubr.bf16.mxu1 %v7314_v0  ;;  %v807_v5 = vmul.f32 %v6029_v35, %v7239_v14  ;;  %v805_v23 = vmul.f32 %v6030_v49, %v7253_v58  ;;  %v809_v44 = vmul.f32 %v6031_v56, %v7239_v14  ;;  %v5655_v54 = vcombine.low %v7336_v15, %v7341_v51  ;;  %v6036_v35 = vld [vmem:[%s6763_s3 + $0x180] sm:$0xff] }
 0x17a   : > { %2722 = vmatpush1.bf16.msra.mxu0 %v5415_v19  ;;  %v5656_v58 = vcombine.high %v7336_v15, %v7341_v51  ;;  %v5520_v61 = vcombine.high %v7346_v60, %v7348_v1  ;;  %v7378_v14 = vpack.c.bf16 %v894_v63, %v890_v26  ;;  %v7380_v27 = vpack.c.bf16 %v896_v7, %v892_v8  ;;  %v7384_v19 = vld [vmem:[#allocation10 + $0x768] sm:$0xff]  ;;  %v6034_v15 = vld [vmem:[%s6763_s3 + $0x198] sm:$0xff] }
 0x17b   : > { %2835 = vmatpush1.bf16.msra.mxu1 %v5543_v10  ;;  %2723 = vmatprep.subr.bf16.mxu0 %v5536_v57  ;;  %v812_v52 = vmul.f32 %v6032_v42, %v7339_v31  ;;  %v889_v10 = vmul.f32 %v6965_v28, %v803_v39  ;;  %v6033_v11 = vld [vmem:[%s6763_s3 + $0x1a8] sm:$0xff]  ;;  %v814_v57 = vmul.f32 %v6034_v15, %v7339_v31  ;;  %v6038_v42 = vld [vmem:[%s6763_s3 + $0x190] sm:$0xff] }
 0x17c   : > { %2836 = vmatprep.subr.bf16.mxu1 %v5664_v9  ;;  %v816_v29 = vmul.f32 %v6033_v11, %v7318_v41  ;;  %v6035_v9 = vld [vmem:[%s6763_s3 + $0x1b8] sm:$0xff]  ;;  %v893_v51 = vmul.f32 %v6965_v28, %v807_v5  ;;  %v891_v63 = vmul.f32 %v6967_v30, %v805_v23  ;;  %v895_v8 = vmul.f32 %v6967_v30, %v809_v44  ;;  %v7407_v39 = vld [vmem:[#allocation10 + $0x308] sm:$0xff]  ;;  %v6039_v11 = vld [vmem:[%s6763_s3 + $0x1b0] sm:$0xff] }
 0x17d   : > { %v818_v26 = vmul.f32 %v6035_v9, %v7318_v41  ;;  %2554 = vmatmul.mubr.bf16.gmra.mxu0 %v7352_v45  ;;  %2667 = vmatmul.mubr.bf16.gmra.mxu1 %v7358_v4  ;;  %v5519_v7 = vcombine.low %v7346_v60, %v7348_v1  ;;  %v5647_v53 = vcombine.low %v7382_v46, %v7384_v19  ;;  %v7415_v25 = vld [vmem:[#allocation10 + $0x328] sm:$0xff]  ;;  %v6037_v1 = vld [vmem:[%s6763_s3 + $0x1a0] sm:$0xff] }
 0x17e   : > { %2724 = vmatpush2.bf16.msra.mxu0 %v5535_v47  ;;  %v811_v5 = vmul.f32 %v6036_v35, %v7339_v31  ;;  %v7411_v49 = vpop.eup %5998  ;;  %v5648_v48 = vcombine.high %v7382_v46, %v7384_v19  ;;  %v7417_v47 = vld [vmem:[#allocation10 + $0x708] sm:$0xff]  ;;  %v898_v60 = vmul.f32 %v6957_v22, %v812_v52  ;;  %v815_v23 = vmul.f32 %v6037_v1, %v7318_v41 }
 0x17f   : > { %2837 = vmatpush2.bf16.msra.mxu1 %v5663_v62  ;;  %2725 = vmatprep.subr.bf16.mxu0 %v5528_v2  ;;  %v7419_v62 = vld [vmem:[#allocation10 + $0x728] sm:$0xff]  ;;  %v7424_v56 = vpop.eup %6000  ;;  %v902_v2 = vmul.f32 %v6957_v22, %v816_v29  ;;  %v900_v44 = vmul.f32 %v6963_v24, %v814_v57  ;;  %v7431_v46 = vpack.c.bf16 %v893_v51, %v889_v10 }
 0x180   : > { %2838 = vmatprep.subr.bf16.mxu1 %v5656_v58  ;;  %2563 = vmatprep.mubr.bf16.mxu0 %v7378_v14  ;;  %v904_v58 = vmul.f32 %v6963_v24, %v818_v26  ;;  %v7433_v19 = vpack.c.bf16 %v895_v8, %v891_v63  ;;  %v813_v52 = vmul.f32 %v6038_v42, %v7339_v31  ;;  %v7447_v31 = vld [vmem:[#allocation10 + $0x2c8] sm:$0xff] }
 0x181   : > { %2676 = vmatprep.mubr.bf16.mxu1 %v7380_v27  ;;  %v817_v15 = vmul.f32 %v6039_v11, %v7318_v41  ;;  %v5512_v29 = vcombine.high %v7407_v39, %v7415_v25  ;;  %v5640_v10 = vcombine.high %v7417_v47, %v7419_v62  ;;  %v897_v57 = vmul.f32 %v6965_v28, %v811_v5  ;;  %v7450_v9 = vld [vmem:[#allocation10 + $0x2e8] sm:$0xff]  ;;  %v6043_v5 = vld [vmem:[%s6763_s3 + $0x1f8] sm:$0xff] }
 0x182   : > { %2726 = vmatpush2.bf16.msra.mxu0 %v5527_v33  ;;  %v901_v41 = vmul.f32 %v6965_v28, %v815_v23  ;;  %v7452_v6 = vld [vmem:[#allocation10 + $0x6c8] sm:$0xff]  ;;  %v7460_v63 = vpack.c.bf16 %v902_v2, %v898_v60  ;;  %v7462_v8 = vpack.c.bf16 %v904_v58, %v900_v44  ;;  %v5511_v1 = vcombine.low %v7407_v39, %v7415_v25 }
 0x183   : > { %2839 = vmatpush2.bf16.msra.mxu1 %v5655_v54  ;;  %2727 = vmatprep.subr.bf16.mxu0 %v5520_v61  ;;  %v7454_v21 = vld [vmem:[#allocation10 + $0x6e8] sm:$0xff]  ;;  %v6042_v61 = vld [vmem:[%s6763_s3 + $0x1d8] sm:$0xff]  ;;  %v899_v23 = vmul.f32 %v6967_v30, %v813_v52  ;;  %v903_v60 = vmul.f32 %v6967_v30, %v817_v15  ;;  %v5639_v2 = vcombine.low %v7417_v47, %v7419_v62  ;;  %v6044_v15 = vld [vmem:[%s6763_s3 + $0x1c0] sm:$0xff] }
 0x184   : > { %2840 = vmatprep.subr.bf16.mxu1 %v5648_v48  ;;  %v6040_v33 = vld [vmem:[%s6763_s3 + $0x1c8] sm:$0xff]  ;;  %v822_v35 = vmul.f32 %v6042_v61, %v7424_v56  ;;  %v826_v48 = vmul.f32 %v6043_v5, %v7411_v49  ;;  %v5504_v44 = vcombine.high %v7447_v31, %v7450_v9  ;;  %v5632_v58 = vcombine.high %v7452_v6, %v7454_v21 }
 0x185   : > { %v820_v54 = vmul.f32 %v6040_v33, %v7424_v56  ;;  %v6041_v26 = vld [vmem:[%s6763_s3 + $0x1e8] sm:$0xff]  ;;  %2564 = vmatmul.mubr.bf16.gmra.mxu0 %v7431_v46  ;;  %2677 = vmatmul.mubr.bf16.gmra.mxu1 %v7433_v19  ;;  %v7480_v39 = vpack.c.bf16 %v901_v41, %v897_v57  ;;  %v6045_v57 = vld [vmem:[%s6763_s3 + $0x1e0] sm:$0xff] }
 0x186   : > { %v824_v51 = vmul.f32 %v6041_v26, %v7411_v49  ;;  %2728 = vmatpush2.bf16.msra.mxu0 %v5519_v7  ;;  %v1026_v25 = vld [vmem:[#allocation10 + $0x288] sm:$0xff]  ;;  %2573 = vmatprep.mubr.bf16.mxu0 %v7460_v63  ;;  %v908_v52 = vmul.f32 %v6963_v24, %v822_v35  ;;  %v912_v11 = vmul.f32 %v6963_v24, %v826_v48 }
 0x187   : > { %2841 = vmatpush2.bf16.msra.mxu1 %v5647_v53  ;;  %2729 = vmatprep.subr.bf16.mxu0 %v5512_v29  ;;  %v906_v7 = vmul.f32 %v6957_v22, %v820_v54  ;;  %v1030_v47 = vld [vmem:[#allocation10 + $0x2a8] sm:$0xff]  ;;  %v819_v29 = vmul.f32 %v6044_v15, %v7424_v56  ;;  %v823_v41 = vmul.f32 %v6045_v57, %v7411_v49  ;;  %v6047_v54 = vld [vmem:[%s6763_s3 + $0x1f0] sm:$0xff] }
 0x188   : > { %2842 = vmatprep.subr.bf16.mxu1 %v5640_v10  ;;  %v910_v53 = vmul.f32 %v6957_v22, %v824_v51  ;;  %2686 = vmatprep.mubr.bf16.mxu1 %v7462_v8  ;;  %v1154_v62 = vld [vmem:[#allocation10 + $0x688] sm:$0xff]  ;;  %v7490_v10 = vpack.c.bf16 %v903_v60, %v899_v23  ;;  %v6046_v22 = vld [vmem:[%s6763_s3 + $0x1d0] sm:$0xff]  ;;  %v825_v26 = vmul.f32 %v6047_v54, %v7411_v49  ;;  %s10206_s3 = sld [smem:[#allocation26_spill]] }
 0x189   : > { %v1158_v42 = vld [vmem:[#allocation10 + $0x6a8] sm:$0xff]  ;;  %v821_v33 = vmul.f32 %v6046_v22, %v7424_v56  ;;  %v5503_v51 = vcombine.low %v7447_v31, %v7450_v9  ;;  %v5631_v24 = vcombine.low %v7452_v6, %v7454_v21  ;;  %v5496_v61 = vcombine.high %v1026_v25, %v1030_v47  ;;  %v1003_v15 = vld [vmem:[#allocation10 + $0x1d0] sm:$0xff] }
 0x18a   : > { %2730 = vmatpush2.bf16.msra.mxu0 %v5511_v1  ;;  %v5624_v35 = vcombine.high %v1154_v62, %v1158_v42  ;;  %v1018_v5 = vld [vmem:[#allocation10 + $0x248] sm:$0xff]  ;;  %v7502_v48 = vpack.c.bf16 %v910_v53, %v906_v7  ;;  %v7504_v23 = vpack.c.bf16 %v912_v11, %v908_v52  ;;  %v905_v56 = vmul.f32 %v6965_v28, %v819_v29  ;;  %v1007_v29 = vld [vmem:[#allocation10 + $0x1f0] sm:$0xff] }
 0x18b   : > { %2843 = vmatpush2.bf16.msra.mxu1 %v5639_v2  ;;  %2731 = vmatprep.subr.bf16.mxu0 %v5504_v44  ;;  %v1022_v49 = vld [vmem:[#allocation10 + $0x268] sm:$0xff]  ;;  %v909_v31 = vmul.f32 %v6965_v28, %v823_v41  ;;  %v907_v9 = vmul.f32 %v6967_v30, %v821_v33  ;;  %v911_v6 = vmul.f32 %v6967_v30, %v825_v26  ;;  %v1131_v57 = vld [vmem:[#allocation10 + $0x5d0] sm:$0xff] }
 0x18c   : > { %2844 = vmatprep.subr.bf16.mxu1 %v5632_v58  ;;  %v1146_v1 = vld [vmem:[#allocation10 + $0x648] sm:$0xff]  ;;  %v5495_v21 = vcombine.low %v1026_v25, %v1030_v47  ;;  %v5623_v2 = vcombine.low %v1154_v62, %v1158_v42  ;;  %v5488_v44 = vcombine.high %v1018_v5, %v1022_v49  ;;  %v5487_v25 = vcombine.low %v1018_v5, %v1022_v49  ;;  %v1135_v41 = vld [vmem:[#allocation10 + $0x5f0] sm:$0xff] }
 0x18d   : > { %v1150_v60 = vld [vmem:[#allocation10 + $0x668] sm:$0xff]  ;;  %2574 = vmatmul.mubr.bf16.gmra.mxu0 %v7480_v39  ;;  %2687 = vmatmul.mubr.bf16.gmra.mxu1 %v7490_v10  ;;  %v7514_v53 = vpack.c.bf16 %v909_v31, %v905_v56  ;;  %v7516_v28 = vpack.c.bf16 %v911_v6, %v907_v9  ;;  %v5474_v54 = vcombine.high %v1003_v15, %v1007_v29  ;;  %v991_v31 = vld [vmem:[#allocation10 + $0x170] sm:$0xff] }
 0x18e   : > { %2732 = vmatpush2.bf16.msra.mxu0 %v5503_v51  ;;  %v5616_v58 = vcombine.high %v1146_v1, %v1150_v60  ;;  %2583 = vmatprep.mubr.bf16.mxu0 %v7502_v48  ;;  %v1010_v7 = vld [vmem:[#allocation10 + $0x208] sm:$0xff]  ;;  %v5615_v47 = vcombine.low %v1146_v1, %v1150_v60  ;;  %v5602_v26 = vcombine.high %v1131_v57, %v1135_v41  ;;  %v995_v51 = vld [vmem:[#allocation10 + $0x190] sm:$0xff]  ;;  %s5738_s17 = sshll.u32 %s10206_s3, 7 }
 0x18f   : > { %2845 = vmatpush2.bf16.msra.mxu1 %v5631_v24  ;;  %2733 = vmatprep.subr.bf16.mxu0 %v5496_v61  ;;  %v1014_v52 = vld [vmem:[#allocation10 + $0x228] sm:$0xff]  ;;  %v999_v24 = vld [vmem:[#allocation10 + $0x1b0] sm:$0xff]  ;;  %v5473_v5 = vcombine.low %v1003_v15, %v1007_v29  ;;  %v5601_v56 = vcombine.low %v1131_v57, %v1135_v41  ;;  %s5109_s27 = sadd.s32 %s5821_s25, %s5738_s17 }
 0x190   : > { %2846 = vmatprep.subr.bf16.mxu1 %v5624_v35  ;;  %2696 = vmatprep.mubr.bf16.mxu1 %v7504_v23  ;;  %v1138_v11 = vld [vmem:[#allocation10 + $0x608] sm:$0xff]  ;;  %v5480_v62 = vcombine.high %v1010_v7, %v1014_v52  ;;  %v5479_v22 = vcombine.low %v1010_v7, %v1014_v52  ;;  %v1123_v61 = vld [vmem:[#allocation10 + $0x590] sm:$0xff]  ;;  %v5466_v49 = vcombine.high %v995_v51, %v999_v24  ;;  %s5739_s20 = sshll.u32 %s5109_s27, 6 }
 0x191   : > { %v1142_v30 = vld [vmem:[#allocation10 + $0x628] sm:$0xff]  ;;  %v1127_v35 = vld [vmem:[#allocation10 + $0x5b0] sm:$0xff]  ;;  %s9308_s5 = scalar_lea.hbm %s10208_s23, %s5739_s20 }
 0x192   : > { %2734 = vmatpush2.bf16.msra.mxu0 %v5495_v21  ;;  %v5608_v42 = vcombine.high %v1138_v11, %v1142_v30  ;;  %v5607_v33 = vcombine.low %v1138_v11, %v1142_v30  ;;  %v5594_v1 = vcombine.high %v1123_v61, %v1127_v35  ;;  %v987_v60 = vld [vmem:[#allocation10 + $0x150] sm:$0xff]  ;;  %v5465_v21 = vcombine.low %v995_v51, %v999_v24 }
 0x193   : > { %2847 = vmatpush2.bf16.msra.mxu1 %v5623_v2  ;;  %2735 = vmatprep.subr.bf16.mxu0 %v5488_v44  ;;  %v1115_v9 = vld [vmem:[#allocation10 + $0x550] sm:$0xff]  ;;  %v5593_v2 = vcombine.low %v1123_v61, %v1127_v35  ;;  %v5458_v44 = vcombine.high %v987_v60, %v991_v31 }
 0x194   : > { %2848 = vmatprep.subr.bf16.mxu1 %v5616_v58  ;;  %v1119_v6 = vld [vmem:[#allocation10 + $0x570] sm:$0xff] }
 0x195   : > { %2584 = vmatmul.mubr.bf16.gmra.mxu0 %v7514_v53  ;;  %2697 = vmatmul.mubr.bf16.gmra.mxu1 %v7516_v28  ;;  %v5586_v58 = vcombine.high %v1115_v9, %v1119_v6  ;;  %v979_v7 = vld [vmem:[#allocation10 + $0x110] sm:$0xff] }
 0x196   : > { %2736 = vmatpush2.bf16.msra.mxu0 %v5487_v25  ;;  %2739 = vmatprep.mubr.bf16.mxu0 %v7068_v13  ;;  %v983_v52 = vld [vmem:[#allocation10 + $0x130] sm:$0xff]  ;;  %v5457_v25 = vcombine.low %v987_v60, %v991_v31 }
 0x197   : > { %2849 = vmatpush2.bf16.msra.mxu1 %v5615_v47  ;;  %2852 = vmatprep.mubr.bf16.mxu1 %v7070_v12  ;;  %v1107_v11 = vld [vmem:[#allocation10 + $0x510] sm:$0xff]  ;;  %v5585_v47 = vcombine.low %v1115_v9, %v1119_v6 }
 0x198   : > { %2737 = vmatprep.subr.bf16.mxu0 %v5480_v62  ;;  %2850 = vmatprep.subr.bf16.mxu1 %v5608_v42  ;;  %v1111_v30 = vld [vmem:[#allocation10 + $0x530] sm:$0xff]  ;;  %v5450_v62 = vcombine.high %v979_v7, %v983_v52 }
 0x199   : > { %v5578_v42 = vcombine.high %v1107_v11, %v1111_v30  ;;  %v971_v15 = vld [vmem:[#allocation10 + $0xd0] sm:$0xff] }
 0x19a   : > { %2738 = vmatpush2.bf16.msra.mxu0 %v5479_v22  ;;  %v975_v29 = vld [vmem:[#allocation10 + $0xf0] sm:$0xff]  ;;  %v5449_v22 = vcombine.low %v979_v7, %v983_v52 }
 0x19b   : > { %2851 = vmatpush2.bf16.msra.mxu1 %v5607_v33  ;;  %2933 = vmatprep.subr.bf16.mxu0 %v5474_v54  ;;  %v1099_v57 = vld [vmem:[#allocation10 + $0x4d0] sm:$0xff]  ;;  %v5577_v33 = vcombine.low %v1107_v11, %v1111_v30  ;;  %v5442_v54 = vcombine.high %v971_v15, %v975_v29 }
 0x19c   : > { %3046 = vmatprep.subr.bf16.mxu1 %v5602_v26  ;;  %v1103_v41 = vld [vmem:[#allocation10 + $0x4f0] sm:$0xff] }
 0x19d   : > { %2740 = vmatmul.mubr.bf16.vlgmr.msra.gmra.mxu0 %v7072_v38  ;;  %v5570_v26 = vcombine.high %v1099_v57, %v1103_v41  ;;  %v963_v51 = vld [vmem:[#allocation10 + $0x90] sm:$0xff] }
 0x19e   : > { %2853 = vmatmul.mubr.bf16.vlgmr.msra.gmra.mxu1 %v7074_v36  ;;  %2749 = vmatprep.mubr.bf16.mxu0 %v7086_v37  ;;  %v967_v24 = vld [vmem:[#allocation10 + $0xb0] sm:$0xff] }
 0x19f   : > { %2862 = vmatprep.mubr.bf16.mxu1 %v7088_v17  ;;  %2934 = vmatpush1.bf16.msra.mxu0 %v5473_v5  ;;  %v1091_v61 = vld [vmem:[#allocation10 + $0x490] sm:$0xff]  ;;  %v5441_v5 = vcombine.low %v971_v15, %v975_v29 }
 0x1a0   : > { %3047 = vmatpush1.bf16.msra.mxu1 %v5601_v56  ;;  %2935 = vmatprep.subr.bf16.mxu0 %v5466_v49  ;;  %v1095_v35 = vld [vmem:[#allocation10 + $0x4b0] sm:$0xff]  ;;  %v5569_v56 = vcombine.low %v1099_v57, %v1103_v41  ;;  %v5434_v49 = vcombine.high %v963_v51, %v967_v24 }
 0x1a1   : > { %3048 = vmatprep.subr.bf16.mxu1 %v5594_v1  ;;  %v5562_v1 = vcombine.high %v1091_v61, %v1095_v35  ;;  %v955_v60 = vld [vmem:[#allocation10 + $0x50] sm:$0xff] }
 0x1a2   : > { %v959_v31 = vld [vmem:[#allocation10 + $0x70] sm:$0xff] }
 0x1a3   : > { %2936 = vmatpush1.bf16.msra.mxu0 %v5465_v21  ;;  %v1083_v9 = vld [vmem:[#allocation10 + $0x450] sm:$0xff]  ;;  %v5433_v21 = vcombine.low %v963_v51, %v967_v24 }
 0x1a4   : > { %3049 = vmatpush1.bf16.msra.mxu1 %v5593_v2  ;;  %2937 = vmatprep.subr.bf16.mxu0 %v5458_v44  ;;  %v1087_v6 = vld [vmem:[#allocation10 + $0x470] sm:$0xff]  ;;  %v5561_v2 = vcombine.low %v1091_v61, %v1095_v35  ;;  %v5426_v44 = vcombine.high %v955_v60, %v959_v31 }
 0x1a5   : > { %2750 = vmatmul.mubr.bf16.gmra.mxu0 %v7090_v18  ;;  %3050 = vmatprep.subr.bf16.mxu1 %v5586_v58  ;;  %v5554_v58 = vcombine.high %v1083_v9, %v1087_v6  ;;  %v947_v7 = vld [vmem:[#allocation10 + $0x10] sm:$0xff] }
 0x1a6   : > { %2863 = vmatmul.mubr.bf16.gmra.mxu1 %v7115_v55  ;;  %2759 = vmatprep.mubr.bf16.mxu0 %v7147_v32  ;;  %v951_v52 = vld [vmem:[#allocation10 + $0x30] sm:$0xff] }
 0x1a7   : > { %2872 = vmatprep.mubr.bf16.mxu1 %v7149_v43  ;;  %2938 = vmatpush1.bf16.msra.mxu0 %v5457_v25  ;;  %v1075_v11 = vld [vmem:[#allocation10 + $0x410] sm:$0xff]  ;;  %v5425_v25 = vcombine.low %v955_v60, %v959_v31 }
 0x1a8   : > { %3051 = vmatpush1.bf16.msra.mxu1 %v5585_v47  ;;  %2939 = vmatprep.subr.bf16.mxu0 %v5450_v62  ;;  %v1079_v30 = vld [vmem:[#allocation10 + $0x430] sm:$0xff]  ;;  %v5553_v47 = vcombine.low %v1083_v9, %v1087_v6  ;;  %v5418_v62 = vcombine.high %v947_v7, %v951_v52 }
 0x1a9   : > { %3052 = vmatprep.subr.bf16.mxu1 %v5578_v42  ;;  %v5546_v42 = vcombine.high %v1075_v11, %v1079_v30  ;;  %v1067_v15 = vld [vmem:[#allocation10 + $0x3d0] sm:$0xff] }
 0x1aa   : > { %v1071_v29 = vld [vmem:[#allocation10 + $0x3f0] sm:$0xff] }
 0x1ab   : > { %2940 = vmatpush1.bf16.msra.mxu0 %v5449_v22  ;;  %v1195_v57 = vld [vmem:[#allocation10 + $0x7d0] sm:$0xff]  ;;  %v5417_v22 = vcombine.low %v947_v7, %v951_v52 }
 0x1ac   : > { %3053 = vmatpush1.bf16.msra.mxu1 %v5577_v33  ;;  %2941 = vmatprep.subr.bf16.mxu0 %v5442_v54  ;;  %v1199_v41 = vld [vmem:[#allocation10 + $0x7f0] sm:$0xff]  ;;  %v5545_v33 = vcombine.low %v1075_v11, %v1079_v30  ;;  %v5538_v54 = vcombine.high %v1067_v15, %v1071_v29 }
 0x1ad   : > { %2760 = vmatmul.mubr.bf16.gmra.mxu0 %v7179_v59  ;;  %3054 = vmatprep.subr.bf16.mxu1 %v5570_v26  ;;  %v5666_v26 = vcombine.high %v1195_v57, %v1199_v41  ;;  %v1059_v51 = vld [vmem:[#allocation10 + $0x390] sm:$0xff] }
 0x1ae   : > { %2873 = vmatmul.mubr.bf16.gmra.mxu1 %v7193_v50  ;;  %2769 = vmatprep.mubr.bf16.mxu0 %v7217_v40  ;;  %v1063_v24 = vld [vmem:[#allocation10 + $0x3b0] sm:$0xff] }
 0x1af   : > { %2882 = vmatprep.mubr.bf16.mxu1 %v7227_v20  ;;  %2942 = vmatpush1.bf16.msra.mxu0 %v5441_v5  ;;  %v1187_v61 = vld [vmem:[#allocation10 + $0x790] sm:$0xff]  ;;  %v5537_v5 = vcombine.low %v1067_v15, %v1071_v29 }
 0x1b0   : > { %3055 = vmatpush1.bf16.msra.mxu1 %v5569_v56  ;;  %2943 = vmatprep.subr.bf16.mxu0 %v5434_v49  ;;  %v1191_v35 = vld [vmem:[#allocation10 + $0x7b0] sm:$0xff]  ;;  %v5665_v56 = vcombine.low %v1195_v57, %v1199_v41  ;;  %v5530_v49 = vcombine.high %v1059_v51, %v1063_v24 }
 0x1b1   : > { %3056 = vmatprep.subr.bf16.mxu1 %v5562_v1  ;;  %v5658_v1 = vcombine.high %v1187_v61, %v1191_v35  ;;  %v1051_v60 = vld [vmem:[#allocation10 + $0x350] sm:$0xff] }
 0x1b2   : > { %v1055_v31 = vld [vmem:[#allocation10 + $0x370] sm:$0xff] }
 0x1b3   : > { %2944 = vmatpush1.bf16.msra.mxu0 %v5433_v21  ;;  %v1179_v9 = vld [vmem:[#allocation10 + $0x750] sm:$0xff]  ;;  %v5529_v21 = vcombine.low %v1059_v51, %v1063_v24 }
 0x1b4   : > { %3057 = vmatpush1.bf16.msra.mxu1 %v5561_v2  ;;  %2945 = vmatprep.subr.bf16.mxu0 %v5426_v44  ;;  %v1183_v6 = vld [vmem:[#allocation10 + $0x770] sm:$0xff]  ;;  %v5657_v2 = vcombine.low %v1187_v61, %v1191_v35  ;;  %v5522_v44 = vcombine.high %v1051_v60, %v1055_v31 }
 0x1b5   : > { %2770 = vmatmul.mubr.bf16.gmra.mxu0 %v7275_v3  ;;  %3058 = vmatprep.subr.bf16.mxu1 %v5554_v58  ;;  %v5650_v58 = vcombine.high %v1179_v9, %v1183_v6  ;;  %v1043_v7 = vld [vmem:[#allocation10 + $0x310] sm:$0xff] }
 0x1b6   : > { %2883 = vmatmul.mubr.bf16.gmra.mxu1 %v7277_v16  ;;  %2779 = vmatprep.mubr.bf16.mxu0 %v7312_v34  ;;  %v1047_v52 = vld [vmem:[#allocation10 + $0x330] sm:$0xff] }
 0x1b7   : > { %2892 = vmatprep.mubr.bf16.mxu1 %v7314_v0  ;;  %2946 = vmatpush1.bf16.msra.mxu0 %v5425_v25  ;;  %v1171_v11 = vld [vmem:[#allocation10 + $0x710] sm:$0xff]  ;;  %v5521_v25 = vcombine.low %v1051_v60, %v1055_v31 }
 0x1b8   : > { %3059 = vmatpush1.bf16.msra.mxu1 %v5553_v47  ;;  %2947 = vmatprep.subr.bf16.mxu0 %v5418_v62  ;;  %v1175_v30 = vld [vmem:[#allocation10 + $0x730] sm:$0xff]  ;;  %v5649_v47 = vcombine.low %v1179_v9, %v1183_v6  ;;  %v5514_v62 = vcombine.high %v1043_v7, %v1047_v52 }
 0x1b9   : > { %3060 = vmatprep.subr.bf16.mxu1 %v5546_v42  ;;  %v5642_v42 = vcombine.high %v1171_v11, %v1175_v30  ;;  %v1035_v15 = vld [vmem:[#allocation10 + $0x2d0] sm:$0xff] }
 0x1ba   : > { %v1039_v29 = vld [vmem:[#allocation10 + $0x2f0] sm:$0xff] }
 0x1bb   : > { %2948 = vmatpush1.bf16.msra.mxu0 %v5417_v22  ;;  %v1163_v57 = vld [vmem:[#allocation10 + $0x6d0] sm:$0xff]  ;;  %v5513_v22 = vcombine.low %v1043_v7, %v1047_v52 }
 0x1bc   : > { %3061 = vmatpush1.bf16.msra.mxu1 %v5545_v33  ;;  %2949 = vmatprep.subr.bf16.mxu0 %v5538_v54  ;;  %v1167_v41 = vld [vmem:[#allocation10 + $0x6f0] sm:$0xff]  ;;  %v5641_v33 = vcombine.low %v1171_v11, %v1175_v30  ;;  %v5506_v54 = vcombine.high %v1035_v15, %v1039_v29 }
 0x1bd   : > { %2780 = vmatmul.mubr.bf16.gmra.mxu0 %v7352_v45  ;;  %3062 = vmatprep.subr.bf16.mxu1 %v5666_v26  ;;  %v5634_v26 = vcombine.high %v1163_v57, %v1167_v41  ;;  %v1027_v51 = vld [vmem:[#allocation10 + $0x290] sm:$0xff] }
 0x1be   : > { %2893 = vmatmul.mubr.bf16.gmra.mxu1 %v7358_v4  ;;  %2789 = vmatprep.mubr.bf16.mxu0 %v7378_v14  ;;  %v1031_v24 = vld [vmem:[#allocation10 + $0x2b0] sm:$0xff] }
 0x1bf   : > { %2902 = vmatprep.mubr.bf16.mxu1 %v7380_v27  ;;  %2950 = vmatpush2.bf16.msra.mxu0 %v5537_v5  ;;  %v1155_v61 = vld [vmem:[#allocation10 + $0x690] sm:$0xff]  ;;  %v5505_v5 = vcombine.low %v1035_v15, %v1039_v29  ;;  %v1004_v15 = vld [vmem:[#allocation10 + $0x1d8] sm:$0xff] }
 0x1c0   : > { %3063 = vmatpush2.bf16.msra.mxu1 %v5665_v56  ;;  %2951 = vmatprep.subr.bf16.mxu0 %v5530_v49  ;;  %v1159_v35 = vld [vmem:[#allocation10 + $0x6b0] sm:$0xff]  ;;  %v5633_v56 = vcombine.low %v1163_v57, %v1167_v41  ;;  %v5498_v49 = vcombine.high %v1027_v51, %v1031_v24  ;;  %v1008_v29 = vld [vmem:[#allocation10 + $0x1f8] sm:$0xff] }
 0x1c1   : > { %3064 = vmatprep.subr.bf16.mxu1 %v5658_v1  ;;  %v5626_v1 = vcombine.high %v1155_v61, %v1159_v35  ;;  %v1019_v60 = vld [vmem:[#allocation10 + $0x250] sm:$0xff]  ;;  %v1132_v57 = vld [vmem:[#allocation10 + $0x5d8] sm:$0xff] }
 0x1c2   : > { %v1023_v31 = vld [vmem:[#allocation10 + $0x270] sm:$0xff]  ;;  %v1136_v41 = vld [vmem:[#allocation10 + $0x5f8] sm:$0xff] }
 0x1c3   : > { %2952 = vmatpush2.bf16.msra.mxu0 %v5529_v21  ;;  %v1147_v9 = vld [vmem:[#allocation10 + $0x650] sm:$0xff]  ;;  %v5497_v21 = vcombine.low %v1027_v51, %v1031_v24  ;;  %v996_v51 = vld [vmem:[#allocation10 + $0x198] sm:$0xff] }
 0x1c4   : > { %3065 = vmatpush2.bf16.msra.mxu1 %v5657_v2  ;;  %2953 = vmatprep.subr.bf16.mxu0 %v5522_v44  ;;  %v1151_v6 = vld [vmem:[#allocation10 + $0x670] sm:$0xff]  ;;  %v5625_v2 = vcombine.low %v1155_v61, %v1159_v35  ;;  %v5490_v44 = vcombine.high %v1019_v60, %v1023_v31  ;;  %v1000_v24 = vld [vmem:[#allocation10 + $0x1b8] sm:$0xff] }
 0x1c5   : > { %2790 = vmatmul.mubr.bf16.gmra.mxu0 %v7431_v46  ;;  %3066 = vmatprep.subr.bf16.mxu1 %v5650_v58  ;;  %v5618_v58 = vcombine.high %v1147_v9, %v1151_v6  ;;  %v1011_v7 = vld [vmem:[#allocation10 + $0x210] sm:$0xff]  ;;  %v1124_v61 = vld [vmem:[#allocation10 + $0x598] sm:$0xff] }
 0x1c6   : > { %2903 = vmatmul.mubr.bf16.gmra.mxu1 %v7433_v19  ;;  %2799 = vmatprep.mubr.bf16.mxu0 %v7460_v63  ;;  %v1015_v52 = vld [vmem:[#allocation10 + $0x230] sm:$0xff]  ;;  %v1128_v35 = vld [vmem:[#allocation10 + $0x5b8] sm:$0xff] }
 0x1c7   : > { %2912 = vmatprep.mubr.bf16.mxu1 %v7462_v8  ;;  %2954 = vmatpush2.bf16.msra.mxu0 %v5521_v25  ;;  %v1139_v11 = vld [vmem:[#allocation10 + $0x610] sm:$0xff]  ;;  %v5489_v25 = vcombine.low %v1019_v60, %v1023_v31  ;;  %v988_v60 = vld [vmem:[#allocation10 + $0x158] sm:$0xff] }
 0x1c8   : > { %3067 = vmatpush2.bf16.msra.mxu1 %v5649_v47  ;;  %2955 = vmatprep.subr.bf16.mxu0 %v5514_v62  ;;  %v1143_v30 = vld [vmem:[#allocation10 + $0x630] sm:$0xff]  ;;  %v5617_v47 = vcombine.low %v1147_v9, %v1151_v6  ;;  %v5482_v62 = vcombine.high %v1011_v7, %v1015_v52  ;;  %v992_v31 = vld [vmem:[#allocation10 + $0x178] sm:$0xff] }
 0x1c9   : > { %3068 = vmatprep.subr.bf16.mxu1 %v5642_v42  ;;  %v5610_v42 = vcombine.high %v1139_v11, %v1143_v30  ;;  %v1116_v9 = vld [vmem:[#allocation10 + $0x558] sm:$0xff] }
 0x1ca   : > { %v1120_v6 = vld [vmem:[#allocation10 + $0x578] sm:$0xff] }
 0x1cb   : > { %2956 = vmatpush2.bf16.msra.mxu0 %v5513_v22  ;;  %v5481_v22 = vcombine.low %v1011_v7, %v1015_v52  ;;  %v980_v7 = vld [vmem:[#allocation10 + $0x118] sm:$0xff] }
 0x1cc   : > { %3069 = vmatpush2.bf16.msra.mxu1 %v5641_v33  ;;  %2957 = vmatprep.subr.bf16.mxu0 %v5506_v54  ;;  %v5609_v33 = vcombine.low %v1139_v11, %v1143_v30  ;;  %v5476_v54 = vcombine.high %v1004_v15, %v1008_v29  ;;  %v984_v52 = vld [vmem:[#allocation10 + $0x138] sm:$0xff] }
 0x1cd   : > { %2800 = vmatmul.mubr.bf16.gmra.mxu0 %v7480_v39  ;;  %3070 = vmatprep.subr.bf16.mxu1 %v5634_v26  ;;  %v5604_v26 = vcombine.high %v1132_v57, %v1136_v41  ;;  %v1108_v11 = vld [vmem:[#allocation10 + $0x518] sm:$0xff] }
 0x1ce   : > { %2913 = vmatmul.mubr.bf16.gmra.mxu1 %v7490_v10  ;;  %2809 = vmatprep.mubr.bf16.mxu0 %v7502_v48  ;;  %v1112_v30 = vld [vmem:[#allocation10 + $0x538] sm:$0xff] }
 0x1cf   : > { %2958 = vmatpush2.bf16.msra.mxu0 %v5505_v5  ;;  %2922 = vmatprep.mubr.bf16.mxu1 %v7504_v23  ;;  %v5475_v5 = vcombine.low %v1004_v15, %v1008_v29  ;;  %v972_v15 = vld [vmem:[#allocation10 + $0xd8] sm:$0xff] }
 0x1d0   : > { %3071 = vmatpush2.bf16.msra.mxu1 %v5633_v56  ;;  %2959 = vmatprep.subr.bf16.mxu0 %v5498_v49  ;;  %v5603_v56 = vcombine.low %v1132_v57, %v1136_v41  ;;  %v5468_v49 = vcombine.high %v996_v51, %v1000_v24  ;;  %v976_v29 = vld [vmem:[#allocation10 + $0xf8] sm:$0xff] }
 0x1d1   : > { %3072 = vmatprep.subr.bf16.mxu1 %v5626_v1  ;;  %v5596_v1 = vcombine.high %v1124_v61, %v1128_v35  ;;  %v1100_v57 = vld [vmem:[#allocation10 + $0x4d8] sm:$0xff] }
 0x1d2   : > { %v1104_v41 = vld [vmem:[#allocation10 + $0x4f8] sm:$0xff] }
 0x1d3   : > { %2960 = vmatpush2.bf16.msra.mxu0 %v5497_v21  ;;  %v5467_v21 = vcombine.low %v996_v51, %v1000_v24  ;;  %v964_v51 = vld [vmem:[#allocation10 + $0x98] sm:$0xff] }
 0x1d4   : > { %3073 = vmatpush2.bf16.msra.mxu1 %v5625_v2  ;;  %2961 = vmatprep.subr.bf16.mxu0 %v5490_v44  ;;  %v5595_v2 = vcombine.low %v1124_v61, %v1128_v35  ;;  %v5460_v44 = vcombine.high %v988_v60, %v992_v31  ;;  %v968_v24 = vld [vmem:[#allocation10 + $0xb8] sm:$0xff] }
 0x1d5   : > { %2810 = vmatmul.mubr.bf16.gmra.mxu0 %v7514_v53  ;;  %3074 = vmatprep.subr.bf16.mxu1 %v5618_v58  ;;  %v5588_v58 = vcombine.high %v1116_v9, %v1120_v6  ;;  %v1092_v61 = vld [vmem:[#allocation10 + $0x498] sm:$0xff] }
 0x1d6   : > { %2923 = vmatmul.mubr.bf16.gmra.mxu1 %v7516_v28  ;;  %2965 = vmatprep.mubr.bf16.mxu0 %v7068_v13  ;;  %v1096_v35 = vld [vmem:[#allocation10 + $0x4b8] sm:$0xff] }
 0x1d7   : > { %2962 = vmatpush2.bf16.msra.mxu0 %v5489_v25  ;;  %3078 = vmatprep.mubr.bf16.mxu1 %v7070_v12  ;;  %v5459_v25 = vcombine.low %v988_v60, %v992_v31  ;;  %v956_v60 = vld [vmem:[#allocation10 + $0x58] sm:$0xff] }
 0x1d8   : > { %3075 = vmatpush2.bf16.msra.mxu1 %v5617_v47  ;;  %2963 = vmatprep.subr.bf16.mxu0 %v5482_v62  ;;  %v5587_v47 = vcombine.low %v1116_v9, %v1120_v6  ;;  %v5452_v62 = vcombine.high %v980_v7, %v984_v52  ;;  %v960_v31 = vld [vmem:[#allocation10 + $0x78] sm:$0xff] }
 0x1d9   : > { %3076 = vmatprep.subr.bf16.mxu1 %v5610_v42  ;;  %v5580_v42 = vcombine.high %v1108_v11, %v1112_v30  ;;  %v1084_v9 = vld [vmem:[#allocation10 + $0x458] sm:$0xff] }
 0x1da   : > { %v1088_v6 = vld [vmem:[#allocation10 + $0x478] sm:$0xff] }
 0x1db   : > { %2964 = vmatpush2.bf16.msra.mxu0 %v5481_v22  ;;  %v5451_v22 = vcombine.low %v980_v7, %v984_v52  ;;  %v948_v7 = vld [vmem:[#allocation10 + $0x18] sm:$0xff] }
 0x1dc   : > { %3077 = vmatpush2.bf16.msra.mxu1 %v5609_v33  ;;  %3159 = vmatprep.subr.bf16.mxu0 %v5476_v54  ;;  %v5579_v33 = vcombine.low %v1108_v11, %v1112_v30  ;;  %v5444_v54 = vcombine.high %v972_v15, %v976_v29  ;;  %v952_v52 = vld [vmem:[#allocation10 + $0x38] sm:$0xff] }
 0x1dd   : > { %3272 = vmatprep.subr.bf16.mxu1 %v5604_v26  ;;  %v5572_v26 = vcombine.high %v1100_v57, %v1104_v41  ;;  %v1076_v11 = vld [vmem:[#allocation10 + $0x418] sm:$0xff] }
 0x1de   : > { %2966 = vmatmul.mubr.bf16.vlgmr.msra.gmra.mxu0 %v7072_v38  ;;  %v1080_v30 = vld [vmem:[#allocation10 + $0x438] sm:$0xff] }
 0x1df   : > { %3079 = vmatmul.mubr.bf16.vlgmr.msra.gmra.mxu1 %v7074_v36  ;;  %2975 = vmatprep.mubr.bf16.mxu0 %v7086_v37 }
 0x1e0   : > { %3088 = vmatprep.mubr.bf16.mxu1 %v7088_v17  ;;  %3160 = vmatpush1.bf16.msra.mxu0 %v5475_v5  ;;  %v5443_v5 = vcombine.low %v972_v15, %v976_v29  ;;  %v1068_v15 = vld [vmem:[#allocation10 + $0x3d8] sm:$0xff] }
 0x1e1   : > { %3273 = vmatpush1.bf16.msra.mxu1 %v5603_v56  ;;  %3161 = vmatprep.subr.bf16.mxu0 %v5468_v49  ;;  %v5571_v56 = vcombine.low %v1100_v57, %v1104_v41  ;;  %v5436_v49 = vcombine.high %v964_v51, %v968_v24  ;;  %v1072_v29 = vld [vmem:[#allocation10 + $0x3f8] sm:$0xff] }
 0x1e2   : > { %3274 = vmatprep.subr.bf16.mxu1 %v5596_v1  ;;  %v5564_v1 = vcombine.high %v1092_v61, %v1096_v35  ;;  %v1196_v57 = vld [vmem:[#allocation10 + $0x7d8] sm:$0xff] }
 0x1e3   : > { %v1200_v41 = vld [vmem:[#allocation10 + $0x7f8] sm:$0xff] }
 0x1e4   : > { %3162 = vmatpush1.bf16.msra.mxu0 %v5467_v21  ;;  %v5435_v21 = vcombine.low %v964_v51, %v968_v24  ;;  %v1060_v51 = vld [vmem:[#allocation10 + $0x398] sm:$0xff] }
 0x1e5   : > { %3275 = vmatpush1.bf16.msra.mxu1 %v5595_v2  ;;  %3163 = vmatprep.subr.bf16.mxu0 %v5460_v44  ;;  %v5563_v2 = vcombine.low %v1092_v61, %v1096_v35  ;;  %v5428_v44 = vcombine.high %v956_v60, %v960_v31  ;;  %v1064_v24 = vld [vmem:[#allocation10 + $0x3b8] sm:$0xff] }
 0x1e6   : > { %2976 = vmatmul.mubr.bf16.gmra.mxu0 %v7090_v18  ;;  %3276 = vmatprep.subr.bf16.mxu1 %v5588_v58  ;;  %v5556_v58 = vcombine.high %v1084_v9, %v1088_v6  ;;  %v1188_v61 = vld [vmem:[#allocation10 + $0x798] sm:$0xff] }
 0x1e7   : > { %3089 = vmatmul.mubr.bf16.gmra.mxu1 %v7115_v55  ;;  %2985 = vmatprep.mubr.bf16.mxu0 %v7147_v32  ;;  %v1192_v35 = vld [vmem:[#allocation10 + $0x7b8] sm:$0xff] }
 0x1e8   : > { %3098 = vmatprep.mubr.bf16.mxu1 %v7149_v43  ;;  %3164 = vmatpush1.bf16.msra.mxu0 %v5459_v25  ;;  %v5427_v25 = vcombine.low %v956_v60, %v960_v31  ;;  %v1052_v60 = vld [vmem:[#allocation10 + $0x358] sm:$0xff] }
 0x1e9   : > { %3277 = vmatpush1.bf16.msra.mxu1 %v5587_v47  ;;  %3165 = vmatprep.subr.bf16.mxu0 %v5452_v62  ;;  %v5555_v47 = vcombine.low %v1084_v9, %v1088_v6  ;;  %v5420_v62 = vcombine.high %v948_v7, %v952_v52  ;;  %v1056_v31 = vld [vmem:[#allocation10 + $0x378] sm:$0xff] }
 0x1ea   : > { %3278 = vmatprep.subr.bf16.mxu1 %v5580_v42  ;;  %v5548_v42 = vcombine.high %v1076_v11, %v1080_v30  ;;  %v1180_v9 = vld [vmem:[#allocation10 + $0x758] sm:$0xff] }
 0x1eb   : > { %v1184_v6 = vld [vmem:[#allocation10 + $0x778] sm:$0xff] }
 0x1ec   : > { %3166 = vmatpush1.bf16.msra.mxu0 %v5451_v22  ;;  %v5419_v22 = vcombine.low %v948_v7, %v952_v52  ;;  %v1044_v7 = vld [vmem:[#allocation10 + $0x318] sm:$0xff] }
 0x1ed   : > { %3279 = vmatpush1.bf16.msra.mxu1 %v5579_v33  ;;  %3167 = vmatprep.subr.bf16.mxu0 %v5444_v54  ;;  %v5547_v33 = vcombine.low %v1076_v11, %v1080_v30  ;;  %v5540_v54 = vcombine.high %v1068_v15, %v1072_v29  ;;  %v1048_v52 = vld [vmem:[#allocation10 + $0x338] sm:$0xff] }
 0x1ee   : > { %2986 = vmatmul.mubr.bf16.gmra.mxu0 %v7179_v59  ;;  %3280 = vmatprep.subr.bf16.mxu1 %v5572_v26  ;;  %v5668_v26 = vcombine.high %v1196_v57, %v1200_v41  ;;  %v1172_v11 = vld [vmem:[#allocation10 + $0x718] sm:$0xff] }
 0x1ef   : > { %3099 = vmatmul.mubr.bf16.gmra.mxu1 %v7193_v50  ;;  %2995 = vmatprep.mubr.bf16.mxu0 %v7217_v40  ;;  %v1176_v30 = vld [vmem:[#allocation10 + $0x738] sm:$0xff] }
 0x1f0   : > { %3108 = vmatprep.mubr.bf16.mxu1 %v7227_v20  ;;  %3168 = vmatpush1.bf16.msra.mxu0 %v5443_v5  ;;  %v5539_v5 = vcombine.low %v1068_v15, %v1072_v29  ;;  %v1036_v15 = vld [vmem:[#allocation10 + $0x2d8] sm:$0xff] }
 0x1f1   : > { %3281 = vmatpush1.bf16.msra.mxu1 %v5571_v56  ;;  %3169 = vmatprep.subr.bf16.mxu0 %v5436_v49  ;;  %v5667_v56 = vcombine.low %v1196_v57, %v1200_v41  ;;  %v5532_v49 = vcombine.high %v1060_v51, %v1064_v24  ;;  %v1040_v29 = vld [vmem:[#allocation10 + $0x2f8] sm:$0xff] }
 0x1f2   : > { %3282 = vmatprep.subr.bf16.mxu1 %v5564_v1  ;;  %v5660_v1 = vcombine.high %v1188_v61, %v1192_v35  ;;  %v1164_v57 = vld [vmem:[#allocation10 + $0x6d8] sm:$0xff] }
 0x1f3   : > { %v1168_v41 = vld [vmem:[#allocation10 + $0x6f8] sm:$0xff] }
 0x1f4   : > { %3170 = vmatpush1.bf16.msra.mxu0 %v5435_v21  ;;  %v5531_v21 = vcombine.low %v1060_v51, %v1064_v24  ;;  %v1028_v51 = vld [vmem:[#allocation10 + $0x298] sm:$0xff] }
 0x1f5   : > { %3283 = vmatpush1.bf16.msra.mxu1 %v5563_v2  ;;  %3171 = vmatprep.subr.bf16.mxu0 %v5428_v44  ;;  %v5659_v2 = vcombine.low %v1188_v61, %v1192_v35  ;;  %v5524_v44 = vcombine.high %v1052_v60, %v1056_v31  ;;  %v1032_v24 = vld [vmem:[#allocation10 + $0x2b8] sm:$0xff] }
 0x1f6   : > { %2996 = vmatmul.mubr.bf16.gmra.mxu0 %v7275_v3  ;;  %3284 = vmatprep.subr.bf16.mxu1 %v5556_v58  ;;  %v5652_v58 = vcombine.high %v1180_v9, %v1184_v6  ;;  %v1156_v61 = vld [vmem:[#allocation10 + $0x698] sm:$0xff] }
 0x1f7   : > { %3109 = vmatmul.mubr.bf16.gmra.mxu1 %v7277_v16  ;;  %3005 = vmatprep.mubr.bf16.mxu0 %v7312_v34  ;;  %v1160_v35 = vld [vmem:[#allocation10 + $0x6b8] sm:$0xff] }
 0x1f8   : > { %3118 = vmatprep.mubr.bf16.mxu1 %v7314_v0  ;;  %3172 = vmatpush1.bf16.msra.mxu0 %v5427_v25  ;;  %v5523_v25 = vcombine.low %v1052_v60, %v1056_v31  ;;  %v1020_v60 = vld [vmem:[#allocation10 + $0x258] sm:$0xff] }
 0x1f9   : > { %3285 = vmatpush1.bf16.msra.mxu1 %v5555_v47  ;;  %3173 = vmatprep.subr.bf16.mxu0 %v5420_v62  ;;  %v5651_v47 = vcombine.low %v1180_v9, %v1184_v6  ;;  %v5516_v62 = vcombine.high %v1044_v7, %v1048_v52  ;;  %v1024_v31 = vld [vmem:[#allocation10 + $0x278] sm:$0xff] }
 0x1fa   : > { %3286 = vmatprep.subr.bf16.mxu1 %v5548_v42  ;;  %v5644_v42 = vcombine.high %v1172_v11, %v1176_v30  ;;  %v1148_v9 = vld [vmem:[#allocation10 + $0x658] sm:$0xff] }
 0x1fb   : > { %v1152_v6 = vld [vmem:[#allocation10 + $0x678] sm:$0xff] }
 0x1fc   : > { %3174 = vmatpush1.bf16.msra.mxu0 %v5419_v22  ;;  %v5515_v22 = vcombine.low %v1044_v7, %v1048_v52  ;;  %v1012_v7 = vld [vmem:[#allocation10 + $0x218] sm:$0xff] }
 0x1fd   : > { %3287 = vmatpush1.bf16.msra.mxu1 %v5547_v33  ;;  %3175 = vmatprep.subr.bf16.mxu0 %v5540_v54  ;;  %v5643_v33 = vcombine.low %v1172_v11, %v1176_v30  ;;  %v5508_v54 = vcombine.high %v1036_v15, %v1040_v29  ;;  %v1016_v52 = vld [vmem:[#allocation10 + $0x238] sm:$0xff] }
 0x1fe   : > { %3006 = vmatmul.mubr.bf16.gmra.mxu0 %v7352_v45  ;;  %3288 = vmatprep.subr.bf16.mxu1 %v5668_v26  ;;  %v5636_v26 = vcombine.high %v1164_v57, %v1168_v41  ;;  %v1140_v11 = vld [vmem:[#allocation10 + $0x618] sm:$0xff] }
 0x1ff   : > { %3119 = vmatmul.mubr.bf16.gmra.mxu1 %v7358_v4  ;;  %3015 = vmatprep.mubr.bf16.mxu0 %v7378_v14  ;;  %v1144_v30 = vld [vmem:[#allocation10 + $0x638] sm:$0xff] }
 0x200   : > { %3128 = vmatprep.mubr.bf16.mxu1 %v7380_v27  ;;  %3176 = vmatpush2.bf16.msra.mxu0 %v5539_v5  ;;  %v5507_v5 = vcombine.low %v1036_v15, %v1040_v29  ;;  %v5483_v15 = vcombine.low %v1012_v7, %v1016_v52  ;;  %v5611_v29 = vcombine.low %v1140_v11, %v1144_v30 }
 0x201   : > { %3289 = vmatpush2.bf16.msra.mxu1 %v5667_v56  ;;  %3177 = vmatprep.subr.bf16.mxu0 %v5532_v49  ;;  %v5635_v56 = vcombine.low %v1164_v57, %v1168_v41  ;;  %v5500_v49 = vcombine.high %v1028_v51, %v1032_v24 }
 0x202   : > { %3290 = vmatprep.subr.bf16.mxu1 %v5660_v1  ;;  %v5628_v1 = vcombine.high %v1156_v61, %v1160_v35 }
 0x204   : > { %3178 = vmatpush2.bf16.msra.mxu0 %v5531_v21  ;;  %v5499_v21 = vcombine.low %v1028_v51, %v1032_v24 }
 0x205   : > { %3291 = vmatpush2.bf16.msra.mxu1 %v5659_v2  ;;  %3179 = vmatprep.subr.bf16.mxu0 %v5524_v44  ;;  %v5627_v2 = vcombine.low %v1156_v61, %v1160_v35  ;;  %v5492_v44 = vcombine.high %v1020_v60, %v1024_v31 }
 0x206   : > { %3016 = vmatmul.mubr.bf16.gmra.mxu0 %v7431_v46  ;;  %3292 = vmatprep.subr.bf16.mxu1 %v5652_v58  ;;  %v5620_v58 = vcombine.high %v1148_v9, %v1152_v6 }
 0x207   : > { %3129 = vmatmul.mubr.bf16.gmra.mxu1 %v7433_v19  ;;  %3025 = vmatprep.mubr.bf16.mxu0 %v7460_v63 }
 0x208   : > { %3138 = vmatprep.mubr.bf16.mxu1 %v7462_v8  ;;  %3180 = vmatpush2.bf16.msra.mxu0 %v5523_v25  ;;  %v5491_v25 = vcombine.low %v1020_v60, %v1024_v31 }
 0x209   : > { %3293 = vmatpush2.bf16.msra.mxu1 %v5651_v47  ;;  %3181 = vmatprep.subr.bf16.mxu0 %v5516_v62  ;;  %v5619_v47 = vcombine.low %v1148_v9, %v1152_v6  ;;  %v5484_v62 = vcombine.high %v1012_v7, %v1016_v52 }
 0x20a   : > { %3294 = vmatprep.subr.bf16.mxu1 %v5644_v42  ;;  %v5612_v42 = vcombine.high %v1140_v11, %v1144_v30 }
 0x20c   : > { %3182 = vmatpush2.bf16.msra.mxu0 %v5515_v22 }
 0x20d   : > { %3295 = vmatpush2.bf16.msra.mxu1 %v5643_v33  ;;  %3183 = vmatprep.subr.bf16.mxu0 %v5508_v54 }
 0x20e   : > { %3026 = vmatmul.mubr.bf16.gmra.mxu0 %v7480_v39  ;;  %3296 = vmatprep.subr.bf16.mxu1 %v5636_v26 }
 0x20f   : > { %3139 = vmatmul.mubr.bf16.gmra.mxu1 %v7490_v10  ;;  %3035 = vmatprep.mubr.bf16.mxu0 %v7502_v48 }
 0x210   : > { %3148 = vmatprep.mubr.bf16.mxu1 %v7504_v23  ;;  %3184 = vmatpush2.bf16.msra.mxu0 %v5507_v5 }
 0x211   : > { %3297 = vmatpush2.bf16.msra.mxu1 %v5635_v56  ;;  %3185 = vmatprep.subr.bf16.mxu0 %v5500_v49 }
 0x212   : > { %3298 = vmatprep.subr.bf16.mxu1 %v5628_v1 }
 0x214   : > { %3186 = vmatpush2.bf16.msra.mxu0 %v5499_v21 }
 0x215   : > { %3299 = vmatpush2.bf16.msra.mxu1 %v5627_v2  ;;  %3187 = vmatprep.subr.bf16.mxu0 %v5492_v44 }
 0x216   : > { %3036 = vmatmul.mubr.bf16.gmra.mxu0 %v7514_v53  ;;  %3300 = vmatprep.subr.bf16.mxu1 %v5620_v58 }
 0x217   : > { %3149 = vmatmul.mubr.bf16.gmra.mxu1 %v7516_v28  ;;  %3191 = vmatprep.mubr.bf16.mxu0 %v7068_v13 }
 0x218   : > { %3188 = vmatpush2.bf16.msra.mxu0 %v5491_v25  ;;  %3304 = vmatprep.mubr.bf16.mxu1 %v7070_v12  ;;  %v2515_v57 = vpop.f32.mrf.mxu0  ;;  %v2628_v41 = vpop.f32.mrf.mxu1 }
 0x219   : > { %3301 = vmatpush2.bf16.msra.mxu1 %v5619_v47  ;;  %3189 = vmatprep.subr.bf16.mxu0 %v5484_v62  ;;  %v7586_v22 = vadd.f32 %v2628_v41, %v2515_v57 }
 0x21a   : > { %3302 = vmatprep.subr.bf16.mxu1 %v5612_v42  ;;  %v2517_v33 = vpop.f32.mrf.mxu0  ;;  %v2630_v54 = vpop.f32.mrf.mxu1 }
 0x21b   : > { %3577 = vrot.lane.b32.xlu0 %v7586_v22, %s6453_s8 }
 0x21c   : > { %3190 = vmatpush2.bf16.msra.mxu0 %v5483_v15  ;;  %v2519_v12 = vpop.f32.mrf.mxu0  ;;  %v2632_v13 = vpop.f32.mrf.mxu1 }
 0x21d   : > { %3303 = vmatpush2.bf16.msra.mxu1 %v5611_v29  ;;  %v7594_v26 = vadd.f32 %v2632_v13, %v2519_v12 }
 0x21e   : > { %v2521_v51 = vpop.f32.mrf.mxu0  ;;  %v2634_v24 = vpop.f32.mrf.mxu1 }
 0x21f   : > { %3192 = vmatmul.mubr.bf16.vlgmr.msra.gmra.mxu0 %v7072_v38  ;;  %3579 = vrot.lane.b32.xlu1 %v7594_v26, %s6453_s8  ;;  %v7610_v1 = vadd.f32 %v2634_v24, %v2521_v51 }
 0x220   : > { %3305 = vmatmul.mubr.bf16.vlgmr.msra.gmra.mxu1 %v7074_v36  ;;  %3201 = vmatprep.mubr.bf16.mxu0 %v7086_v37  ;;  %v2525_v38 = vpop.f32.mrf.mxu0  ;;  %v7600_v37 = vadd.f32 %v2630_v54, %v2517_v33 }
 0x221   : > { %3314 = vmatprep.mubr.bf16.mxu1 %v7088_v17  ;;  %3772 = vrot.lane.b32.xlu0 %v7586_v22, %s6454_s6 }
 0x222   : > { %v2638_v36 = vpop.f32.mrf.mxu1  ;;  %v2527_v17 = vpop.f32.mrf.mxu0 }
 0x223   : > { %3774 = vrot.lane.b32.xlu1 %v7594_v26, %s6454_s6 }
 0x224   : > { %v2640_v61 = vpop.f32.mrf.mxu1  ;;  %v2529_v35 = vpop.f32.mrf.mxu0 }
 0x225   : > { %3609 = vrot.lane.b32.xlu0 %v7600_v37, %s6453_s8  ;;  %v7626_v6 = vadd.f32 %v2640_v61, %v2527_v17 }
 0x226   : > { %v2642_v5 = vpop.f32.mrf.mxu1  ;;  %v2531_v56 = vpop.f32.mrf.mxu0 }
 0x227   : > { %3202 = vmatmul.mubr.bf16.gmra.mxu0 %v7090_v18  ;;  %v7612_v18 = vadd.f32 %v2638_v36, %v2525_v38  ;;  %3611 = vrot.lane.b32.xlu1 %v7610_v1, %s6453_s8  ;;  %v7635_v44 = vadd.f32 %v2642_v5, %v2529_v35 }
 0x228   : > { %3315 = vmatmul.mubr.bf16.gmra.mxu1 %v7115_v55  ;;  %3211 = vmatprep.mubr.bf16.mxu0 %v7147_v32  ;;  %v2644_v49 = vpop.f32.mrf.mxu1  ;;  %v2535_v55 = vpop.f32.mrf.mxu0 }
 0x229   : > { %3324 = vmatprep.mubr.bf16.mxu1 %v7149_v43  ;;  %3804 = vrot.lane.b32.xlu0 %v7600_v37, %s6454_s6  ;;  %9948 = vst [vmem:[#allocation35_spill] sm:$0xff] %v7635_v44  ;;  %v7663_v25 = vadd.f32 %v2644_v49, %v2531_v56 }
 0x22a   : > { %v2537_v43 = vpop.f32.mrf.mxu0 }
 0x22b   : > { %v2648_v32 = vpop.f32.mrf.mxu1  ;;  %3806 = vrot.lane.b32.xlu1 %v7610_v1, %s6454_s6  ;;  %9950 = vst [vmem:[#allocation37_spill] sm:$0xff] %v7663_v25 }
 0x22c   : > { %v2539_v31 = vpop.f32.mrf.mxu0  ;;  %v7639_v58 = vadd.f32 %v2648_v32, %v2535_v55 }
 0x22d   : > { %v2650_v60 = vpop.f32.mrf.mxu1  ;;  %3776 = vrot.lane.b32.xlu0 %v7612_v18, %s6454_s6 }
 0x22e   : > { %v7628_v21 = vpop.f32.mrf.mxu0  ;;  %9949 = vst [vmem:[#allocation36_spill] sm:$0xff] %v7639_v58  ;;  %v7667_v47 = vadd.f32 %v2650_v60, %v2537_v43 }
 0x22f   : > { %3212 = vmatmul.mubr.bf16.gmra.mxu0 %v7179_v59  ;;  %v2652_v9 = vpop.f32.mrf.mxu1  ;;  %3581 = vrot.lane.b32.xlu1 %v7612_v18, %s6453_s8 }
 0x230   : > { %3325 = vmatmul.mubr.bf16.gmra.mxu1 %v7193_v50  ;;  %3221 = vmatprep.mubr.bf16.mxu0 %v7217_v40  ;;  %9951 = vst [vmem:[#allocation38_spill] sm:$0xff] %v7667_v47  ;;  %v7695_v57 = vadd.f32 %v2652_v9, %v2539_v31 }
 0x231   : > { %3334 = vmatprep.mubr.bf16.mxu1 %v7227_v20  ;;  %v2654_v59 = vpop.f32.mrf.mxu1  ;;  %3613 = vrot.lane.b32.xlu0 %v7626_v6, %s6453_s8 }
 0x232   : > { %9952 = vst [vmem:[#allocation39_spill] sm:$0xff] %v7695_v57  ;;  %v7728_v51 = vadd.f32 %v2654_v59, %v7628_v21 }
 0x233   : > { %3583 = vrot.lane.b32.xlu1 %v7635_v44, %s6453_s8 }
 0x234   : > { %9954 = vst [vmem:[#allocation41_spill] sm:$0xff] %v7728_v51 }
 0x235   : > { %v2545_v50 = vpop.f32.mrf.mxu0  ;;  %v2658_v40 = vpop.f32.mrf.mxu1  ;;  %3808 = vrot.lane.b32.xlu0 %v7626_v6, %s6454_s6 }
 0x236   : > { %v7699_v41 = vadd.f32 %v2658_v40, %v2545_v50 }
 0x237   : > { %3222 = vmatmul.mubr.bf16.gmra.mxu0 %v7275_v3  ;;  %v2547_v20 = vpop.f32.mrf.mxu0  ;;  %v2660_v2 = vpop.f32.mrf.mxu1  ;;  %3778 = vrot.lane.b32.xlu1 %v7635_v44, %s6454_s6 }
 0x238   : > { %3335 = vmatmul.mubr.bf16.gmra.mxu1 %v7277_v16  ;;  %3231 = vmatprep.mubr.bf16.mxu0 %v7312_v34  ;;  %9953 = vst [vmem:[#allocation40_spill] sm:$0xff] %v7699_v41  ;;  %v7732_v24 = vadd.f32 %v2660_v2, %v2547_v20 }
 0x239   : > { %3344 = vmatprep.mubr.bf16.mxu1 %v7314_v0  ;;  %v7644_v7 = vpop.f32.mrf.mxu0  ;;  %v7646_v52 = vpop.f32.mrf.mxu1  ;;  %3585 = vrot.lane.b32.xlu0 %v7639_v58, %s6453_s8 }
 0x23a   : > { %9955 = vst [vmem:[#allocation42_spill] sm:$0xff] %v7732_v24  ;;  %v7762_v35 = vadd.f32 %v7646_v52, %v7644_v7 }
 0x23b   : > { %v7650_v3 = vpop.f32.mrf.mxu0  ;;  %v7652_v11 = vpop.f32.mrf.mxu1  ;;  %3615 = vrot.lane.b32.xlu1 %v7663_v25, %s6453_s8 }
 0x23c   : > { %9956 = vst [vmem:[#allocation43_spill] sm:$0xff] %v7762_v35  ;;  %v7787_v31 = vadd.f32 %v7652_v11, %v7650_v3 }
 0x23d   : > { %v2555_v16 = vpop.f32.mrf.mxu0  ;;  %v2668_v34 = vpop.f32.mrf.mxu1  ;;  %3780 = vrot.lane.b32.xlu0 %v7639_v58, %s6454_s6 }
 0x23e   : > { %v7765_v5 = vadd.f32 %v2668_v34, %v2555_v16  ;;  %9959 = vst [vmem:[#allocation46_spill] sm:$0xff] %v7787_v31 }
 0x23f   : > { %3232 = vmatmul.mubr.bf16.gmra.mxu0 %v7352_v45  ;;  %v7659_v0 = vpop.f32.mrf.mxu0  ;;  %v7661_v30 = vpop.f32.mrf.mxu1  ;;  %3810 = vrot.lane.b32.xlu1 %v7663_v25, %s6454_s6 }
 0x240   : > { %3345 = vmatmul.mubr.bf16.gmra.mxu1 %v7358_v4  ;;  %3241 = vmatprep.mubr.bf16.mxu0 %v7378_v14  ;;  %9957 = vst [vmem:[#allocation44_spill] sm:$0xff] %v7765_v5  ;;  %v7791_v21 = vadd.f32 %v7661_v30, %v7659_v0 }
 0x241   : > { %3354 = vmatprep.mubr.bf16.mxu1 %v7380_v27  ;;  %v7672_v62 = vpop.f32.mrf.mxu0  ;;  %v7674_v45 = vpop.f32.mrf.mxu1  ;;  %3617 = vrot.lane.b32.xlu0 %v7667_v47, %s6453_s8 }
 0x242   : > { %9960 = vst [vmem:[#allocation47_spill] sm:$0xff] %v7791_v21  ;;  %v7811_v0 = vadd.f32 %v7674_v45, %v7672_v62 }
 0x243   : > { %v7678_v42 = vpop.f32.mrf.mxu0  ;;  %v7680_v15 = vpop.f32.mrf.mxu1  ;;  %3587 = vrot.lane.b32.xlu1 %v7695_v57, %s6453_s8 }
 0x244   : > { %9961 = vst [vmem:[#allocation48_spill] sm:$0xff] %v7811_v0 }
 0x245   : > { %v7684_v4 = vpop.f32.mrf.mxu0  ;;  %v7686_v14 = vpop.f32.mrf.mxu1  ;;  %3812 = vrot.lane.b32.xlu0 %v7667_v47, %s6454_s6 }
 0x247   : > { %3242 = vmatmul.mubr.bf16.gmra.mxu0 %v7431_v46  ;;  %v7691_v27 = vpop.f32.mrf.mxu0  ;;  %v7693_v29 = vpop.f32.mrf.mxu1  ;;  %3782 = vrot.lane.b32.xlu1 %v7695_v57, %s6454_s6 }
 0x248   : > { %3355 = vmatmul.mubr.bf16.gmra.mxu1 %v7433_v19  ;;  %3251 = vmatprep.mubr.bf16.mxu0 %v7460_v63 }
 0x249   : > { %3364 = vmatprep.mubr.bf16.mxu1 %v7462_v8  ;;  %v7704_v33 = vpop.f32.mrf.mxu0  ;;  %v7706_v46 = vpop.f32.mrf.mxu1  ;;  %3589 = vrot.lane.b32.xlu0 %v7699_v41, %s6453_s8 }
 0x24b   : > { %v7710_v54 = vpop.f32.mrf.mxu0  ;;  %v7712_v12 = vpop.f32.mrf.mxu1  ;;  %3619 = vrot.lane.b32.xlu1 %v7728_v51, %s6453_s8 }
 0x24d   : > { %v7716_v19 = vpop.f32.mrf.mxu0  ;;  %v7718_v63 = vpop.f32.mrf.mxu1  ;;  %3784 = vrot.lane.b32.xlu0 %v7699_v41, %s6454_s6 }
 0x24f   : > { %3252 = vmatmul.mubr.bf16.gmra.mxu0 %v7480_v39  ;;  %v7723_v8 = vpop.f32.mrf.mxu0  ;;  %v7725_v13 = vpop.f32.mrf.mxu1  ;;  %3814 = vrot.lane.b32.xlu1 %v7728_v51, %s6454_s6 }
 0x250   : > { %3365 = vmatmul.mubr.bf16.gmra.mxu1 %v7490_v10  ;;  %3261 = vmatprep.mubr.bf16.mxu0 %v7502_v48 }
 0x251   : > { %3374 = vmatprep.mubr.bf16.mxu1 %v7504_v23  ;;  %v7737_v38 = vpop.f32.mrf.mxu0  ;;  %v7739_v39 = vpop.f32.mrf.mxu1  ;;  %3621 = vrot.lane.b32.xlu0 %v7732_v24, %s6453_s8 }
 0x253   : > { %v7743_v36 = vpop.f32.mrf.mxu0  ;;  %v7745_v17 = vpop.f32.mrf.mxu1  ;;  %3591 = vrot.lane.b32.xlu1 %v7762_v35, %s6453_s8 }
 0x255   : > { %v7749_v10 = vpop.f32.mrf.mxu0  ;;  %v7751_v48 = vpop.f32.mrf.mxu1  ;;  %3816 = vrot.lane.b32.xlu0 %v7732_v24, %s6454_s6 }
 0x257   : > { %3262 = vmatmul.mubr.bf16.gmra.mxu0 %v7514_v53  ;;  %v7756_v23 = vpop.f32.mrf.mxu0  ;;  %v7758_v61 = vpop.f32.mrf.mxu1  ;;  %3786 = vrot.lane.b32.xlu1 %v7762_v35, %s6454_s6 }
 0x258   : > { %3375 = vmatmul.mubr.bf16.gmra.mxu1 %v7516_v28 }
 0x259   : > { %v7769_v56 = vpop.f32.mrf.mxu0  ;;  %v7771_v49 = vpop.f32.mrf.mxu1  ;;  %3593 = vrot.lane.b32.xlu0 %v7765_v5, %s6453_s8 }
 0x25b   : > { %v2591_v53 = vpop.f32.mrf.mxu0  ;;  %v2704_v55 = vpop.f32.mrf.mxu1  ;;  %3623 = vrot.lane.b32.xlu1 %v7787_v31, %s6453_s8 }
 0x25c   : > { %v7775_v32 = vadd.f32 %v2704_v55, %v2591_v53  ;;  %v7815_v53 = vadd.f32 %v7686_v14, %v7684_v4 }
 0x25d   : > { %v7779_v28 = vpop.f32.mrf.mxu0  ;;  %3788 = vrot.lane.b32.xlu0 %v7765_v5, %s6454_s6 }
 0x25e   : > { %9958 = vst [vmem:[#allocation45_spill] sm:$0xff] %v7775_v32  ;;  %v7783_v43 = vpop.f32.mrf.mxu1  ;;  %9962 = vst [vmem:[#allocation49_spill] sm:$0xff] %v7815_v53 }
 0x25f   : > { %v2743_v60 = vpop.f32.mrf.mxu0  ;;  %3818 = vrot.lane.b32.xlu1 %v7787_v31, %s6454_s6 }
 0x260   : > { %v2856_v9 = vpop.f32.mrf.mxu1 }
 0x261   : > { %v7793_v59 = vadd.f32 %v2856_v9, %v2743_v60  ;;  %v2745_v50 = vpop.f32.mrf.mxu0  ;;  %3625 = vrot.lane.b32.xlu0 %v7791_v21, %s6453_s8 }
 0x262   : > { %v2858_v40 = vpop.f32.mrf.mxu1 }
 0x263   : > { %v7799_v20 = vadd.f32 %v2858_v40, %v2745_v50  ;;  %v2747_v2 = vpop.f32.mrf.mxu0  ;;  %3595 = vrot.lane.b32.xlu1 %v7811_v0, %s6453_s8 }
 0x264   : > { %v2860_v7 = vpop.f32.mrf.mxu1 }
 0x265   : > { %v7801_v52 = vadd.f32 %v2860_v7, %v2747_v2  ;;  %v2751_v3 = vpop.f32.mrf.mxu0  ;;  %3820 = vrot.lane.b32.xlu0 %v7791_v21, %s6454_s6 }
 0x266   : > { %v2864_v11 = vpop.f32.mrf.mxu1 }
 0x267   : > { %v7807_v16 = vadd.f32 %v2864_v11, %v2751_v3  ;;  %v2753_v34 = vpop.f32.mrf.mxu0  ;;  %3790 = vrot.lane.b32.xlu1 %v7811_v0, %s6454_s6  ;;  %v7835_v3 = vadd.f32 %v7680_v15, %v7678_v42 }
 0x268   : > { %v2866_v30 = vpop.f32.mrf.mxu1 }
 0x269   : > { %v7817_v55 = vadd.f32 %v2866_v30, %v2753_v34  ;;  %v2755_v60 = vpop.f32.mrf.mxu0  ;;  %3597 = vrot.lane.b32.xlu0 %v7815_v53, %s6453_s8  ;;  %9963 = vst [vmem:[#allocation50_spill] sm:$0xff] %v7835_v3  ;;  %v7839_v34 = vadd.f32 %v7693_v29, %v7691_v27 }
 0x26a   : > { %v2868_v9 = vpop.f32.mrf.mxu1 }
 0x26b   : > { %v7823_v50 = vadd.f32 %v2868_v9, %v2755_v60  ;;  %v2757_v40 = vpop.f32.mrf.mxu0  ;;  %9964 = vst [vmem:[#allocation51_spill] sm:$0xff] %v7839_v34  ;;  %3627 = vrot.lane.b32.xlu1 %v7835_v3, %s6453_s8 }
 0x26c   : > { %v2870_v62 = vpop.f32.mrf.mxu1 }
 0x26d   : > { %v7825_v45 = vadd.f32 %v2870_v62, %v2757_v40  ;;  %v2761_v4 = vpop.f32.mrf.mxu0  ;;  %3792 = vrot.lane.b32.xlu0 %v7815_v53, %s6454_s6 }
 0x26e   : > { %v2874_v14 = vpop.f32.mrf.mxu1 }
 0x26f   : > { %v7831_v2 = vadd.f32 %v2874_v14, %v2761_v4  ;;  %v2763_v7 = vpop.f32.mrf.mxu0  ;;  %3822 = vrot.lane.b32.xlu1 %v7835_v3, %s6454_s6 }
 0x270   : > { %v2876_v11 = vpop.f32.mrf.mxu1 }
 0x271   : > { %v7841_v30 = vadd.f32 %v2876_v11, %v2763_v7  ;;  %v2765_v60 = vpop.f32.mrf.mxu0  ;;  %3629 = vrot.lane.b32.xlu0 %v7839_v34, %s6453_s8  ;;  %v7859_v7 = vadd.f32 %v7706_v46, %v7704_v33 }
 0x272   : > { %v2878_v9 = vpop.f32.mrf.mxu1 }
 0x273   : > { %v7847_v40 = vadd.f32 %v2878_v9, %v2765_v60  ;;  %v2767_v62 = vpop.f32.mrf.mxu0  ;;  %9965 = vst [vmem:[#allocation52_spill] sm:$0xff] %v7859_v7  ;;  %v7863_v60 = vadd.f32 %v7718_v63, %v7716_v19  ;;  %3599 = vrot.lane.b32.xlu1 %v7859_v7, %s6453_s8 }
 0x274   : > { %v2880_v42 = vpop.f32.mrf.mxu1 }
 0x275   : > { %v7849_v15 = vadd.f32 %v2880_v42, %v2767_v62  ;;  %v2771_v27 = vpop.f32.mrf.mxu0  ;;  %9966 = vst [vmem:[#allocation53_spill] sm:$0xff] %v7863_v60  ;;  %3824 = vrot.lane.b32.xlu0 %v7839_v34, %s6454_s6  ;;  %v7883_v34 = vadd.f32 %v7712_v12, %v7710_v54 }
 0x276   : > { %v2884_v29 = vpop.f32.mrf.mxu1 }
 0x277   : > { %v7855_v4 = vadd.f32 %v2884_v29, %v2771_v27  ;;  %v2773_v14 = vpop.f32.mrf.mxu0  ;;  %3794 = vrot.lane.b32.xlu1 %v7859_v7, %s6454_s6  ;;  %9969 = vst [vmem:[#allocation56_spill] sm:$0xff] %v7883_v34 }
 0x278   : > { %v2886_v11 = vpop.f32.mrf.mxu1 }
 0x279   : > { %v7865_v9 = vadd.f32 %v2886_v11, %v2773_v14  ;;  %v2775_v62 = vpop.f32.mrf.mxu0  ;;  %3601 = vrot.lane.b32.xlu0 %v7863_v60, %s6453_s8 }
 0x27a   : > { %v2888_v42 = vpop.f32.mrf.mxu1 }
 0x27b   : > { %v7871_v27 = vadd.f32 %v2888_v42, %v2775_v62  ;;  %v2777_v29 = vpop.f32.mrf.mxu0  ;;  %v7887_v42 = vadd.f32 %v7725_v13, %v7723_v8  ;;  %3631 = vrot.lane.b32.xlu1 %v7883_v34, %s6453_s8 }
 0x27c   : > { %v2890_v33 = vpop.f32.mrf.mxu1 }
 0x27d   : > { %9967 = vst [vmem:[#allocation54_spill] sm:$0xff] %v7871_v27  ;;  %v7873_v46 = vadd.f32 %v2890_v33, %v2777_v29  ;;  %v2781_v19 = vpop.f32.mrf.mxu0  ;;  %9970 = vst [vmem:[#allocation57_spill] sm:$0xff] %v7887_v42  ;;  %3796 = vrot.lane.b32.xlu0 %v7863_v60, %s6454_s6  ;;  %v7907_v60 = vadd.f32 %v7739_v39, %v7737_v38 }
 0x27e   : > { %v2894_v63 = vpop.f32.mrf.mxu1 }
 0x27f   : > { %v7879_v14 = vadd.f32 %v2894_v63, %v2781_v19  ;;  %v2783_v11 = vpop.f32.mrf.mxu0  ;;  %3826 = vrot.lane.b32.xlu1 %v7883_v34, %s6454_s6  ;;  %9974 = vst [vmem:[#allocation61_spill] sm:$0xff] %v7907_v60 }
 0x280   : > { %v2896_v62 = vpop.f32.mrf.mxu1 }
 0x281   : > { %9968 = vst [vmem:[#allocation55_spill] sm:$0xff] %v7879_v14  ;;  %v7889_v29 = vadd.f32 %v2896_v62, %v2783_v11  ;;  %v2785_v33 = vpop.f32.mrf.mxu0  ;;  %3633 = vrot.lane.b32.xlu0 %v7887_v42, %s6453_s8 }
 0x282   : > { %v2898_v19 = vpop.f32.mrf.mxu1 }
 0x283   : > { %v7895_v63 = vadd.f32 %v2898_v19, %v2785_v33  ;;  %v2787_v7 = vpop.f32.mrf.mxu0  ;;  %3603 = vrot.lane.b32.xlu1 %v7907_v60, %s6453_s8 }
 0x284   : > { %v2900_v54 = vpop.f32.mrf.mxu1 }
 0x285   : > { %9971 = vst [vmem:[#allocation58_spill] sm:$0xff] %v7895_v63  ;;  %v7897_v12 = vadd.f32 %v2900_v54, %v2787_v7  ;;  %v2791_v8 = vpop.f32.mrf.mxu0  ;;  %v7911_v7 = vadd.f32 %v7751_v48, %v7749_v10  ;;  %3828 = vrot.lane.b32.xlu0 %v7887_v42, %s6454_s6  ;;  %v7931_v42 = vadd.f32 %v7745_v17, %v7743_v36 }
 0x286   : > { %v2904_v13 = vpop.f32.mrf.mxu1 }
 0x287   : > { %9972 = vst [vmem:[#allocation59_spill] sm:$0xff] %v7897_v12  ;;  %v7903_v11 = vadd.f32 %v2904_v13, %v2791_v8  ;;  %v2793_v62 = vpop.f32.mrf.mxu0  ;;  %9975 = vst [vmem:[#allocation62_spill] sm:$0xff] %v7911_v7  ;;  %3798 = vrot.lane.b32.xlu1 %v7907_v60, %s6454_s6 }
 0x288   : > { %v2906_v33 = vpop.f32.mrf.mxu1  ;;  %9980 = vst [vmem:[#allocation67_spill] sm:$0xff] %v7931_v42 }
 0x289   : > { %9973 = vst [vmem:[#allocation60_spill] sm:$0xff] %v7903_v11  ;;  %v7913_v19 = vadd.f32 %v2906_v33, %v2793_v62  ;;  %v2795_v54 = vpop.f32.mrf.mxu0  ;;  %3605 = vrot.lane.b32.xlu0 %v7911_v7, %s6453_s8 }
 0x28a   : > { %v2908_v8 = vpop.f32.mrf.mxu1 }
 0x28b   : > { %9976 = vst [vmem:[#allocation63_spill] sm:$0xff] %v7913_v19  ;;  %v7919_v13 = vadd.f32 %v2908_v8, %v2795_v54  ;;  %v2797_v34 = vpop.f32.mrf.mxu0  ;;  %3635 = vrot.lane.b32.xlu1 %v7931_v42, %s6453_s8 }
 0x28c   : > { %v2910_v38 = vpop.f32.mrf.mxu1 }
 0x28d   : > { %9977 = vst [vmem:[#allocation64_spill] sm:$0xff] %v7919_v13  ;;  %v7921_v39 = vadd.f32 %v2910_v38, %v2797_v34  ;;  %v2801_v10 = vpop.f32.mrf.mxu0  ;;  %v7935_v34 = vadd.f32 %v7758_v61, %v7756_v23  ;;  %3800 = vrot.lane.b32.xlu0 %v7911_v7, %s6454_s6  ;;  %v7945_v60 = vpop.permute.xlu0 %3577  ;;  %v7961_v7 = vadd.f32 %v7771_v49, %v7769_v56 }
 0x28e   : > { %v2914_v48 = vpop.f32.mrf.mxu1 }
 0x28f   : > { %9978 = vst [vmem:[#allocation65_spill] sm:$0xff] %v7921_v39  ;;  %v7927_v62 = vadd.f32 %v2914_v48, %v2801_v10  ;;  %v2803_v33 = vpop.f32.mrf.mxu0  ;;  %9981 = vst [vmem:[#allocation68_spill] sm:$0xff] %v7935_v34  ;;  %3830 = vrot.lane.b32.xlu1 %v7931_v42, %s6454_s6 }
 0x290   : > { %v2916_v54 = vpop.f32.mrf.mxu1  ;;  %9986 = vst [vmem:[#allocation73_spill] sm:$0xff] %v7961_v7 }
 0x291   : > { %9979 = vst [vmem:[#allocation66_spill] sm:$0xff] %v7927_v62  ;;  %v7937_v8 = vadd.f32 %v2916_v54, %v2803_v33  ;;  %v2805_v38 = vpop.f32.mrf.mxu0  ;;  %3637 = vrot.lane.b32.xlu0 %v7935_v34, %s6453_s8  ;;  %v7953_v33 = vpop.permute.xlu1 %3579 }
 0x292   : > { %v2918_v10 = vpop.f32.mrf.mxu1 }
 0x293   : > { %9982 = vst [vmem:[#allocation69_spill] sm:$0xff] %v7937_v8  ;;  %v7943_v48 = vadd.f32 %v2918_v10, %v2805_v38  ;;  %v2807_v36 = vpop.f32.mrf.mxu0  ;;  %v7957_v38 = vpop.permute.xlu0 %3772  ;;  %3607 = vrot.lane.b32.xlu1 %v7961_v7, %s6453_s8 }
 0x294   : > { %v2920_v17 = vpop.f32.mrf.mxu1 }
 0x295   : > { %9983 = vst [vmem:[#allocation70_spill] sm:$0xff] %v7943_v48  ;;  %v7947_v53 = vadd.f32 %v2920_v17, %v2807_v36  ;;  %v2811_v23 = vpop.f32.mrf.mxu0  ;;  %3832 = vrot.lane.b32.xlu0 %v7935_v34, %s6454_s6  ;;  %v7977_v49 = vpop.permute.xlu1 %3774 }
 0x296   : > { %v2924_v61 = vpop.f32.mrf.mxu1 }
 0x297   : > { %9984 = vst [vmem:[#allocation71_spill] sm:$0xff] %v7947_v53  ;;  %v7955_v54 = vadd.f32 %v2924_v61, %v2811_v23  ;;  %v2813_v10 = vpop.f32.mrf.mxu0  ;;  %v7971_v23 = vadd.f32 %v7783_v43, %v7779_v28  ;;  %v7975_v0 = vpop.permute.xlu0 %3609  ;;  %3802 = vrot.lane.b32.xlu1 %v7961_v7, %s6454_s6 }
 0x298   : > { %v2926_v36 = vpop.f32.mrf.mxu1 }
 0x299   : > { %9985 = vst [vmem:[#allocation72_spill] sm:$0xff] %v7955_v54  ;;  %v7963_v17 = vadd.f32 %v2926_v36, %v2813_v10  ;;  %v2815_v3 = vpop.f32.mrf.mxu0  ;;  %3641 = vrot.lane.b32.xlu0 %v7971_v23, %s6453_s8 }
 0x29a   : > { %v2928_v42 = vpop.f32.mrf.mxu1 }
 0x29b   : > { %v7973_v61 = vadd.f32 %v2928_v42, %v2815_v3  ;;  %v2817_v56 = vpop.f32.mrf.mxu0  ;;  %v7985_v28 = vpop.permute.xlu0 %3804  ;;  %3639 = vrot.lane.b32.xlu1 %v7775_v32, %s6453_s8 }
 0x29c   : > { %v2930_v10 = vpop.f32.mrf.mxu1  ;;  %v7989_v3 = vpop.permute.xlu1 %3611 }
 0x29d   : > { %v7979_v36 = vadd.f32 %v2930_v10, %v2817_v56  ;;  %3836 = vrot.lane.b32.xlu0 %v7971_v23, %s6454_s6 }
 0x29e   : > { %v2967_v34 = vpop.f32.mrf.mxu0 }
 0x29f   : > { %v3080_v31 = vpop.f32.mrf.mxu1  ;;  %v7997_v5 = vpop.permute.xlu0 %3776  ;;  %3834 = vrot.lane.b32.xlu1 %v7775_v32, %s6454_s6 }
 0x2a0   : > { %v7987_v43 = vadd.f32 %v3080_v31, %v2967_v34  ;;  %v2969_v42 = vpop.f32.mrf.mxu0  ;;  %v8001_v31 = vpop.permute.xlu1 %3806 }
 0x2a1   : > { %v3082_v21 = vpop.f32.mrf.mxu1  ;;  %3673 = vrot.lane.b32.xlu0 %v7793_v59, %s6453_s8 }
 0x2a2   : > { %v7993_v56 = vadd.f32 %v3082_v21, %v2969_v42  ;;  %v2971_v10 = vpop.f32.mrf.mxu0 }
 0x2a3   : > { %v3084_v7 = vpop.f32.mrf.mxu1  ;;  %v8009_v41 = vpop.permute.xlu0 %3613  ;;  %3643 = vrot.lane.b32.xlu1 %v7799_v20, %s6453_s8 }
 0x2a4   : > { %v7999_v35 = vadd.f32 %v3084_v7, %v2971_v10  ;;  %v2973_v34 = vpop.f32.mrf.mxu0  ;;  %v8013_v7 = vpop.permute.xlu1 %3581 }
 0x2a5   : > { %v3086_v51 = vpop.f32.mrf.mxu1  ;;  %3868 = vrot.lane.b32.xlu0 %v7793_v59, %s6454_s6 }
 0x2a6   : > { %9987 = vst [vmem:[#allocation74_spill] sm:$0xff] %v7999_v35  ;;  %v8005_v24 = vadd.f32 %v3086_v51, %v2973_v34  ;;  %v2977_v21 = vpop.f32.mrf.mxu0 }
 0x2a7   : > { %v3090_v42 = vpop.f32.mrf.mxu1  ;;  %v8021_v32 = vpop.permute.xlu0 %3808  ;;  %3838 = vrot.lane.b32.xlu1 %v7799_v20, %s6454_s6 }
 0x2a8   : > { %9988 = vst [vmem:[#allocation75_spill] sm:$0xff] %v8005_v24  ;;  %v8011_v57 = vadd.f32 %v3090_v42, %v2977_v21  ;;  %v2979_v10 = vpop.f32.mrf.mxu0  ;;  %v8025_v21 = vpop.permute.xlu1 %3583 }
 0x2a9   : > { %v3092_v25 = vpop.f32.mrf.mxu1  ;;  %9992 = vst [vmem:[#allocation79_spill] sm:$0xff] %v8025_v21  ;;  %3645 = vrot.lane.b32.xlu0 %v7807_v16, %s6453_s8 }
 0x2aa   : > { %9989 = vst [vmem:[#allocation76_spill] sm:$0xff] %v8011_v57  ;;  %v8017_v47 = vadd.f32 %v3092_v25, %v2979_v10  ;;  %v2981_v51 = vpop.f32.mrf.mxu0 }
 0x2ab   : > { %v3094_v34 = vpop.f32.mrf.mxu1  ;;  %3675 = vrot.lane.b32.xlu1 %v7801_v52, %s6453_s8 }
 0x2ac   : > { %9990 = vst [vmem:[#allocation77_spill] sm:$0xff] %v8017_v47  ;;  %v8023_v24 = vadd.f32 %v3094_v34, %v2981_v51  ;;  %v2983_v42 = vpop.f32.mrf.mxu0  ;;  %v8033_v47 = vpop.permute.xlu0 %3585 }
 0x2ad   : > { %v3096_v58 = vpop.f32.mrf.mxu1  ;;  %9994 = vst [vmem:[#allocation81_spill] sm:$0xff] %v8033_v47  ;;  %v8037_v51 = vpop.permute.xlu1 %3778  ;;  %3840 = vrot.lane.b32.xlu0 %v7807_v16, %s6454_s6 }
 0x2ae   : > { %9991 = vst [vmem:[#allocation78_spill] sm:$0xff] %v8023_v24  ;;  %v8029_v44 = vadd.f32 %v3096_v58, %v2983_v42  ;;  %v2987_v25 = vpop.f32.mrf.mxu0  ;;  %9996 = vst [vmem:[#allocation83_spill] sm:$0xff] %v8037_v51 }
 0x2af   : > { %v3100_v10 = vpop.f32.mrf.mxu1  ;;  %3870 = vrot.lane.b32.xlu1 %v7801_v52, %s6454_s6 }
 0x2b0   : > { %9993 = vst [vmem:[#allocation80_spill] sm:$0xff] %v8029_v44  ;;  %v8035_v57 = vadd.f32 %v3100_v10, %v2987_v25  ;;  %v2989_v34 = vpop.f32.mrf.mxu0  ;;  %v8045_v44 = vpop.permute.xlu0 %3780 }
 0x2b1   : > { %v3102_v24 = vpop.f32.mrf.mxu1  ;;  %9998 = vst [vmem:[#allocation85_spill] sm:$0xff] %v8045_v44  ;;  %v8049_v25 = vpop.permute.xlu1 %3615  ;;  %3677 = vrot.lane.b32.xlu0 %v7817_v55, %s6453_s8 }
 0x2b2   : > { %9995 = vst [vmem:[#allocation82_spill] sm:$0xff] %v8035_v57  ;;  %v8041_v21 = vadd.f32 %v3102_v24, %v2989_v34  ;;  %v2991_v58 = vpop.f32.mrf.mxu0  ;;  %10000 = vst [vmem:[#allocation87_spill] sm:$0xff] %v8049_v25 }
 0x2b3   : > { %v3104_v42 = vpop.f32.mrf.mxu1  ;;  %3647 = vrot.lane.b32.xlu1 %v7823_v50, %s6453_s8 }
 0x2b4   : > { %9997 = vst [vmem:[#allocation84_spill] sm:$0xff] %v8041_v21  ;;  %v8047_v35 = vadd.f32 %v3104_v42, %v2991_v58  ;;  %v2993_v10 = vpop.f32.mrf.mxu0  ;;  %v8057_v21 = vpop.permute.xlu0 %3617 }
 0x2b5   : > { %v3106_v57 = vpop.f32.mrf.mxu1  ;;  %10002 = vst [vmem:[#allocation89_spill] sm:$0xff] %v8057_v21  ;;  %v8061_v58 = vpop.permute.xlu1 %3810  ;;  %3872 = vrot.lane.b32.xlu0 %v7817_v55, %s6454_s6 }
 0x2b6   : > { %9999 = vst [vmem:[#allocation86_spill] sm:$0xff] %v8047_v35  ;;  %v8053_v51 = vadd.f32 %v3106_v57, %v2993_v10  ;;  %v2997_v24 = vpop.f32.mrf.mxu0  ;;  %10004 = vst [vmem:[#allocation91_spill] sm:$0xff] %v8061_v58 }
 0x2b7   : > { %v3110_v34 = vpop.f32.mrf.mxu1  ;;  %3842 = vrot.lane.b32.xlu1 %v7823_v50, %s6454_s6 }
 0x2b8   : > { %10001 = vst [vmem:[#allocation88_spill] sm:$0xff] %v8053_v51  ;;  %v8059_v47 = vadd.f32 %v3110_v34, %v2997_v24  ;;  %v2999_v42 = vpop.f32.mrf.mxu0  ;;  %v8069_v51 = vpop.permute.xlu0 %3812 }
 0x2b9   : > { %v3112_v35 = vpop.f32.mrf.mxu1  ;;  %10006 = vst [vmem:[#allocation93_spill] sm:$0xff] %v8069_v51  ;;  %v8073_v24 = vpop.permute.xlu1 %3587  ;;  %3649 = vrot.lane.b32.xlu0 %v7831_v2, %s6453_s8 }
 0x2ba   : > { %10003 = vst [vmem:[#allocation90_spill] sm:$0xff] %v8059_v47  ;;  %v8065_v44 = vadd.f32 %v3112_v35, %v2999_v42  ;;  %v3001_v57 = vpop.f32.mrf.mxu0  ;;  %10008 = vst [vmem:[#allocation95_spill] sm:$0xff] %v8073_v24 }
 0x2bb   : > { %v3114_v10 = vpop.f32.mrf.mxu1  ;;  %3679 = vrot.lane.b32.xlu1 %v7825_v45, %s6453_s8 }
 0x2bc   : > { %10005 = vst [vmem:[#allocation92_spill] sm:$0xff] %v8065_v44  ;;  %v8071_v25 = vadd.f32 %v3114_v10, %v3001_v57  ;;  %v3003_v34 = vpop.f32.mrf.mxu0  ;;  %v8081_v44 = vpop.permute.xlu0 %3589 }
 0x2bd   : > { %v3116_v47 = vpop.f32.mrf.mxu1  ;;  %10010 = vst [vmem:[#allocation97_spill] sm:$0xff] %v8081_v44  ;;  %v8085_v57 = vpop.permute.xlu1 %3782  ;;  %3844 = vrot.lane.b32.xlu0 %v7831_v2, %s6454_s6 }
 0x2be   : > { %10007 = vst [vmem:[#allocation94_spill] sm:$0xff] %v8071_v25  ;;  %v8077_v58 = vadd.f32 %v3116_v47, %v3003_v34  ;;  %v3007_v35 = vpop.f32.mrf.mxu0  ;;  %10012 = vst [vmem:[#allocation99_spill] sm:$0xff] %v8085_v57 }
 0x2bf   : > { %v3120_v42 = vpop.f32.mrf.mxu1  ;;  %3874 = vrot.lane.b32.xlu1 %v7825_v45, %s6454_s6 }
 0x2c0   : > { %10009 = vst [vmem:[#allocation96_spill] sm:$0xff] %v8077_v58  ;;  %v8083_v21 = vadd.f32 %v3120_v42, %v3007_v35  ;;  %v3009_v10 = vpop.f32.mrf.mxu0  ;;  %v8093_v58 = vpop.permute.xlu0 %3784 }
 0x2c1   : > { %v3122_v25 = vpop.f32.mrf.mxu1  ;;  %10014 = vst [vmem:[#allocation101_spill] sm:$0xff] %v8093_v58  ;;  %v8097_v35 = vpop.permute.xlu1 %3619  ;;  %3681 = vrot.lane.b32.xlu0 %v7841_v30, %s6453_s8 }
 0x2c2   : > { %10011 = vst [vmem:[#allocation98_spill] sm:$0xff] %v8083_v21  ;;  %v8089_v24 = vadd.f32 %v3122_v25, %v3009_v10  ;;  %v3011_v47 = vpop.f32.mrf.mxu0  ;;  %10016 = vst [vmem:[#allocation103_spill] sm:$0xff] %v8097_v35 }
 0x2c3   : > { %v3124_v34 = vpop.f32.mrf.mxu1  ;;  %3651 = vrot.lane.b32.xlu1 %v7847_v40, %s6453_s8 }
 0x2c4   : > { %10013 = vst [vmem:[#allocation100_spill] sm:$0xff] %v8089_v24  ;;  %v8095_v51 = vadd.f32 %v3124_v34, %v3011_v47  ;;  %v3013_v42 = vpop.f32.mrf.mxu0  ;;  %v8105_v24 = vpop.permute.xlu0 %3621 }
 0x2c5   : > { %v3126_v21 = vpop.f32.mrf.mxu1  ;;  %10018 = vst [vmem:[#allocation105_spill] sm:$0xff] %v8105_v24  ;;  %v8109_v47 = vpop.permute.xlu1 %3814  ;;  %3876 = vrot.lane.b32.xlu0 %v7841_v30, %s6454_s6 }
 0x2c6   : > { %10015 = vst [vmem:[#allocation102_spill] sm:$0xff] %v8095_v51  ;;  %v8101_v57 = vadd.f32 %v3126_v21, %v3013_v42  ;;  %v3017_v25 = vpop.f32.mrf.mxu0  ;;  %10020 = vst [vmem:[#allocation107_spill] sm:$0xff] %v8109_v47 }
 0x2c7   : > { %v3130_v10 = vpop.f32.mrf.mxu1  ;;  %3846 = vrot.lane.b32.xlu1 %v7847_v40, %s6454_s6 }
 0x2c8   : > { %10017 = vst [vmem:[#allocation104_spill] sm:$0xff] %v8101_v57  ;;  %v8107_v44 = vadd.f32 %v3130_v10, %v3017_v25  ;;  %v3019_v34 = vpop.f32.mrf.mxu0  ;;  %v8117_v57 = vpop.permute.xlu0 %3816 }
 0x2c9   : > { %v3132_v51 = vpop.f32.mrf.mxu1  ;;  %10022 = vst [vmem:[#allocation109_spill] sm:$0xff] %v8117_v57  ;;  %v8121_v25 = vpop.permute.xlu1 %3591  ;;  %3653 = vrot.lane.b32.xlu0 %v7855_v4, %s6453_s8 }
 0x2ca   : > { %10019 = vst [vmem:[#allocation106_spill] sm:$0xff] %v8107_v44  ;;  %v8113_v58 = vadd.f32 %v3132_v51, %v3019_v34  ;;  %v3021_v21 = vpop.f32.mrf.mxu0  ;;  %10024 = vst [vmem:[#allocation111_spill] sm:$0xff] %v8121_v25 }
 0x2cb   : > { %v3134_v42 = vpop.f32.mrf.mxu1  ;;  %3683 = vrot.lane.b32.xlu1 %v7849_v15, %s6453_s8 }
 0x2cc   : > { %10021 = vst [vmem:[#allocation108_spill] sm:$0xff] %v8113_v58  ;;  %v8119_v35 = vadd.f32 %v3134_v42, %v3021_v21  ;;  %v3023_v10 = vpop.f32.mrf.mxu0  ;;  %v8129_v58 = vpop.permute.xlu0 %3593 }
 0x2cd   : > { %v3136_v44 = vpop.f32.mrf.mxu1  ;;  %10026 = vst [vmem:[#allocation113_spill] sm:$0xff] %v8129_v58  ;;  %v8133_v21 = vpop.permute.xlu1 %3786  ;;  %3848 = vrot.lane.b32.xlu0 %v7855_v4, %s6454_s6 }
 0x2ce   : > { %10023 = vst [vmem:[#allocation110_spill] sm:$0xff] %v8119_v35  ;;  %v8125_v47 = vadd.f32 %v3136_v44, %v3023_v10  ;;  %v3027_v51 = vpop.f32.mrf.mxu0  ;;  %10028 = vst [vmem:[#allocation115_spill] sm:$0xff] %v8133_v21 }
 0x2cf   : > { %v3140_v34 = vpop.f32.mrf.mxu1  ;;  %3878 = vrot.lane.b32.xlu1 %v7849_v15, %s6454_s6 }
 0x2d0   : > { %10025 = vst [vmem:[#allocation112_spill] sm:$0xff] %v8125_v47  ;;  %v8131_v24 = vadd.f32 %v3140_v34, %v3027_v51  ;;  %v3029_v42 = vpop.f32.mrf.mxu0  ;;  %v8141_v47 = vpop.permute.xlu0 %3788 }
 0x2d1   : > { %v3142_v35 = vpop.f32.mrf.mxu1  ;;  %10030 = vst [vmem:[#allocation117_spill] sm:$0xff] %v8141_v47  ;;  %v8145_v51 = vpop.permute.xlu1 %3623  ;;  %3685 = vrot.lane.b32.xlu0 %v7865_v9, %s6453_s8 }
 0x2d2   : > { %10027 = vst [vmem:[#allocation114_spill] sm:$0xff] %v8131_v24  ;;  %v8137_v25 = vadd.f32 %v3142_v35, %v3029_v42  ;;  %v3031_v44 = vpop.f32.mrf.mxu0  ;;  %10032 = vst [vmem:[#allocation119_spill] sm:$0xff] %v8145_v51 }
 0x2d3   : > { %v3144_v10 = vpop.f32.mrf.mxu1  ;;  %3655 = vrot.lane.b32.xlu1 %v7871_v27, %s6453_s8 }
 0x2d4   : > { %10029 = vst [vmem:[#allocation116_spill] sm:$0xff] %v8137_v25  ;;  %v8143_v57 = vadd.f32 %v3144_v10, %v3031_v44  ;;  %v3033_v34 = vpop.f32.mrf.mxu0  ;;  %v8153_v25 = vpop.permute.xlu0 %3625 }
 0x2d5   : > { %v3146_v24 = vpop.f32.mrf.mxu1  ;;  %10034 = vst [vmem:[#allocation121_spill] sm:$0xff] %v8153_v25  ;;  %v8157_v44 = vpop.permute.xlu1 %3818  ;;  %3880 = vrot.lane.b32.xlu0 %v7865_v9, %s6454_s6 }
 0x2d6   : > { %10031 = vst [vmem:[#allocation118_spill] sm:$0xff] %v8143_v57  ;;  %v8149_v21 = vadd.f32 %v3146_v24, %v3033_v34  ;;  %v3037_v35 = vpop.f32.mrf.mxu0  ;;  %10036 = vst [vmem:[#allocation123_spill] sm:$0xff] %v8157_v44 }
 0x2d7   : > { %v3150_v42 = vpop.f32.mrf.mxu1  ;;  %3850 = vrot.lane.b32.xlu1 %v7871_v27, %s6454_s6 }
 0x2d8   : > { %10033 = vst [vmem:[#allocation120_spill] sm:$0xff] %v8149_v21  ;;  %v8155_v58 = vadd.f32 %v3150_v42, %v3037_v35  ;;  %v3039_v10 = vpop.f32.mrf.mxu0  ;;  %v8165_v21 = vpop.permute.xlu0 %3820 }
 0x2d9   : > { %v3152_v57 = vpop.f32.mrf.mxu1  ;;  %10038 = vst [vmem:[#allocation125_spill] sm:$0xff] %v8165_v21  ;;  %v8169_v35 = vpop.permute.xlu1 %3595  ;;  %3657 = vrot.lane.b32.xlu0 %v7879_v14, %s6453_s8 }
 0x2da   : > { %10035 = vst [vmem:[#allocation122_spill] sm:$0xff] %v8155_v58  ;;  %v8161_v47 = vadd.f32 %v3152_v57, %v3039_v10  ;;  %v3041_v24 = vpop.f32.mrf.mxu0  ;;  %10040 = vst [vmem:[#allocation127_spill] sm:$0xff] %v8169_v35 }
 0x2db   : > { %v3154_v34 = vpop.f32.mrf.mxu1  ;;  %3687 = vrot.lane.b32.xlu1 %v7873_v46, %s6453_s8 }
 0x2dc   : > { %10037 = vst [vmem:[#allocation124_spill] sm:$0xff] %v8161_v47  ;;  %v8167_v25 = vadd.f32 %v3154_v34, %v3041_v24  ;;  %v3043_v42 = vpop.f32.mrf.mxu0  ;;  %v8177_v10 = vpop.permute.xlu0 %3597 }
 0x2dd   : > { %v3156_v58 = vpop.f32.mrf.mxu1  ;;  %10042 = vst [vmem:[#allocation129_spill] sm:$0xff] %v8177_v10  ;;  %v8179_v51 = vpop.permute.xlu1 %3790  ;;  %3852 = vrot.lane.b32.xlu0 %v7879_v14, %s6454_s6 }
 0x2de   : > { %10039 = vst [vmem:[#allocation126_spill] sm:$0xff] %v8167_v25  ;;  %v8173_v44 = vadd.f32 %v3156_v58, %v3043_v42  ;;  %10043 = vst [vmem:[#allocation130_spill] sm:$0xff] %v8179_v51 }
 0x2df   : > { %v3193_v57 = vpop.f32.mrf.mxu0  ;;  %3882 = vrot.lane.b32.xlu1 %v7873_v46, %s6454_s6 }
 0x2e0   : > { %10041 = vst [vmem:[#allocation128_spill] sm:$0xff] %v8173_v44  ;;  %v3306_v47 = vpop.f32.mrf.mxu1  ;;  %v8186_v25 = vpop.permute.xlu0 %3792 }
 0x2e1   : > { %v3195_v24 = vpop.f32.mrf.mxu0  ;;  %v3307_v58 = vadd.f32 %v3306_v47, %v3193_v57  ;;  %10044 = vst [vmem:[#allocation131_spill] sm:$0xff] %v8186_v25  ;;  %v8188_v10 = vpop.permute.xlu1 %3627  ;;  %3689 = vrot.lane.b32.xlu0 %v7889_v29, %s6453_s8 }
 0x2e2   : > { %v3308_v34 = vpop.f32.mrf.mxu1  ;;  %10045 = vst [vmem:[#allocation132_spill] sm:$0xff] %v8188_v10 }
 0x2e3   : > { %v3309_v42 = vadd.f32 %v3308_v34, %v3195_v24  ;;  %v3197_v44 = vpop.f32.mrf.mxu0  ;;  %3659 = vrot.lane.b32.xlu1 %v7895_v63, %s6453_s8 }
 0x2e4   : > { %v3310_v35 = vpop.f32.mrf.mxu1  ;;  %v8199_v34 = vpop.permute.xlu0 %3629 }
 0x2e5   : > { %v5805_v21 = vpack.c.bf16 %v3309_v42, %v3307_v58  ;;  %v3199_v51 = vpop.f32.mrf.mxu0  ;;  %v3311_v47 = vadd.f32 %v3310_v35, %v3197_v44  ;;  %10046 = vst [vmem:[#allocation133_spill] sm:$0xff] %v8199_v34  ;;  %v8201_v42 = vpop.permute.xlu1 %3822  ;;  %3884 = vrot.lane.b32.xlu0 %v7889_v29, %s6454_s6 }
 0x2e6   : > { %v3312_v27 = vpop.f32.mrf.mxu1  ;;  %10047 = vst [vmem:[#allocation134_spill] sm:$0xff] %v8201_v42 }
 0x2e7   : > { %5069 = vst [vmem:[%s8196_s26] sm:$0xff] %v5805_v21  ;;  %v3313_v57 = vadd.f32 %v3312_v27, %v3199_v51  ;;  %v3203_v24 = vpop.f32.mrf.mxu0  ;;  %3854 = vrot.lane.b32.xlu1 %v7895_v63, %s6454_s6 }
 0x2e8   : > { %v3316_v58 = vpop.f32.mrf.mxu1  ;;  %v8208_v51 = vpop.permute.xlu0 %3824 }
 0x2e9   : > { %v5806_v25 = vpack.c.bf16 %v3313_v57, %v3311_v47  ;;  %v3205_v10 = vpop.f32.mrf.mxu0  ;;  %v3317_v21 = vadd.f32 %v3316_v58, %v3203_v24  ;;  %10048 = vst [vmem:[#allocation135_spill] sm:$0xff] %v8208_v51  ;;  %v8210_v34 = vpop.permute.xlu1 %3599  ;;  %3661 = vrot.lane.b32.xlu0 %v7903_v11, %s6453_s8 }
 0x2ea   : > { %v3318_v14 = vpop.f32.mrf.mxu1  ;;  %10049 = vst [vmem:[#allocation136_spill] sm:$0xff] %v8210_v34 }
 0x2eb   : > { %5070 = vst [vmem:[%s8196_s26 + $0x8] sm:$0xff] %v5806_v25  ;;  %v3319_v44 = vadd.f32 %v3318_v14, %v3205_v10  ;;  %v3207_v27 = vpop.f32.mrf.mxu0  ;;  %3691 = vrot.lane.b32.xlu1 %v7897_v12, %s6453_s8 }
 0x2ec   : > { %v3320_v35 = vpop.f32.mrf.mxu1  ;;  %v8217_v10 = vpop.permute.xlu0 %3601 }
 0x2ed   : > { %v5807_v42 = vpack.c.bf16 %v3319_v44, %v3317_v21  ;;  %v3209_v47 = vpop.f32.mrf.mxu0  ;;  %v3321_v25 = vadd.f32 %v3320_v35, %v3207_v27  ;;  %10050 = vst [vmem:[#allocation137_spill] sm:$0xff] %v8217_v10  ;;  %v8219_v51 = vpop.permute.xlu1 %3794  ;;  %3856 = vrot.lane.b32.xlu0 %v7903_v11, %s6454_s6 }
 0x2ee   : > { %v3322_v57 = vpop.f32.mrf.mxu1  ;;  %10051 = vst [vmem:[#allocation138_spill] sm:$0xff] %v8219_v51 }
 0x2ef   : > { %5071 = vst [vmem:[%s8196_s26 + $0x10] sm:$0xff] %v5807_v42  ;;  %v3323_v24 = vadd.f32 %v3322_v57, %v3209_v47  ;;  %v3213_v14 = vpop.f32.mrf.mxu0  ;;  %3886 = vrot.lane.b32.xlu1 %v7897_v12, %s6454_s6 }
 0x2f0   : > { %v3326_v58 = vpop.f32.mrf.mxu1  ;;  %v8226_v47 = vpop.permute.xlu0 %3796 }
 0x2f1   : > { %v5808_v34 = vpack.c.bf16 %v3323_v24, %v3321_v25  ;;  %v3215_v21 = vpop.f32.mrf.mxu0  ;;  %v3327_v42 = vadd.f32 %v3326_v58, %v3213_v14  ;;  %10052 = vst [vmem:[#allocation139_spill] sm:$0xff] %v8226_v47  ;;  %v8228_v10 = vpop.permute.xlu1 %3631  ;;  %3693 = vrot.lane.b32.xlu0 %v7913_v19, %s6453_s8 }
 0x2f2   : > { %v3328_v44 = vpop.f32.mrf.mxu1  ;;  %10053 = vst [vmem:[#allocation140_spill] sm:$0xff] %v8228_v10 }
 0x2f3   : > { %5072 = vst [vmem:[%s8196_s26 + $0x18] sm:$0xff] %v5808_v34  ;;  %v3329_v27 = vadd.f32 %v3328_v44, %v3215_v21  ;;  %v3217_v35 = vpop.f32.mrf.mxu0  ;;  %3663 = vrot.lane.b32.xlu1 %v7919_v13, %s6453_s8 }
 0x2f4   : > { %v3330_v57 = vpop.f32.mrf.mxu1  ;;  %v8235_v21 = vpop.permute.xlu0 %3633 }
 0x2f5   : > { %v5809_v51 = vpack.c.bf16 %v3329_v27, %v3327_v42  ;;  %v3219_v25 = vpop.f32.mrf.mxu0  ;;  %v3331_v34 = vadd.f32 %v3330_v57, %v3217_v35  ;;  %10054 = vst [vmem:[#allocation141_spill] sm:$0xff] %v8235_v21  ;;  %v8237_v47 = vpop.permute.xlu1 %3826  ;;  %3888 = vrot.lane.b32.xlu0 %v7913_v19, %s6454_s6 }
 0x2f6   : > { %v3332_v24 = vpop.f32.mrf.mxu1  ;;  %10055 = vst [vmem:[#allocation142_spill] sm:$0xff] %v8237_v47 }
 0x2f7   : > { %5073 = vst [vmem:[%s8196_s26 + $0x20] sm:$0xff] %v5809_v51  ;;  %v3333_v14 = vadd.f32 %v3332_v24, %v3219_v25  ;;  %v3223_v58 = vpop.f32.mrf.mxu0  ;;  %3858 = vrot.lane.b32.xlu1 %v7919_v13, %s6454_s6  ;;  %v3452_v13 = vld [vmem:[%s6780_s11 + $0x18] sm:$0xff] }
 0x2f8   : > { %v3336_v44 = vpop.f32.mrf.mxu1  ;;  %v8244_v25 = vpop.permute.xlu0 %3828 }
 0x2f9   : > { %v5810_v10 = vpack.c.bf16 %v3333_v14, %v3331_v34  ;;  %v3225_v42 = vpop.f32.mrf.mxu0  ;;  %v3337_v51 = vadd.f32 %v3336_v44, %v3223_v58  ;;  %10056 = vst [vmem:[#allocation143_spill] sm:$0xff] %v8244_v25  ;;  %v8246_v21 = vpop.permute.xlu1 %3603  ;;  %3665 = vrot.lane.b32.xlu0 %v7927_v62, %s6453_s8 }
 0x2fa   : > { %v3338_v27 = vpop.f32.mrf.mxu1  ;;  %10057 = vst [vmem:[#allocation144_spill] sm:$0xff] %v8246_v21 }
 0x2fb   : > { %5074 = vst [vmem:[%s8196_s26 + $0x28] sm:$0xff] %v5810_v10  ;;  %v3339_v35 = vadd.f32 %v3338_v27, %v3225_v42  ;;  %v3227_v57 = vpop.f32.mrf.mxu0  ;;  %3695 = vrot.lane.b32.xlu1 %v7921_v39, %s6453_s8 }
 0x2fc   : > { %v3340_v24 = vpop.f32.mrf.mxu1  ;;  %v8253_v42 = vpop.permute.xlu0 %3605 }
 0x2fd   : > { %v5811_v47 = vpack.c.bf16 %v3339_v35, %v3337_v51  ;;  %v3229_v34 = vpop.f32.mrf.mxu0  ;;  %v3341_v10 = vadd.f32 %v3340_v24, %v3227_v57  ;;  %10058 = vst [vmem:[#allocation145_spill] sm:$0xff] %v8253_v42  ;;  %v8255_v25 = vpop.permute.xlu1 %3798  ;;  %3860 = vrot.lane.b32.xlu0 %v7927_v62, %s6454_s6 }
 0x2fe   : > { %v3342_v14 = vpop.f32.mrf.mxu1  ;;  %10059 = vst [vmem:[#allocation146_spill] sm:$0xff] %v8255_v25 }
 0x2ff   : > { %5075 = vst [vmem:[%s8196_s26 + $0x30] sm:$0xff] %v5811_v47  ;;  %v3343_v58 = vadd.f32 %v3342_v14, %v3229_v34  ;;  %v3233_v44 = vpop.f32.mrf.mxu0  ;;  %3890 = vrot.lane.b32.xlu1 %v7921_v39, %s6454_s6 }
 0x300   : > { %v3346_v27 = vpop.f32.mrf.mxu1  ;;  %v8262_v34 = vpop.permute.xlu0 %3800 }
 0x301   : > { %v5812_v21 = vpack.c.bf16 %v3343_v58, %v3341_v10  ;;  %v3235_v51 = vpop.f32.mrf.mxu0  ;;  %v3347_v47 = vadd.f32 %v3346_v27, %v3233_v44  ;;  %10060 = vst [vmem:[#allocation147_spill] sm:$0xff] %v8262_v34  ;;  %v8264_v42 = vpop.permute.xlu1 %3635  ;;  %3697 = vrot.lane.b32.xlu0 %v7937_v8, %s6453_s8 }
 0x302   : > { %v3348_v35 = vpop.f32.mrf.mxu1  ;;  %10061 = vst [vmem:[#allocation148_spill] sm:$0xff] %v8264_v42 }
 0x303   : > { %5076 = vst [vmem:[%s8196_s26 + $0x38] sm:$0xff] %v5812_v21  ;;  %v3349_v57 = vadd.f32 %v3348_v35, %v3235_v51  ;;  %v3237_v24 = vpop.f32.mrf.mxu0  ;;  %3667 = vrot.lane.b32.xlu1 %v7943_v48, %s6453_s8 }
 0x304   : > { %v3350_v14 = vpop.f32.mrf.mxu1  ;;  %v8271_v51 = vpop.permute.xlu0 %3637 }
 0x305   : > { %v5813_v25 = vpack.c.bf16 %v3349_v57, %v3347_v47  ;;  %v3239_v10 = vpop.f32.mrf.mxu0  ;;  %v3351_v21 = vadd.f32 %v3350_v14, %v3237_v24  ;;  %10062 = vst [vmem:[#allocation149_spill] sm:$0xff] %v8271_v51  ;;  %v8273_v34 = vpop.permute.xlu1 %3830  ;;  %3892 = vrot.lane.b32.xlu0 %v7937_v8, %s6454_s6  ;;  %v10066_v8 = vlaneseq }
 0x306   : > { %v3352_v58 = vpop.f32.mrf.mxu1  ;;  %10063 = vst [vmem:[#allocation150_spill] sm:$0xff] %v8273_v34 }
 0x307   : > { %5077 = vst [vmem:[%s8196_s26 + $0x40] sm:$0xff] %v5813_v25  ;;  %v3353_v44 = vadd.f32 %v3352_v58, %v3239_v10  ;;  %v3243_v27 = vpop.f32.mrf.mxu0  ;;  %3862 = vrot.lane.b32.xlu1 %v7943_v48, %s6454_s6 }
 0x308   : > { %v3356_v35 = vpop.f32.mrf.mxu1  ;;  %v8280_v10 = vpop.permute.xlu0 %3832 }
 0x309   : > { %v5814_v42 = vpack.c.bf16 %v3353_v44, %v3351_v21  ;;  %v3245_v47 = vpop.f32.mrf.mxu0  ;;  %v3357_v25 = vadd.f32 %v3356_v35, %v3243_v27  ;;  %10064 = vst [vmem:[#allocation151_spill] sm:$0xff] %v8280_v10  ;;  %v8282_v51 = vpop.permute.xlu1 %3607  ;;  %3669 = vrot.lane.b32.xlu0 %v7955_v54, %s6453_s8 }
 0x30a   : > { %v3358_v57 = vpop.f32.mrf.mxu1  ;;  %10065 = vst [vmem:[#allocation152_spill] sm:$0xff] %v8282_v51 }
 0x30b   : > { %5078 = vst [vmem:[%s8196_s26 + $0x48] sm:$0xff] %v5814_v42  ;;  %v3359_v24 = vadd.f32 %v3358_v57, %v3245_v47  ;;  %v3247_v14 = vpop.f32.mrf.mxu0  ;;  %v8289_v42 = vand.u32 127, %v10066_v8  ;;  %3699 = vrot.lane.b32.xlu1 %v7947_v53, %s6453_s8 }
 0x30c   : > { %v3360_v58 = vpop.f32.mrf.mxu1  ;;  %v3642_v57 = vpop.permute.xlu0 %3641 }
 0x30d   : > { %v5815_v34 = vpack.c.bf16 %v3359_v24, %v3357_v25  ;;  %v3249_v21 = vpop.f32.mrf.mxu0  ;;  %v3361_v27 = vadd.f32 %v3360_v58, %v3247_v14  ;;  %v8292_v25 = vpop.permute.xlu1 %3802  ;;  %3864 = vrot.lane.b32.xlu0 %v7955_v54, %s6454_s6  ;;  %vm3707_vm0 = vcmp.lt.s32.totalorder %v8289_v42, 127  ;;  %v3449_v54 = vld [vmem:[%s6780_s11] sm:$0xff]  ;;  %vm3900_vm1 = vcmp.lt.s32.totalorder %v8289_v42, 1 }
 0x30e   : > { %v3362_v44 = vpop.f32.mrf.mxu1  ;;  %10067 = vst [vmem:[#allocation153_spill] sm:$0xff] %v8292_v25 }
 0x30f   : > { %5079 = vst [vmem:[%s8196_s26 + $0x50] sm:$0xff] %v5815_v34  ;;  %v3363_v35 = vadd.f32 %v3362_v44, %v3249_v21  ;;  %v3253_v47 = vpop.f32.mrf.mxu0  ;;  %v3724_v21 = vsel %vm3707_vm0, %v7975_v0, %v3642_v57  ;;  %3894 = vrot.lane.b32.xlu1 %v7947_v53, %s6454_s6 }
 0x310   : > { %v3366_v10 = vpop.f32.mrf.mxu1  ;;  %v3837_v58 = vpop.permute.xlu0 %3836 }
 0x311   : > { %v5816_v24 = vpack.c.bf16 %v3363_v35, %v3361_v27  ;;  %v3255_v51 = vpop.f32.mrf.mxu0  ;;  %v3367_v8 = vadd.f32 %v3366_v10, %v3253_v47  ;;  %v8303_v27 = vpop.permute.xlu1 %3639  ;;  %v3450_v35 = vld [vmem:[%s6780_s11 + $0x8] sm:$0xff]  ;;  %3701 = vrot.lane.b32.xlu0 %v7963_v17, %s6453_s8  ;;  %v3451_v47 = vld [vmem:[%s6780_s11 + $0x10] sm:$0xff] }
 0x312   : > { %v3368_v62 = vpop.f32.mrf.mxu1  ;;  %10068 = vst [vmem:[#allocation154_spill] sm:$0xff] %v8303_v27  ;;  %v4030_v11 = vmul.f32 %v3724_v21, %v3450_v35 }
 0x313   : > { %5080 = vst [vmem:[%s8196_s26 + $0x58] sm:$0xff] %v5816_v24  ;;  %v3369_v34 = vadd.f32 %v3368_v62, %v3255_v51  ;;  %v3257_v14 = vpop.f32.mrf.mxu0  ;;  %v3386_v62 = vld [vmem:[%s6774_s29 + $0x8] sm:$0xff]  ;;  %v3740_v51 = vsel %vm3707_vm0, %v7945_v60, %v7975_v0  ;;  %3671 = vrot.lane.b32.xlu1 %v7973_v61, %s6453_s8 }
 0x314   : > { %v3370_v44 = vpop.f32.mrf.mxu1  ;;  %v3674_v19 = vpop.permute.xlu0 %3673  ;;  %v4029_v21 = vmul.f32 %v3740_v51, %v3449_v54  ;;  %v3917_v54 = vsel %vm3900_vm1, %v7985_v28, %v3837_v58 }
 0x315   : > { %v5817_v25 = vpack.c.bf16 %v3369_v34, %v3367_v8  ;;  %v3259_v24 = vpop.f32.mrf.mxu0  ;;  %v3385_v8 = vld [vmem:[%s6774_s29] sm:$0xff]  ;;  %v3387_v34 = vld [vmem:[%s6774_s29 + $0x10] sm:$0xff]  ;;  %v3371_v27 = vadd.f32 %v3370_v44, %v3257_v14  ;;  %v8322_v0 = vpop.permute.xlu1 %3834  ;;  %v3708_v53 = vsel %vm3707_vm0, %v3642_v57, %v3674_v19  ;;  %v3756_v63 = vsel %vm3707_vm0, %v3674_v19, %v7945_v60  ;;  %v3388_v14 = vld [vmem:[%s6774_s29 + $0x18] sm:$0xff]  ;;  %3896 = vrot.lane.b32.xlu0 %v7963_v17, %s6454_s6 }
 0x316   : > { %v3372_v10 = vpop.f32.mrf.mxu1  ;;  %10069 = vst [vmem:[#allocation155_spill] sm:$0xff] %v8322_v0  ;;  %v3965_v35 = vmul.f32 %v3385_v8, %v7586_v22  ;;  %v3967_v57 = vmul.f32 %v3387_v34, %v7971_v23  ;;  %v4032_v60 = vmul.f32 %v3756_v63, %v3452_v13  ;;  %v3513_v63 = vld [vmem:[%s6783_s19] sm:$0xff]  ;;  %v3968_v13 = vmul.f32 %v3388_v14, %v7793_v59 }
 0x317   : > { %5081 = vst [vmem:[%s8196_s26 + $0x60] sm:$0xff] %v5817_v25  ;;  %v3373_v48 = vadd.f32 %v3372_v10, %v3259_v24  ;;  %v3263_v39 = vpop.f32.mrf.mxu0  ;;  %v3966_v25 = vmul.f32 %v3386_v62, %v7600_v37  ;;  %v4031_v24 = vmul.f32 %v3708_v53, %v3451_v47  ;;  %v3933_v37 = vsel %vm3900_vm1, %v7957_v38, %v7985_v28  ;;  %v3514_v53 = vld [vmem:[%s6783_s19 + $0x8] sm:$0xff]  ;;  %v3516_v62 = vld [vmem:[%s6783_s19 + $0x18] sm:$0xff] }
 0x318   : > { %v3376_v12 = vpop.f32.mrf.mxu1  ;;  %v3869_v51 = vpop.permute.xlu0 %3868  ;;  %v4158_v14 = vmul.f32 %v3933_v37, %v3514_v53  ;;  %3866 = vrot.lane.b32.xlu1 %v7973_v61, %s6454_s6 }
 0x319   : > { %v5818_v44 = vpack.c.bf16 %v3373_v48, %v3371_v27  ;;  %v3265_v10 = vpop.f32.mrf.mxu0  ;;  %v3515_v48 = vld [vmem:[%s6783_s19 + $0x10] sm:$0xff]  ;;  %v3377_v22 = vadd.f32 %v3376_v12, %v3263_v39  ;;  %v4094_v47 = vadd.f32 %v4030_v11, %v3966_v25  ;;  %v4095_v8 = vadd.f32 %v4031_v24, %v3967_v57  ;;  %v8350_v0 = vpop.permute.xlu1 %3643  ;;  %4509 = vrot.lane.b32.xlu0 %v7987_v43, %s6453_s8  ;;  %v3390_v24 = vld [vmem:[%s6774_s29 + $0x28] sm:$0xff] }
 0x31a   : > { %v3378_v19 = vpop.f32.mrf.mxu1  ;;  %v3901_v28 = vsel %vm3900_vm1, %v3837_v58, %v3869_v51  ;;  %v3949_v12 = vsel %vm3900_vm1, %v3869_v51, %v7957_v38  ;;  %v3741_v11 = vsel %vm3707_vm0, %v7953_v33, %v7989_v3  ;;  %v4093_v25 = vadd.f32 %v4029_v21, %v3965_v35  ;;  %v3393_v58 = vld [vmem:[%s6774_s29 + $0x40] sm:$0xff] }
 0x31b   : > { %5082 = vst [vmem:[%s8196_s26 + $0x68] sm:$0xff] %v5818_v44  ;;  %v3379_v27 = vadd.f32 %v3378_v19, %v3265_v10  ;;  %v3267_v23 = vpop.f32.mrf.mxu0  ;;  %v3389_v44 = vld [vmem:[%s6774_s29 + $0x20] sm:$0xff]  ;;  %v4159_v38 = vmul.f32 %v3917_v54, %v3515_v48  ;;  %v4096_v10 = vadd.f32 %v4032_v60, %v3968_v13  ;;  %v4160_v57 = vmul.f32 %v3901_v28, %v3516_v62  ;;  %v3391_v54 = vld [vmem:[%s6774_s29 + $0x30] sm:$0xff] }
 0x31c   : > { %v3380_v34 = vpop.f32.mrf.mxu1  ;;  %v3742_v21 = vsel %vm3707_vm0, %v8013_v7, %v8009_v41  ;;  %v8375_v60 = vpop.permute.xlu0 %3645  ;;  %v4222_v53 = vadd.f32 %v4158_v14, %v4094_v47  ;;  %v3453_v48 = vld [vmem:[%s6780_s11 + $0x20] sm:$0xff]  ;;  %v3725_v51 = vsel %vm3707_vm0, %v7989_v3, %v8350_v0  ;;  %v3973_v47 = vmul.f32 %v3393_v58, %v7612_v18  ;;  %3703 = vrot.lane.b32.xlu1 %v7979_v36, %s6453_s8  ;;  %v3456_v58 = vld [vmem:[%s6780_s11 + $0x38] sm:$0xff] }
 0x31d   : > { %v5819_v39 = vpack.c.bf16 %v3379_v27, %v3377_v22  ;;  %v3269_v59 = vpop.f32.mrf.mxu0  ;;  %v4157_v22 = vmul.f32 %v3949_v12, %v3513_v63  ;;  %v3394_v27 = vld [vmem:[%s6774_s29 + $0x48] sm:$0xff]  ;;  %v3381_v35 = vadd.f32 %v3380_v34, %v3267_v23  ;;  %v4223_v62 = vadd.f32 %v4159_v38, %v4095_v8  ;;  %v3839_v13 = vpop.permute.xlu1 %3838  ;;  %v3392_v34 = vld [vmem:[%s6774_s29 + $0x38] sm:$0xff]  ;;  %4605 = vrot.lane.b32.xlu0 %v7987_v43, %s6454_s6 }
 0x31e   : > { %v3382_v19 = vpop.f32.mrf.mxu1  ;;  %v4224_v63 = vadd.f32 %v4160_v57, %v4096_v10  ;;  %v3454_v12 = vld [vmem:[%s6780_s11 + $0x28] sm:$0xff]  ;;  %v3969_v23 = vmul.f32 %v3389_v44, %v7594_v26  ;;  %v3970_v8 = vmul.f32 %v3390_v24, %v7610_v1  ;;  %v8393_v3 = vmul.f32 %v3394_v27, %v7626_v6  ;;  %v3455_v6 = vld [vmem:[%s6780_s11 + $0x30] sm:$0xff] }
 0x31f   : > { %5083 = vst [vmem:[%s8196_s26 + $0x70] sm:$0xff] %v5819_v39  ;;  %v3383_v37 = vadd.f32 %v3382_v19, %v3269_v59  ;;  %v4221_v28 = vadd.f32 %v4157_v22, %v4093_v25  ;;  %v3457_v39 = vld [vmem:[%s6780_s11 + $0x40] sm:$0xff]  ;;  %v3395_v59 = vld [vmem:[%s6774_s29 + $0x50] sm:$0xff]  ;;  %v3396_v25 = vld [vmem:[%s6774_s29 + $0x58] sm:$0xff]  ;;  %v4033_v18 = vmul.f32 %v3741_v11, %v3453_v48  ;;  %v3971_v44 = vmul.f32 %v3391_v54, %v7799_v20 }
 0x320   : > { %v5758_v38 = vpack.c.bf16 %v4224_v63, %v4223_v62  ;;  %v3934_v1 = vsel %vm3900_vm1, %v7977_v49, %v8001_v31  ;;  %v3841_v24 = vpop.permute.xlu0 %3840  ;;  %v4034_v10 = vmul.f32 %v3725_v51, %v3454_v12  ;;  %v3518_v57 = vld [vmem:[%s6783_s19 + $0x28] sm:$0xff]  ;;  %v4037_v19 = vmul.f32 %v3742_v21, %v3457_v39  ;;  %3898 = vrot.lane.b32.xlu1 %v7979_v36, %s6454_s6  ;;  %v3460_v51 = vld [vmem:[%s6780_s11 + $0x58] sm:$0xff] }
 0x321   : > { %v5820_v14 = vpack.c.bf16 %v3383_v37, %v3381_v35  ;;  %v5757_v26 = vpack.c.bf16 %v4222_v53, %v4221_v28  ;;  %v3972_v22 = vmul.f32 %v3392_v34, %v7801_v52  ;;  %v3975_v11 = vmul.f32 %v3395_v59, %v7807_v16  ;;  %v3676_v27 = vpop.permute.xlu1 %3675  ;;  %v3458_v16 = vld [vmem:[%s6780_s11 + $0x48] sm:$0xff]  ;;  %v3519_v37 = vld [vmem:[%s6783_s19 + $0x30] sm:$0xff]  ;;  %4541 = vrot.lane.b32.xlu0 %v7993_v56, %s6453_s8  ;;  %v3520_v28 = vld [vmem:[%s6783_s19 + $0x38] sm:$0xff] }
 0x322   : > { %v3935_v20 = vsel %vm3900_vm1, %v7997_v5, %v8021_v32  ;;  %4478 = vst [vmem:[%s8415_s28 + $0x8] sm:$0xff] %v5758_v38  ;;  %v3726_v52 = vsel %vm3707_vm0, %v8009_v41, %v8375_v60  ;;  %v3522_v21 = vld [vmem:[%s6783_s19 + $0x48] sm:$0xff]  ;;  %v3976_v35 = vmul.f32 %v3396_v25, %v7817_v55  ;;  %v3918_v53 = vsel %vm3900_vm1, %v8001_v31, %v3839_v13  ;;  %v3459_v55 = vld [vmem:[%s6780_s11 + $0x50] sm:$0xff] }
 0x323   : > { %5084 = vst [vmem:[%s8196_s26 + $0x78] sm:$0xff] %v5820_v14  ;;  %4477 = vst [vmem:[%s8415_s28] sm:$0xff] %v5757_v26  ;;  %v3709_v48 = vsel %vm3707_vm0, %v8350_v0, %v3676_v27  ;;  %v3757_v41 = vsel %vm3707_vm0, %v3676_v27, %v7953_v33  ;;  %v4097_v63 = vadd.f32 %v4033_v18, %v3969_v23  ;;  %v3517_v0 = vld [vmem:[%s6783_s19 + $0x20] sm:$0xff] }
 0x324   : > { %v4035_v54 = vmul.f32 %v3709_v48, %v3455_v6  ;;  %v4036_v62 = vmul.f32 %v3757_v41, %v3456_v58  ;;  %v4162_v31 = vmul.f32 %v3934_v1, %v3518_v57  ;;  %v3678_v12 = vpop.permute.xlu0 %3677  ;;  %v4098_v39 = vadd.f32 %v4034_v10, %v3970_v8  ;;  %v3523_v6 = vld [vmem:[%s6783_s19 + $0x50] sm:$0xff]  ;;  %v3521_v57 = vld [vmem:[%s6783_s19 + $0x40] sm:$0xff]  ;;  %v10071_v41 = vld [vmem:[#allocation76_spill] sm:$0xff] }
 0x325   : > { %v4038_v34 = vmul.f32 %v3726_v52, %v3458_v16  ;;  %v4101_v59 = vadd.f32 %v4037_v19, %v3973_v47  ;;  %v4166_v33 = vmul.f32 %v3935_v20, %v3522_v21  ;;  %v4163_v14 = vmul.f32 %v3918_v53, %v3519_v37  ;;  %v3871_v38 = vpop.permute.xlu1 %3870  ;;  %4637 = vrot.lane.b32.xlu0 %v7993_v56, %s6454_s6 }
 0x326   : > { %v4099_v25 = vadd.f32 %v4035_v54, %v3971_v44  ;;  %v3710_v26 = vsel %vm3707_vm0, %v8375_v60, %v3678_v12  ;;  %v3758_v23 = vsel %vm3707_vm0, %v3678_v12, %v8013_v7  ;;  %v3902_v8 = vsel %vm3900_vm1, %v3839_v13, %v3871_v38  ;;  %v10070_v7 = vld [vmem:[#allocation74_spill] sm:$0xff]  ;;  %v3397_v54 = vld [vmem:[%s6774_s29 + $0x60] sm:$0xff] }
 0x327   : > { %v3950_v47 = vsel %vm3900_vm1, %v3871_v38, %v7977_v49  ;;  %v4039_v18 = vmul.f32 %v3710_v26, %v3459_v55  ;;  %v4040_v1 = vmul.f32 %v3758_v23, %v3460_v51  ;;  %v4100_v44 = vadd.f32 %v4036_v62, %v3972_v22  ;;  %4511 = vrot.lane.b32.xlu1 %v10070_v7, %s6453_s8  ;;  %v3524_v13 = vld [vmem:[%s6783_s19 + $0x58] sm:$0xff]  ;;  %v3401_v62 = vld [vmem:[%s6774_s29 + $0x80] sm:$0xff]  ;;  %v10074_v38 = vld [vmem:[#allocation89_spill] sm:$0xff] }
 0x328   : > { %v3919_v60 = vsel %vm3900_vm1, %v8021_v32, %v3841_v24  ;;  %v4164_v58 = vmul.f32 %v3902_v8, %v3520_v28  ;;  %v4161_v10 = vmul.f32 %v3950_v47, %v3517_v0  ;;  %v4227_v49 = vadd.f32 %v4163_v14, %v4099_v25  ;;  %v3873_v20 = vpop.permute.xlu0 %3872  ;;  %v10072_v55 = vld [vmem:[#allocation87_spill] sm:$0xff]  ;;  %v3399_v25 = vld [vmem:[%s6774_s29 + $0x70] sm:$0xff] }
 0x329   : > { %v4103_v19 = vadd.f32 %v4039_v18, %v3975_v11  ;;  %v4226_v52 = vadd.f32 %v4162_v31, %v4098_v39  ;;  %v4102_v22 = vadd.f32 %v4038_v34, %v8393_v3  ;;  %v8466_v16 = vpop.permute.xlu1 %3647  ;;  %v3903_v32 = vsel %vm3900_vm1, %v3841_v24, %v3873_v20  ;;  %4513 = vrot.lane.b32.xlu0 %v10071_v41, %s6453_s8  ;;  %v10073_v51 = vld [vmem:[#allocation79_spill] sm:$0xff]  ;;  %v10075_v26 = vld [vmem:[#allocation81_spill] sm:$0xff]  ;;  %v3462_v18 = vld [vmem:[%s6780_s11 + $0x68] sm:$0xff] }
 0x32a   : > { %v4228_v27 = vadd.f32 %v4164_v58, %v4100_v44  ;;  %v3951_v21 = vsel %vm3900_vm1, %v3873_v20, %v7997_v5  ;;  %v4225_v37 = vadd.f32 %v4161_v10, %v4097_v63  ;;  %v4167_v53 = vmul.f32 %v3919_v60, %v3523_v6  ;;  %v3398_v63 = vld [vmem:[%s6774_s29 + $0x68] sm:$0xff]  ;;  %v3461_v14 = vld [vmem:[%s6780_s11 + $0x60] sm:$0xff]  ;;  %v3400_v44 = vld [vmem:[%s6774_s29 + $0x78] sm:$0xff] }
 0x32b   : > { %v4104_v48 = vadd.f32 %v4040_v1, %v3976_v35  ;;  %v4168_v11 = vmul.f32 %v3903_v32, %v3524_v13  ;;  %v4165_v3 = vmul.f32 %v3951_v21, %v3521_v57  ;;  %v3743_v24 = vsel %vm3707_vm0, %v10073_v51, %v10072_v55  ;;  %4607 = vrot.lane.b32.xlu1 %v10070_v7, %s6454_s6  ;;  %v3402_v35 = vld [vmem:[%s6774_s29 + $0x88] sm:$0xff]  ;;  %v3403_v6 = vld [vmem:[%s6774_s29 + $0x90] sm:$0xff]  ;;  %v10078_v57 = vld [vmem:[#allocation38_spill] sm:$0xff] }
 0x32c   : > { %v5760_v31 = vpack.c.bf16 %v4228_v27, %v4227_v49  ;;  %v5759_v5 = vpack.c.bf16 %v4226_v52, %v4225_v37  ;;  %v4231_v28 = vadd.f32 %v4167_v53, %v4103_v19  ;;  %v8485_v39 = vpop.permute.xlu0 %3649  ;;  %v4230_v34 = vadd.f32 %v4166_v33, %v4102_v22  ;;  %v10076_v33 = vld [vmem:[#allocation35_spill] sm:$0xff]  ;;  %v10077_v13 = vld [vmem:[#allocation36_spill] sm:$0xff]  ;;  %v3404_v19 = vld [vmem:[%s6774_s29 + $0x98] sm:$0xff] }
 0x32d   : > { %v4232_v12 = vadd.f32 %v4168_v11, %v4104_v48  ;;  %v4229_v0 = vadd.f32 %v4165_v3, %v4101_v59  ;;  %v3744_v23 = vsel %vm3707_vm0, %v10075_v26, %v10074_v38  ;;  %v3727_v8 = vsel %vm3707_vm0, %v10072_v55, %v8466_v16  ;;  %v3843_v47 = vpop.permute.xlu1 %3842  ;;  %v3465_v59 = vld [vmem:[%s6780_s11 + $0x80] sm:$0xff]  ;;  %4609 = vrot.lane.b32.xlu0 %v10071_v41, %s6454_s6  ;;  %v10079_v20 = vld [vmem:[#allocation37_spill] sm:$0xff]  ;;  %v3464_v11 = vld [vmem:[%s6780_s11 + $0x78] sm:$0xff] }
 0x32e   : > { %4480 = vst [vmem:[%s8415_s28 + $0x18] sm:$0xff] %v5760_v31  ;;  %4479 = vst [vmem:[%s8415_s28 + $0x10] sm:$0xff] %v5759_v5  ;;  %v3977_v1 = vmul.f32 %v3397_v54, %v10076_v33  ;;  %v3981_v10 = vmul.f32 %v3401_v62, %v10077_v13  ;;  %v8508_v49 = vmul.f32 %v3402_v35, %v10078_v57  ;;  %v10080_v22 = vld [vmem:[#allocation75_spill] sm:$0xff]  ;;  %v3463_v48 = vld [vmem:[%s6780_s11 + $0x70] sm:$0xff] }
 0x32f   : > { %v5762_v60 = vpack.c.bf16 %v4232_v12, %v4231_v28  ;;  %v5761_v58 = vpack.c.bf16 %v4230_v34, %v4229_v0  ;;  %v3978_v52 = vmul.f32 %v3398_v63, %v10079_v20  ;;  %4543 = vrot.lane.b32.xlu1 %v10080_v22, %s6453_s8  ;;  %v4041_v27 = vmul.f32 %v3743_v24, %v3461_v14  ;;  %v10081_v21 = vld [vmem:[#allocation91_spill] sm:$0xff]  ;;  %v3526_v62 = vld [vmem:[%s6783_s19 + $0x68] sm:$0xff]  ;;  %v10083_v31 = vld [vmem:[#allocation93_spill] sm:$0xff] }
 0x330   : > { %v3979_v32 = vmul.f32 %v3399_v25, %v7823_v50  ;;  %v10082_v37 = vld [vmem:[#allocation83_spill] sm:$0xff]  ;;  %v3845_v3 = vpop.permute.xlu0 %3844  ;;  %v4042_v54 = vmul.f32 %v3727_v8, %v3462_v18  ;;  %v4045_v55 = vmul.f32 %v3744_v23, %v3465_v59  ;;  %v3980_v24 = vmul.f32 %v3400_v44, %v7825_v45  ;;  %v10084_v5 = vld [vmem:[#allocation85_spill] sm:$0xff]  ;;  %v3466_v12 = vld [vmem:[%s6780_s11 + $0x88] sm:$0xff] }
 0x331   : > { %v3936_v53 = vsel %vm3900_vm1, %v10082_v37, %v10081_v21  ;;  %4482 = vst [vmem:[%s8415_s28 + $0x28] sm:$0xff] %v5762_v60  ;;  %4481 = vst [vmem:[%s8415_s28 + $0x20] sm:$0xff] %v5761_v58  ;;  %v3983_v50 = vmul.f32 %v3403_v6, %v7831_v2  ;;  %v3937_v35 = vsel %vm3900_vm1, %v10084_v5, %v10083_v31  ;;  %v3680_v28 = vpop.permute.xlu1 %3679  ;;  %v3530_v0 = vld [vmem:[%s6783_s19 + $0x88] sm:$0xff]  ;;  %v3527_v34 = vld [vmem:[%s6783_s19 + $0x70] sm:$0xff] }
 0x332   : > { %v3728_v63 = vsel %vm3707_vm0, %v10074_v38, %v8485_v39  ;;  %v3984_v45 = vmul.f32 %v3404_v19, %v7841_v30  ;;  %v3920_v2 = vsel %vm3900_vm1, %v10081_v21, %v3843_v47  ;;  %v3711_v14 = vsel %vm3707_vm0, %v8466_v16, %v3680_v28  ;;  %v10085_v38 = vld [vmem:[#allocation77_spill] sm:$0xff]  ;;  %v3468_v18 = vld [vmem:[%s6780_s11 + $0x98] sm:$0xff]  ;;  %v3525_v16 = vld [vmem:[%s6783_s19 + $0x60] sm:$0xff] }
 0x333   : > { %v3759_v25 = vsel %vm3707_vm0, %v3680_v28, %v10073_v51  ;;  %4545 = vrot.lane.b32.xlu0 %v10085_v38, %s6453_s8  ;;  %v4043_v23 = vmul.f32 %v3711_v14, %v3463_v48  ;;  %4639 = vrot.lane.b32.xlu1 %v10080_v22, %s6454_s6  ;;  %v3467_v30 = vld [vmem:[%s6780_s11 + $0x90] sm:$0xff]  ;;  %v4105_v59 = vadd.f32 %v4041_v27, %v3977_v1  ;;  %v3528_v44 = vld [vmem:[%s6783_s19 + $0x78] sm:$0xff] }
 0x334   : > { %v4044_v8 = vmul.f32 %v3759_v25, %v3464_v11  ;;  %v4170_v33 = vmul.f32 %v3936_v53, %v3526_v62  ;;  %v3682_v6 = vpop.permute.xlu0 %3681  ;;  %v4106_v60 = vadd.f32 %v4042_v54, %v3978_v52  ;;  %v4046_v58 = vmul.f32 %v3728_v63, %v3466_v12  ;;  %v3531_v48 = vld [vmem:[%s6783_s19 + $0x90] sm:$0xff]  ;;  %v3529_v62 = vld [vmem:[%s6783_s19 + $0x80] sm:$0xff]  ;;  %v10087_v25 = vld [vmem:[#allocation82_spill] sm:$0xff] }
 0x335   : > { %v4109_v13 = vadd.f32 %v4045_v55, %v3981_v10  ;;  %v4174_v51 = vmul.f32 %v3937_v35, %v3530_v0  ;;  %v4171_v57 = vmul.f32 %v3920_v2, %v3527_v34  ;;  %v4107_v19 = vadd.f32 %v4043_v23, %v3979_v32  ;;  %v3875_v20 = vpop.permute.xlu1 %3874  ;;  %v3405_v23 = vld [vmem:[%s6774_s29 + $0xa0] sm:$0xff] }
 0x336   : > { %v3712_v21 = vsel %vm3707_vm0, %v8485_v39, %v3682_v6  ;;  %v3760_v1 = vsel %vm3707_vm0, %v3682_v6, %v10075_v26  ;;  %v3904_v52 = vsel %vm3900_vm1, %v3843_v47, %v3875_v20  ;;  %v3952_v10 = vsel %vm3900_vm1, %v3875_v20, %v10082_v37  ;;  %v10086_v26 = vld [vmem:[#allocation78_spill] sm:$0xff]  ;;  %v10090_v20 = vld [vmem:[#allocation105_spill] sm:$0xff] }
 0x337   : > { %v4047_v27 = vmul.f32 %v3712_v21, %v3467_v30  ;;  %v4048_v53 = vmul.f32 %v3760_v1, %v3468_v18  ;;  %4641 = vrot.lane.b32.xlu0 %v10085_v38, %s6454_s6  ;;  %v4108_v32 = vadd.f32 %v4044_v8, %v3980_v24  ;;  %v3921_v39 = vsel %vm3900_vm1, %v10083_v31, %v3845_v3  ;;  %v3532_v47 = vld [vmem:[%s6783_s19 + $0x98] sm:$0xff]  ;;  %v3409_v8 = vld [vmem:[%s6774_s29 + $0xc0] sm:$0xff]  ;;  %v10091_v21 = vld [vmem:[#allocation97_spill] sm:$0xff] }
 0x338   : > { %v4172_v11 = vmul.f32 %v3904_v52, %v3528_v44  ;;  %4515 = vrot.lane.b32.xlu1 %v10086_v26, %s6453_s8  ;;  %v4169_v54 = vmul.f32 %v3952_v10, %v3525_v16  ;;  %v4235_v37 = vadd.f32 %v4171_v57, %v4107_v19  ;;  %v3877_v35 = vpop.permute.xlu0 %3876  ;;  %v4234_v63 = vadd.f32 %v4170_v33, %v4106_v60  ;;  %v10088_v30 = vld [vmem:[#allocation103_spill] sm:$0xff]  ;;  %v3407_v19 = vld [vmem:[%s6774_s29 + $0xb0] sm:$0xff] }
 0x339   : > { %v4111_v55 = vadd.f32 %v4047_v27, %v3983_v50  ;;  %v4110_v24 = vadd.f32 %v4046_v58, %v8508_v49  ;;  %v8577_v12 = vpop.permute.xlu1 %3651  ;;  %v3905_v31 = vsel %vm3900_vm1, %v3845_v3, %v3877_v35  ;;  %v3953_v0 = vsel %vm3900_vm1, %v3877_v35, %v10084_v5  ;;  %v10089_v18 = vld [vmem:[#allocation95_spill] sm:$0xff]  ;;  %v3470_v27 = vld [vmem:[%s6780_s11 + $0xa8] sm:$0xff]  ;;  %v10095_v35 = vld [vmem:[#allocation41_spill] sm:$0xff] }
 0x33a   : > { %v4236_v28 = vadd.f32 %v4172_v11, %v4108_v32  ;;  %v4233_v34 = vadd.f32 %v4169_v54, %v4105_v59  ;;  %v4175_v2 = vmul.f32 %v3921_v39, %v3531_v48  ;;  %v4112_v14 = vadd.f32 %v4048_v53, %v3984_v45  ;;  %v3410_v45 = vld [vmem:[%s6774_s29 + $0xc8] sm:$0xff]  ;;  %v3469_v57 = vld [vmem:[%s6780_s11 + $0xa0] sm:$0xff]  ;;  %v3408_v32 = vld [vmem:[%s6774_s29 + $0xb8] sm:$0xff] }
 0x33b   : > { %v4176_v50 = vmul.f32 %v3905_v31, %v3532_v47  ;;  %4517 = vrot.lane.b32.xlu0 %v10087_v25, %s6453_s8  ;;  %v4173_v49 = vmul.f32 %v3953_v0, %v3529_v62  ;;  %v3745_v3 = vsel %vm3707_vm0, %v10089_v18, %v10088_v30  ;;  %v3406_v59 = vld [vmem:[%s6774_s29 + $0xa8] sm:$0xff]  ;;  %v4238_v58 = vadd.f32 %v4174_v51, %v4110_v24  ;;  %v10092_v51 = vld [vmem:[#allocation39_spill] sm:$0xff]  ;;  %v3411_v48 = vld [vmem:[%s6774_s29 + $0xd0] sm:$0xff] }
 0x33c   : > { %v5764_v33 = vpack.c.bf16 %v4236_v28, %v4235_v37  ;;  %4611 = vrot.lane.b32.xlu1 %v10086_v26, %s6454_s6  ;;  %v5763_v5 = vpack.c.bf16 %v4234_v63, %v4233_v34  ;;  %v4239_v44 = vadd.f32 %v4175_v2, %v4111_v55  ;;  %v8596_v60 = vpop.permute.xlu0 %3653  ;;  %v3746_v1 = vsel %vm3707_vm0, %v10091_v21, %v10090_v20  ;;  %v10093_v47 = vld [vmem:[#allocation40_spill] sm:$0xff]  ;;  %v10094_v62 = vld [vmem:[#allocation42_spill] sm:$0xff]  ;;  %v10097_v0 = vld [vmem:[#allocation107_spill] sm:$0xff] }
 0x33d   : > { %v4240_v6 = vadd.f32 %v4176_v50, %v4112_v14  ;;  %v4237_v16 = vadd.f32 %v4173_v49, %v4109_v13  ;;  %v3729_v52 = vsel %vm3707_vm0, %v10088_v30, %v8577_v12  ;;  %v3847_v10 = vpop.permute.xlu1 %3846  ;;  %v3473_v13 = vld [vmem:[%s6780_s11 + $0xc0] sm:$0xff]  ;;  %v3985_v53 = vmul.f32 %v3405_v23, %v10092_v51  ;;  %v3412_v55 = vld [vmem:[%s6774_s29 + $0xd8] sm:$0xff]  ;;  %v10096_v24 = vld [vmem:[#allocation80_spill] sm:$0xff] }
 0x33e   : > { %4484 = vst [vmem:[%s8415_s28 + $0x38] sm:$0xff] %v5764_v33  ;;  %4483 = vst [vmem:[%s8415_s28 + $0x30] sm:$0xff] %v5763_v5  ;;  %v3989_v54 = vmul.f32 %v3409_v8, %v10093_v47  ;;  %v8619_v37 = vmul.f32 %v3410_v45, %v10094_v62  ;;  %v3986_v63 = vmul.f32 %v3406_v59, %v10095_v35  ;;  %v10098_v34 = vld [vmem:[#allocation99_spill] sm:$0xff]  ;;  %v3471_v14 = vld [vmem:[%s6780_s11 + $0xb0] sm:$0xff] }
 0x33f   : > { %v5766_v39 = vpack.c.bf16 %v4240_v6, %v4239_v44  ;;  %4613 = vrot.lane.b32.xlu0 %v10087_v25, %s6454_s6  ;;  %v5765_v11 = vpack.c.bf16 %v4238_v58, %v4237_v16  ;;  %v4049_v28 = vmul.f32 %v3745_v3, %v3469_v57  ;;  %v3987_v31 = vmul.f32 %v3407_v19, %v7847_v40  ;;  %v3472_v50 = vld [vmem:[%s6780_s11 + $0xb8] sm:$0xff]  ;;  %v3534_v8 = vld [vmem:[%s6783_s19 + $0xa8] sm:$0xff]  ;;  %v10099_v33 = vld [vmem:[#allocation109_spill] sm:$0xff] }
 0x340   : > { %4547 = vrot.lane.b32.xlu1 %v10096_v24, %s6453_s8  ;;  %v3938_v2 = vsel %vm3900_vm1, %v10098_v34, %v10097_v0  ;;  %v3849_v49 = vpop.permute.xlu0 %3848  ;;  %v4050_v23 = vmul.f32 %v3729_v52, %v3470_v27  ;;  %v4053_v30 = vmul.f32 %v3746_v1, %v3473_v13  ;;  %v3988_v3 = vmul.f32 %v3408_v32, %v7849_v15  ;;  %v10100_v5 = vld [vmem:[#allocation101_spill] sm:$0xff]  ;;  %v3474_v6 = vld [vmem:[%s6780_s11 + $0xc8] sm:$0xff]  ;;  %v3476_v27 = vld [vmem:[%s6780_s11 + $0xd8] sm:$0xff] }
 0x341   : > { %4486 = vst [vmem:[%s8415_s28 + $0x48] sm:$0xff] %v5766_v39  ;;  %4485 = vst [vmem:[%s8415_s28 + $0x40] sm:$0xff] %v5765_v11  ;;  %v3991_v40 = vmul.f32 %v3411_v48, %v7855_v4  ;;  %v3939_v45 = vsel %vm3900_vm1, %v10100_v5, %v10099_v33  ;;  %v3730_v59 = vsel %vm3707_vm0, %v10090_v20, %v8596_v60  ;;  %v3684_v44 = vpop.permute.xlu1 %3683  ;;  %v3538_v16 = vld [vmem:[%s6783_s19 + $0xc8] sm:$0xff]  ;;  %v3535_v58 = vld [vmem:[%s6783_s19 + $0xb0] sm:$0xff] }
 0x342   : > { %v3992_v15 = vmul.f32 %v3412_v55, %v7865_v9  ;;  %v3922_v4 = vsel %vm3900_vm1, %v10097_v0, %v3847_v10  ;;  %v3713_v57 = vsel %vm3707_vm0, %v8577_v12, %v3684_v44  ;;  %v3761_v19 = vsel %vm3707_vm0, %v3684_v44, %v10089_v18  ;;  %v10101_v20 = vld [vmem:[#allocation84_spill] sm:$0xff]  ;;  %v3475_v9 = vld [vmem:[%s6780_s11 + $0xd0] sm:$0xff]  ;;  %v3536_v32 = vld [vmem:[%s6783_s19 + $0xb8] sm:$0xff] }
 0x343   : > { %4549 = vrot.lane.b32.xlu0 %v10101_v20, %s6453_s8  ;;  %v4051_v1 = vmul.f32 %v3713_v57, %v3471_v14  ;;  %v4052_v52 = vmul.f32 %v3761_v19, %v3472_v50  ;;  %v4113_v13 = vadd.f32 %v4049_v28, %v3985_v53  ;;  %v4178_v51 = vmul.f32 %v3938_v2, %v3534_v8  ;;  %v3533_v12 = vld [vmem:[%s6783_s19 + $0xa0] sm:$0xff]  ;;  %v3539_v14 = vld [vmem:[%s6783_s19 + $0xd0] sm:$0xff] }
 0x344   : > { %4643 = vrot.lane.b32.xlu1 %v10096_v24, %s6454_s6  ;;  %v3686_v48 = vpop.permute.xlu0 %3685  ;;  %v4114_v39 = vadd.f32 %v4050_v23, %v3986_v63  ;;  %v4054_v11 = vmul.f32 %v3730_v59, %v3474_v6  ;;  %v4117_v47 = vadd.f32 %v4053_v30, %v3989_v54  ;;  %v4182_v18 = vmul.f32 %v3939_v45, %v3538_v16  ;;  %v3540_v23 = vld [vmem:[%s6783_s19 + $0xd8] sm:$0xff] }
 0x345   : > { %v4179_v62 = vmul.f32 %v3922_v4, %v3535_v58  ;;  %v4115_v55 = vadd.f32 %v4051_v1, %v3987_v31  ;;  %v3879_v35 = vpop.permute.xlu1 %3878  ;;  %v3714_v0 = vsel %vm3707_vm0, %v8596_v60, %v3686_v48  ;;  %v3762_v53 = vsel %vm3707_vm0, %v3686_v48, %v10091_v21  ;;  %v10102_v21 = vld [vmem:[#allocation86_spill] sm:$0xff]  ;;  %v3413_v1 = vld [vmem:[%s6774_s29 + $0xe0] sm:$0xff] }
 0x346   : > { %v3906_v63 = vsel %vm3900_vm1, %v3847_v10, %v3879_v35  ;;  %v3954_v54 = vsel %vm3900_vm1, %v3879_v35, %v10098_v34  ;;  %v4055_v28 = vmul.f32 %v3714_v0, %v3475_v9  ;;  %v4056_v2 = vmul.f32 %v3762_v53, %v3476_v27  ;;  %v3537_v10 = vld [vmem:[%s6783_s19 + $0xc0] sm:$0xff]  ;;  %v10106_v35 = vld [vmem:[#allocation121_spill] sm:$0xff] }
 0x347   : > { %4645 = vrot.lane.b32.xlu0 %v10101_v20, %s6454_s6  ;;  %v4116_v31 = vadd.f32 %v4052_v52, %v3988_v3  ;;  %v3923_v60 = vsel %vm3900_vm1, %v10099_v33, %v3849_v49  ;;  %v4180_v50 = vmul.f32 %v3906_v63, %v3536_v32  ;;  %v4177_v8 = vmul.f32 %v3954_v54, %v3533_v12  ;;  %v3417_v52 = vld [vmem:[%s6774_s29 + $0x100] sm:$0xff]  ;;  %v10107_v0 = vld [vmem:[#allocation113_spill] sm:$0xff] }
 0x348   : > { %4519 = vrot.lane.b32.xlu1 %v10102_v21, %s6453_s8  ;;  %v4243_v34 = vadd.f32 %v4179_v62, %v4115_v55  ;;  %v4119_v30 = vadd.f32 %v4055_v28, %v3991_v40  ;;  %v3881_v45 = vpop.permute.xlu0 %3880  ;;  %v4242_v59 = vadd.f32 %v4178_v51, %v4114_v39  ;;  %v4118_v3 = vadd.f32 %v4054_v11, %v8619_v37  ;;  %v10103_v37 = vld [vmem:[#allocation90_spill] sm:$0xff]  ;;  %v10104_v9 = vld [vmem:[#allocation119_spill] sm:$0xff]  ;;  %v3415_v55 = vld [vmem:[%s6774_s29 + $0xf0] sm:$0xff] }
 0x349   : > { %v4244_v44 = vadd.f32 %v4180_v50, %v4116_v31  ;;  %v8688_v6 = vpop.permute.xlu1 %3655  ;;  %v3907_v33 = vsel %vm3900_vm1, %v3849_v49, %v3881_v45  ;;  %v3955_v16 = vsel %vm3900_vm1, %v3881_v45, %v10100_v5  ;;  %v4241_v58 = vadd.f32 %v4177_v8, %v4113_v13  ;;  %v10105_v27 = vld [vmem:[#allocation111_spill] sm:$0xff]  ;;  %v3414_v13 = vld [vmem:[%s6774_s29 + $0xe8] sm:$0xff]  ;;  %v3416_v31 = vld [vmem:[%s6774_s29 + $0xf8] sm:$0xff] }
 0x34a   : > { %v4183_v4 = vmul.f32 %v3923_v60, %v3539_v14  ;;  %v4120_v57 = vadd.f32 %v4056_v2, %v3992_v15  ;;  %v4181_v40 = vmul.f32 %v3955_v16, %v3537_v10  ;;  %v4184_v19 = vmul.f32 %v3907_v33, %v3540_v23  ;;  %v3418_v15 = vld [vmem:[%s6774_s29 + $0x108] sm:$0xff]  ;;  %v3477_v62 = vld [vmem:[%s6780_s11 + $0xe0] sm:$0xff]  ;;  %v3419_v14 = vld [vmem:[%s6774_s29 + $0x110] sm:$0xff] }
 0x34b   : > { %4521 = vrot.lane.b32.xlu0 %v10103_v37, %s6453_s8  ;;  %v3747_v49 = vsel %vm3707_vm0, %v10105_v27, %v10104_v9  ;;  %v5768_v51 = vpack.c.bf16 %v4244_v44, %v4243_v34  ;;  %v5767_v5 = vpack.c.bf16 %v4242_v59, %v4241_v58  ;;  %v4246_v11 = vadd.f32 %v4182_v18, %v4118_v3  ;;  %v3478_v28 = vld [vmem:[%s6780_s11 + $0xe8] sm:$0xff]  ;;  %v10108_v18 = vld [vmem:[#allocation43_spill] sm:$0xff]  ;;  %v10111_v45 = vld [vmem:[#allocation46_spill] sm:$0xff] }
 0x34c   : > { %4615 = vrot.lane.b32.xlu1 %v10102_v21, %s6454_s6  ;;  %v4247_v32 = vadd.f32 %v4183_v4, %v4119_v30  ;;  %v4248_v48 = vadd.f32 %v4184_v19, %v4120_v57  ;;  %v8707_v39 = vpop.permute.xlu0 %3657  ;;  %v4245_v12 = vadd.f32 %v4181_v40, %v4117_v47  ;;  %v3748_v53 = vsel %vm3707_vm0, %v10107_v0, %v10106_v35  ;;  %v3481_v47 = vld [vmem:[%s6780_s11 + $0x100] sm:$0xff]  ;;  %v10109_v10 = vld [vmem:[#allocation44_spill] sm:$0xff]  ;;  %v3420_v30 = vld [vmem:[%s6774_s29 + $0x118] sm:$0xff] }
 0x34d   : > { %4488 = vst [vmem:[%s8415_s28 + $0x58] sm:$0xff] %v5768_v51  ;;  %v3731_v63 = vsel %vm3707_vm0, %v10104_v9, %v8688_v6  ;;  %v3851_v54 = vpop.permute.xlu1 %3850  ;;  %4487 = vst [vmem:[%s8415_s28 + $0x50] sm:$0xff] %v5767_v5  ;;  %v3993_v2 = vmul.f32 %v3413_v1, %v10108_v18  ;;  %v3997_v23 = vmul.f32 %v3417_v52, %v10109_v10  ;;  %v10110_v8 = vld [vmem:[#allocation47_spill] sm:$0xff]  ;;  %v10112_v3 = vld [vmem:[#allocation88_spill] sm:$0xff] }
 0x34e   : > { %v5770_v60 = vpack.c.bf16 %v4248_v48, %v4247_v32  ;;  %v5769_v50 = vpack.c.bf16 %v4246_v11, %v4245_v12  ;;  %v3998_v34 = vmul.f32 %v3418_v15, %v10110_v8  ;;  %v3994_v59 = vmul.f32 %v3414_v13, %v10111_v45  ;;  %v10113_v33 = vld [vmem:[#allocation54_spill] sm:$0xff]  ;;  %v10114_v58 = vld [vmem:[#allocation123_spill] sm:$0xff]  ;;  %v3479_v40 = vld [vmem:[%s6780_s11 + $0xf0] sm:$0xff] }
 0x34f   : > { %4617 = vrot.lane.b32.xlu0 %v10103_v37, %s6454_s6  ;;  %v4057_v44 = vmul.f32 %v3747_v49, %v3477_v62  ;;  %v3995_v16 = vmul.f32 %v3415_v55, %v10113_v33  ;;  %v10115_v4 = vld [vmem:[#allocation115_spill] sm:$0xff]  ;;  %v3480_v19 = vld [vmem:[%s6780_s11 + $0xf8] sm:$0xff]  ;;  %v4058_v52 = vmul.f32 %v3731_v63, %v3478_v28  ;;  %v3542_v9 = vld [vmem:[%s6783_s19 + $0xe8] sm:$0xff]  ;;  %v4061_v51 = vmul.f32 %v3748_v53, %v3481_v47 }
 0x350   : > { %4551 = vrot.lane.b32.xlu1 %v10112_v3, %s6453_s8  ;;  %v3940_v57 = vsel %vm3900_vm1, %v10115_v4, %v10114_v58  ;;  %4490 = vst [vmem:[%s8415_s28 + $0x68] sm:$0xff] %v5770_v60  ;;  %v3853_v1 = vpop.permute.xlu0 %3852  ;;  %4489 = vst [vmem:[%s8415_s28 + $0x60] sm:$0xff] %v5769_v50  ;;  %v3996_v5 = vmul.f32 %v3416_v31, %v7873_v46  ;;  %v10116_v49 = vld [vmem:[#allocation55_spill] sm:$0xff]  ;;  %v10117_v13 = vld [vmem:[#allocation125_spill] sm:$0xff]  ;;  %v3732_v11 = vsel %vm3707_vm0, %v10106_v35, %v8707_v39 }
 0x351   : > { %v3999_v15 = vmul.f32 %v3419_v14, %v10116_v49  ;;  %v10118_v32 = vld [vmem:[#allocation117_spill] sm:$0xff]  ;;  %v3482_v12 = vld [vmem:[%s6780_s11 + $0x108] sm:$0xff]  ;;  %v3688_v62 = vpop.permute.xlu1 %3687  ;;  %v4000_v46 = vmul.f32 %v3420_v30, %v7889_v29  ;;  %v3924_v63 = vsel %vm3900_vm1, %v10114_v58, %v3851_v54  ;;  %v3484_v14 = vld [vmem:[%s6780_s11 + $0x118] sm:$0xff]  ;;  %v4121_v60 = vadd.f32 %v4057_v44, %v3993_v2 }
 0x352   : > { %v3941_v48 = vsel %vm3900_vm1, %v10118_v32, %v10117_v13  ;;  %v3546_v55 = vld [vmem:[%s6783_s19 + $0x108] sm:$0xff]  ;;  %v3543_v53 = vld [vmem:[%s6783_s19 + $0xf0] sm:$0xff]  ;;  %v3715_v28 = vsel %vm3707_vm0, %v8688_v6, %v3688_v62  ;;  %v3763_v47 = vsel %vm3707_vm0, %v3688_v62, %v10105_v27  ;;  %v4186_v50 = vmul.f32 %v3940_v57, %v3542_v9  ;;  %v3541_v8 = vld [vmem:[%s6783_s19 + $0xe0] sm:$0xff] }
 0x353   : > { %v10119_v35 = vld [vmem:[#allocation92_spill] sm:$0xff]  ;;  %v4059_v18 = vmul.f32 %v3715_v28, %v3479_v40  ;;  %v4060_v31 = vmul.f32 %v3763_v47, %v3480_v19  ;;  %v3483_v29 = vld [vmem:[%s6780_s11 + $0x110] sm:$0xff]  ;;  %v4062_v10 = vmul.f32 %v3732_v11, %v3482_v12  ;;  %v3544_v30 = vld [vmem:[%s6783_s19 + $0xf8] sm:$0xff]  ;;  %v4122_v45 = vadd.f32 %v4058_v52, %v3994_v59 }
 0x354   : > { %4553 = vrot.lane.b32.xlu0 %v10119_v35, %s6453_s8  ;;  %4647 = vrot.lane.b32.xlu1 %v10112_v3, %s6454_s6  ;;  %v3690_v6 = vpop.permute.xlu0 %3689  ;;  %v4125_v33 = vadd.f32 %v4061_v51, %v3997_v23  ;;  %v4190_v27 = vmul.f32 %v3941_v48, %v3546_v55  ;;  %v4187_v58 = vmul.f32 %v3924_v63, %v3543_v53  ;;  %v3547_v52 = vld [vmem:[%s6783_s19 + $0x110] sm:$0xff]  ;;  %v10120_v51 = vld [vmem:[#allocation94_spill] sm:$0xff] }
 0x355   : > { %v4123_v49 = vadd.f32 %v4059_v18, %v3995_v16  ;;  %v3883_v40 = vpop.permute.xlu1 %3882  ;;  %v3716_v19 = vsel %vm3707_vm0, %v8707_v39, %v3690_v6  ;;  %v3764_v2 = vsel %vm3707_vm0, %v3690_v6, %v10107_v0  ;;  %v4124_v16 = vadd.f32 %v4060_v31, %v3996_v5  ;;  %v3548_v48 = vld [vmem:[%s6783_s19 + $0x118] sm:$0xff] }
 0x356   : > { %v3908_v44 = vsel %vm3900_vm1, %v3851_v54, %v3883_v40  ;;  %v3956_v23 = vsel %vm3900_vm1, %v3883_v40, %v10115_v4  ;;  %v4063_v59 = vmul.f32 %v3716_v19, %v3483_v29  ;;  %v4064_v57 = vmul.f32 %v3764_v2, %v3484_v14  ;;  %v3545_v54 = vld [vmem:[%s6783_s19 + $0x100] sm:$0xff]  ;;  %v10121_v31 = vld [vmem:[#allocation98_spill] sm:$0xff]  ;;  %v3422_v14 = vld [vmem:[%s6774_s29 + $0x128] sm:$0xff] }
 0x357   : > { %v3925_v39 = vsel %vm3900_vm1, %v10117_v13, %v3853_v1  ;;  %v4185_v9 = vmul.f32 %v3956_v23, %v3541_v8  ;;  %v4188_v0 = vmul.f32 %v3908_v44, %v3544_v30  ;;  %v4126_v4 = vadd.f32 %v4062_v10, %v3998_v34  ;;  %v3421_v29 = vld [vmem:[%s6774_s29 + $0x120] sm:$0xff]  ;;  %v3426_v8 = vld [vmem:[%s6774_s29 + $0x148] sm:$0xff]  ;;  %v3423_v19 = vld [vmem:[%s6774_s29 + $0x130] sm:$0xff] }
 0x358   : > { %4649 = vrot.lane.b32.xlu0 %v10119_v35, %s6454_s6  ;;  %4523 = vrot.lane.b32.xlu1 %v10120_v51, %s6453_s8  ;;  %v4251_v12 = vadd.f32 %v4187_v58, %v4123_v49  ;;  %v4127_v11 = vadd.f32 %v4063_v59, %v3999_v15  ;;  %v3885_v62 = vpop.permute.xlu0 %3884  ;;  %v4250_v55 = vadd.f32 %v4186_v50, %v4122_v45  ;;  %v10122_v50 = vld [vmem:[#allocation132_spill] sm:$0xff]  ;;  %v10123_v10 = vld [vmem:[#allocation127_spill] sm:$0xff]  ;;  %v10124_v2 = vld [vmem:[#allocation133_spill] sm:$0xff] }
 0x359   : > { %v4252_v5 = vadd.f32 %v4188_v0, %v4124_v16  ;;  %v8796_v53 = vpop.permute.xlu1 %3659  ;;  %v3909_v13 = vsel %vm3900_vm1, %v3853_v1, %v3885_v62  ;;  %v3957_v63 = vsel %vm3900_vm1, %v3885_v62, %v10118_v32  ;;  %v4249_v28 = vadd.f32 %v4185_v9, %v4121_v60  ;;  %v3425_v60 = vld [vmem:[%s6774_s29 + $0x140] sm:$0xff]  ;;  %v10125_v44 = vld [vmem:[#allocation129_spill] sm:$0xff]  ;;  %v3486_v59 = vld [vmem:[%s6780_s11 + $0x128] sm:$0xff] }
 0x35a   : > { %v4191_v47 = vmul.f32 %v3925_v39, %v3547_v52  ;;  %v4128_v34 = vadd.f32 %v4064_v57, %v4000_v46  ;;  %v4189_v18 = vmul.f32 %v3957_v63, %v3545_v54  ;;  %v4192_v15 = vmul.f32 %v3909_v13, %v3548_v48  ;;  %v3485_v40 = vld [vmem:[%s6780_s11 + $0x120] sm:$0xff]  ;;  %v3424_v39 = vld [vmem:[%s6774_s29 + $0x138] sm:$0xff]  ;;  %v3427_v9 = vld [vmem:[%s6774_s29 + $0x150] sm:$0xff] }
 0x35b   : > { %v3749_v1 = vsel %vm3707_vm0, %v10123_v10, %v10122_v50  ;;  %v5772_v32 = vpack.c.bf16 %v4252_v5, %v4251_v12  ;;  %v5771_v46 = vpack.c.bf16 %v4250_v55, %v4249_v28  ;;  %v4254_v49 = vadd.f32 %v4190_v27, %v4126_v4  ;;  %v3489_v52 = vld [vmem:[%s6780_s11 + $0x140] sm:$0xff]  ;;  %v10127_v48 = vld [vmem:[#allocation50_spill] sm:$0xff]  ;;  %v10128_v12 = vld [vmem:[#allocation49_spill] sm:$0xff] }
 0x35c   : > { %4525 = vrot.lane.b32.xlu0 %v10121_v31, %s6453_s8  ;;  %4619 = vrot.lane.b32.xlu1 %v10120_v51, %s6454_s6  ;;  %v4255_v30 = vadd.f32 %v4191_v47, %v4127_v11  ;;  %v4256_v6 = vadd.f32 %v4192_v15, %v4128_v34  ;;  %v8815_v45 = vpop.permute.xlu0 %3661  ;;  %v4253_v58 = vadd.f32 %v4189_v18, %v4125_v33  ;;  %v10126_v33 = vld [vmem:[#allocation48_spill] sm:$0xff]  ;;  %v10129_v62 = vld [vmem:[#allocation51_spill] sm:$0xff]  ;;  %v3428_v5 = vld [vmem:[%s6774_s29 + $0x158] sm:$0xff] }
 0x35d   : > { %v3750_v23 = vsel %vm3707_vm0, %v10125_v44, %v10124_v2  ;;  %4492 = vst [vmem:[%s8415_s28 + $0x78] sm:$0xff] %v5772_v32  ;;  %v3733_v57 = vsel %vm3707_vm0, %v10122_v50, %v8796_v53  ;;  %v3855_v16 = vpop.permute.xlu1 %3854  ;;  %4491 = vst [vmem:[%s8415_s28 + $0x70] sm:$0xff] %v5771_v46  ;;  %v4001_v27 = vmul.f32 %v3421_v29, %v10126_v33  ;;  %v10130_v13 = vld [vmem:[#allocation96_spill] sm:$0xff]  ;;  %v10131_v28 = vld [vmem:[#allocation58_spill] sm:$0xff] }
 0x35e   : > { %v5774_v0 = vpack.c.bf16 %v4256_v6, %v4255_v30  ;;  %v5773_v54 = vpack.c.bf16 %v4254_v49, %v4253_v58  ;;  %v4002_v4 = vmul.f32 %v3422_v14, %v10127_v48  ;;  %v4005_v11 = vmul.f32 %v3425_v60, %v10128_v12  ;;  %v10132_v34 = vld [vmem:[#allocation134_spill] sm:$0xff]  ;;  %v3487_v14 = vld [vmem:[%s6780_s11 + $0x130] sm:$0xff]  ;;  %v3550_v46 = vld [vmem:[%s6783_s19 + $0x128] sm:$0xff] }
 0x35f   : > { %v4006_v55 = vmul.f32 %v3426_v8, %v10129_v62  ;;  %v4065_v63 = vmul.f32 %v3749_v1, %v3485_v40  ;;  %v4003_v47 = vmul.f32 %v3423_v19, %v10131_v28  ;;  %v10133_v18 = vld [vmem:[#allocation130_spill] sm:$0xff]  ;;  %v4066_v29 = vmul.f32 %v3733_v57, %v3486_v59  ;;  %v10134_v8 = vld [vmem:[#allocation59_spill] sm:$0xff]  ;;  %v10135_v1 = vld [vmem:[#allocation60_spill] sm:$0xff] }
 0x360   : > { %4621 = vrot.lane.b32.xlu0 %v10121_v31, %s6454_s6  ;;  %4555 = vrot.lane.b32.xlu1 %v10130_v13, %s6453_s8  ;;  %v3942_v15 = vsel %vm3900_vm1, %v10133_v18, %v10132_v34  ;;  %4494 = vst [vmem:[%s8415_s28 + $0x88] sm:$0xff] %v5774_v0  ;;  %v3488_v50 = vld [vmem:[%s6780_s11 + $0x138] sm:$0xff]  ;;  %v3857_v32 = vpop.permute.xlu0 %3856  ;;  %v4069_v60 = vmul.f32 %v3750_v23, %v3489_v52  ;;  %v10136_v58 = vld [vmem:[#allocation135_spill] sm:$0xff] }
 0x361   : > { %4493 = vst [vmem:[%s8415_s28 + $0x80] sm:$0xff] %v5773_v54  ;;  %v4004_v30 = vmul.f32 %v3424_v39, %v10134_v8  ;;  %v4007_v6 = vmul.f32 %v3427_v9, %v10135_v1  ;;  %v10137_v49 = vld [vmem:[#allocation131_spill] sm:$0xff]  ;;  %v3490_v19 = vld [vmem:[%s6780_s11 + $0x148] sm:$0xff]  ;;  %v3734_v59 = vsel %vm3707_vm0, %v10124_v2, %v8815_v45  ;;  %v3692_v57 = vpop.permute.xlu1 %3691  ;;  %v3551_v39 = vld [vmem:[%s6783_s19 + $0x130] sm:$0xff]  ;;  %v3926_v9 = vsel %vm3900_vm1, %v10132_v34, %v3855_v16 }
 0x362   : > { %v3943_v40 = vsel %vm3900_vm1, %v10137_v49, %v10136_v58  ;;  %v3554_v33 = vld [vmem:[%s6783_s19 + $0x148] sm:$0xff]  ;;  %v10138_v23 = vld [vmem:[#allocation63_spill] sm:$0xff]  ;;  %v3717_v0 = vsel %vm3707_vm0, %v8796_v53, %v3692_v57  ;;  %v3765_v54 = vsel %vm3707_vm0, %v3692_v57, %v10123_v10  ;;  %v3491_v62 = vld [vmem:[%s6780_s11 + $0x150] sm:$0xff]  ;;  %v4129_v28 = vadd.f32 %v4065_v63, %v4001_v27 }
 0x363   : > { %v4008_v52 = vmul.f32 %v3428_v5, %v10138_v23  ;;  %v10139_v2 = vld [vmem:[#allocation100_spill] sm:$0xff]  ;;  %v4067_v48 = vmul.f32 %v3717_v0, %v3487_v14  ;;  %v4068_v12 = vmul.f32 %v3765_v54, %v3488_v50  ;;  %v3492_v5 = vld [vmem:[%s6780_s11 + $0x158] sm:$0xff]  ;;  %v4194_v34 = vmul.f32 %v3942_v15, %v3550_v46  ;;  %v3549_v23 = vld [vmem:[%s6783_s19 + $0x120] sm:$0xff] }
 0x364   : > { %4557 = vrot.lane.b32.xlu0 %v10139_v2, %s6453_s8  ;;  %4651 = vrot.lane.b32.xlu1 %v10130_v13, %s6454_s6  ;;  %v4130_v8 = vadd.f32 %v4066_v29, %v4002_v4  ;;  %v4070_v1 = vmul.f32 %v3734_v59, %v3490_v19  ;;  %v3552_v53 = vld [vmem:[%s6783_s19 + $0x138] sm:$0xff]  ;;  %v3694_v31 = vpop.permute.xlu0 %3693  ;;  %v4133_v51 = vadd.f32 %v4069_v60, %v4005_v11  ;;  %v3555_v29 = vld [vmem:[%s6783_s19 + $0x150] sm:$0xff] }
 0x365   : > { %v4198_v10 = vmul.f32 %v3943_v40, %v3554_v33  ;;  %v4195_v57 = vmul.f32 %v3926_v9, %v3551_v39  ;;  %v4131_v35 = vadd.f32 %v4067_v48, %v4003_v47  ;;  %v3887_v14 = vpop.permute.xlu1 %3886  ;;  %v3718_v50 = vsel %vm3707_vm0, %v8815_v45, %v3694_v31  ;;  %v3556_v60 = vld [vmem:[%s6783_s19 + $0x158] sm:$0xff] }
 0x366   : > { %v3766_v27 = vsel %vm3707_vm0, %v3694_v31, %v10125_v44  ;;  %v3910_v4 = vsel %vm3900_vm1, %v3855_v16, %v3887_v14  ;;  %v3958_v11 = vsel %vm3900_vm1, %v3887_v14, %v10133_v18  ;;  %v4071_v63 = vmul.f32 %v3718_v50, %v3491_v62  ;;  %v10140_v44 = vld [vmem:[#allocation102_spill] sm:$0xff]  ;;  %v3553_v16 = vld [vmem:[%s6783_s19 + $0x140] sm:$0xff]  ;;  %v3430_v62 = vld [vmem:[%s6774_s29 + $0x168] sm:$0xff] }
 0x367   : > { %v4072_v15 = vmul.f32 %v3766_v27, %v3492_v5  ;;  %v4132_v47 = vadd.f32 %v4068_v12, %v4004_v30  ;;  %v3927_v45 = vsel %vm3900_vm1, %v10136_v58, %v3857_v32  ;;  %v4193_v46 = vmul.f32 %v3958_v11, %v3549_v23  ;;  %v3429_v12 = vld [vmem:[%s6774_s29 + $0x160] sm:$0xff]  ;;  %v10142_v5 = vld [vmem:[#allocation140_spill] sm:$0xff]  ;;  %v3431_v27 = vld [vmem:[%s6774_s29 + $0x170] sm:$0xff] }
 0x368   : > { %4653 = vrot.lane.b32.xlu0 %v10139_v2, %s6454_s6  ;;  %v4196_v31 = vmul.f32 %v3910_v4, %v3552_v53  ;;  %4527 = vrot.lane.b32.xlu1 %v10140_v44, %s6453_s8  ;;  %v4134_v18 = vadd.f32 %v4070_v1, %v4006_v55  ;;  %v4259_v40 = vadd.f32 %v4195_v57, %v4131_v35  ;;  %v3889_v59 = vpop.permute.xlu0 %3888  ;;  %v8926_v50 = vld [vmem:[%s6780_s11 + $0x160] sm:$0xff]  ;;  %v10145_v4 = vld [vmem:[#allocation141_spill] sm:$0xff] }
 0x369   : > { %v4135_v19 = vadd.f32 %v4071_v63, %v4007_v6  ;;  %v4258_v33 = vadd.f32 %v4194_v34, %v4130_v8  ;;  %v8904_v39 = vpop.permute.xlu1 %3663  ;;  %v3911_v58 = vsel %vm3900_vm1, %v3857_v32, %v3889_v59  ;;  %v3959_v9 = vsel %vm3900_vm1, %v3889_v59, %v10137_v49  ;;  %v10141_v6 = vld [vmem:[#allocation106_spill] sm:$0xff]  ;;  %v10143_v34 = vld [vmem:[#allocation136_spill] sm:$0xff]  ;;  %10144 = vst [vmem:[#allocation74_spill] sm:$0xff] %v8926_v50  ;;  %v10146_v11 = vld [vmem:[#allocation137_spill] sm:$0xff] }
 0x36a   : > { %v4260_v30 = vadd.f32 %v4196_v31, %v4132_v47  ;;  %v4257_v0 = vadd.f32 %v4193_v46, %v4129_v28  ;;  %v4199_v54 = vmul.f32 %v3927_v45, %v3555_v29  ;;  %v4136_v55 = vadd.f32 %v4072_v15, %v4008_v52  ;;  %v3433_v28 = vld [vmem:[%s6774_s29 + $0x180] sm:$0xff]  ;;  %v3434_v8 = vld [vmem:[%s6774_s29 + $0x188] sm:$0xff]  ;;  %v3432_v46 = vld [vmem:[%s6774_s29 + $0x178] sm:$0xff] }
 0x36b   : > { %v4197_v48 = vmul.f32 %v3959_v9, %v3553_v16  ;;  %v4200_v35 = vmul.f32 %v3911_v58, %v3556_v60  ;;  %v3751_v32 = vsel %vm3707_vm0, %v10143_v34, %v10142_v5  ;;  %v4262_v14 = vadd.f32 %v4198_v10, %v4134_v18  ;;  %v8935_v15 = vld [vmem:[%s6780_s11 + $0x168] sm:$0xff]  ;;  %v3435_v31 = vld [vmem:[%s6774_s29 + $0x190] sm:$0xff]  ;;  %v3436_v58 = vld [vmem:[%s6774_s29 + $0x198] sm:$0xff] }
 0x36c   : > { %4529 = vrot.lane.b32.xlu0 %v10141_v6, %s6453_s8  ;;  %v5776_v49 = vpack.c.bf16 %v4260_v30, %v4259_v40  ;;  %4623 = vrot.lane.b32.xlu1 %v10140_v44, %s6454_s6  ;;  %v5775_v52 = vpack.c.bf16 %v4258_v33, %v4257_v0  ;;  %v4263_v1 = vadd.f32 %v4199_v54, %v4135_v19  ;;  %v8923_v53 = vpop.permute.xlu0 %3665  ;;  %v10149_v10 = vld [vmem:[#allocation52_spill] sm:$0xff]  ;;  %v10151_v19 = vld [vmem:[#allocation53_spill] sm:$0xff] }
 0x36d   : > { %v4264_v23 = vadd.f32 %v4200_v35, %v4136_v55  ;;  %v4261_v57 = vadd.f32 %v4197_v48, %v4133_v51  ;;  %v3752_v63 = vsel %vm3707_vm0, %v10146_v11, %v10145_v4  ;;  %10147 = vst [vmem:[#allocation76_spill] sm:$0xff] %v8935_v15  ;;  %v3735_v47 = vsel %vm3707_vm0, %v10142_v5, %v8904_v39  ;;  %v3859_v29 = vpop.permute.xlu1 %3858  ;;  %v8943_v51 = vld [vmem:[%s6780_s11 + $0x180] sm:$0xff]  ;;  %v10150_v18 = vld [vmem:[#allocation56_spill] sm:$0xff]  ;;  %v10152_v33 = vld [vmem:[#allocation57_spill] sm:$0xff] }
 0x36e   : > { %4496 = vst [vmem:[%s8415_s28 + $0x98] sm:$0xff] %v5776_v49  ;;  %4495 = vst [vmem:[%s8415_s28 + $0x90] sm:$0xff] %v5775_v52  ;;  %v4009_v45 = vmul.f32 %v3429_v12, %v10149_v10  ;;  %v4010_v40 = vmul.f32 %v3430_v62, %v10150_v18  ;;  %v4013_v59 = vmul.f32 %v3433_v28, %v10151_v19  ;;  %v10153_v9 = vld [vmem:[#allocation104_spill] sm:$0xff]  ;;  %v10155_v48 = vld [vmem:[#allocation142_spill] sm:$0xff] }
 0x36f   : > { %10148 = vst [vmem:[#allocation87_spill] sm:$0xff] %v8943_v51  ;;  %v5778_v16 = vpack.c.bf16 %v4264_v23, %v4263_v1  ;;  %v5777_v60 = vpack.c.bf16 %v4262_v14, %v4261_v57  ;;  %v4014_v30 = vmul.f32 %v3434_v8, %v10152_v33  ;;  %v4073_v0 = vmul.f32 %v3751_v32, %v8926_v50  ;;  %v10154_v54 = vld [vmem:[#allocation64_spill] sm:$0xff]  ;;  %v10156_v35 = vld [vmem:[#allocation138_spill] sm:$0xff]  ;;  %v3495_v5 = vld [vmem:[%s6780_s11 + $0x170] sm:$0xff] }
 0x370   : > { %4625 = vrot.lane.b32.xlu0 %v10141_v6, %s6454_s6  ;;  %4559 = vrot.lane.b32.xlu1 %v10153_v9, %s6453_s8  ;;  %v4011_v55 = vmul.f32 %v3431_v27, %v10154_v54  ;;  %v3944_v12 = vsel %vm3900_vm1, %v10156_v35, %v10155_v48  ;;  %v4074_v62 = vmul.f32 %v3735_v47, %v8935_v15  ;;  %v3496_v49 = vld [vmem:[%s6780_s11 + $0x178] sm:$0xff]  ;;  %v3861_v52 = vpop.permute.xlu0 %3860  ;;  %v8968_v28 = vld [vmem:[%s6783_s19 + $0x168] sm:$0xff]  ;;  %v10158_v8 = vld [vmem:[#allocation65_spill] sm:$0xff] }
 0x371   : > { %4498 = vst [vmem:[%s8415_s28 + $0xa8] sm:$0xff] %v5778_v16  ;;  %4497 = vst [vmem:[%s8415_s28 + $0xa0] sm:$0xff] %v5777_v60  ;;  %v4077_v32 = vmul.f32 %v3752_v63, %v8943_v51  ;;  %v4012_v1 = vmul.f32 %v3432_v46, %v10158_v8  ;;  %v10159_v23 = vld [vmem:[#allocation66_spill] sm:$0xff]  ;;  %v10160_v14 = vld [vmem:[#allocation143_spill] sm:$0xff]  ;;  %v3736_v16 = vsel %vm3707_vm0, %v10145_v4, %v8923_v53  ;;  %v3696_v60 = vpop.permute.xlu1 %3695 }
 0x372   : > { %10157 = vst [vmem:[#allocation79_spill] sm:$0xff] %v8968_v28  ;;  %v4015_v57 = vmul.f32 %v3435_v31, %v10159_v23  ;;  %v10161_v27 = vld [vmem:[#allocation139_spill] sm:$0xff]  ;;  %v8978_v10 = vld [vmem:[%s6780_s11 + $0x188] sm:$0xff]  ;;  %v10164_v46 = vld [vmem:[#allocation69_spill] sm:$0xff]  ;;  %v3928_v19 = vsel %vm3900_vm1, %v10155_v48, %v3859_v29  ;;  %v3719_v33 = vsel %vm3707_vm0, %v8904_v39, %v3696_v60  ;;  %v3767_v4 = vsel %vm3707_vm0, %v3696_v60, %v10143_v34 }
 0x373   : > { %v3945_v47 = vsel %vm3900_vm1, %v10161_v27, %v10160_v14  ;;  %10162 = vst [vmem:[#allocation89_spill] sm:$0xff] %v8978_v10  ;;  %v8985_v63 = vld [vmem:[%s6783_s19 + $0x188] sm:$0xff]  ;;  %v4016_v18 = vmul.f32 %v3436_v58, %v10164_v46  ;;  %v3559_v31 = vld [vmem:[%s6783_s19 + $0x170] sm:$0xff]  ;;  %v4075_v8 = vmul.f32 %v3719_v33, %v3495_v5  ;;  %v4076_v23 = vmul.f32 %v3767_v4, %v3496_v49  ;;  %v3500_v46 = vld [vmem:[%s6780_s11 + $0x198] sm:$0xff] }
 0x374   : > { %10163 = vst [vmem:[#allocation81_spill] sm:$0xff] %v8985_v63  ;;  %v10165_v54 = vld [vmem:[#allocation108_spill] sm:$0xff]  ;;  %4655 = vrot.lane.b32.xlu1 %v10153_v9, %s6454_s6  ;;  %v3499_v58 = vld [vmem:[%s6780_s11 + $0x190] sm:$0xff]  ;;  %v4137_v51 = vadd.f32 %v4073_v0, %v4009_v45  ;;  %v4202_v48 = vmul.f32 %v3944_v12, %v8968_v28  ;;  %v4138_v15 = vadd.f32 %v4074_v62, %v4010_v40  ;;  %v9007_v50 = vld [vmem:[%s6783_s19 + $0x160] sm:$0xff]  ;;  %v3698_v60 = vpop.permute.xlu0 %3697 }
 0x375   : > { %4561 = vrot.lane.b32.xlu0 %v10165_v54, %s6453_s8  ;;  %v4078_v39 = vmul.f32 %v3736_v16, %v8978_v10  ;;  %10166 = vst [vmem:[#allocation35_spill] sm:$0xff] %v9007_v50  ;;  %v3560_v34 = vld [vmem:[%s6783_s19 + $0x178] sm:$0xff]  ;;  %v4141_v6 = vadd.f32 %v4077_v32, %v4013_v59  ;;  %v4206_v5 = vmul.f32 %v3945_v47, %v8985_v63  ;;  %v3891_v4 = vpop.permute.xlu1 %3890  ;;  %v3563_v32 = vld [vmem:[%s6783_s19 + $0x190] sm:$0xff]  ;;  %v9032_v16 = vld [vmem:[%s6783_s19 + $0x180] sm:$0xff] }
 0x376   : > { %v4203_v49 = vmul.f32 %v3928_v19, %v3559_v31  ;;  %v4139_v33 = vadd.f32 %v4075_v8, %v4011_v55  ;;  %v3720_v45 = vsel %vm3707_vm0, %v8923_v53, %v3698_v60  ;;  %v3768_v40 = vsel %vm3707_vm0, %v3698_v60, %v10146_v11  ;;  %10168 = vst [vmem:[#allocation36_spill] sm:$0xff] %v9032_v16  ;;  %v10191_v63 = vld [vmem:[#allocation151_spill] sm:$0xff] }
 0x377   : > { %v3912_v0 = vsel %vm3900_vm1, %v3859_v29, %v3891_v4  ;;  %v3960_v59 = vsel %vm3900_vm1, %v3891_v4, %v10156_v35  ;;  %v4079_v12 = vmul.f32 %v3720_v45, %v3499_v58  ;;  %v4080_v62 = vmul.f32 %v3768_v40, %v3500_v46  ;;  %v10167_v29 = vld [vmem:[#allocation110_spill] sm:$0xff]  ;;  %v9058_v45 = vld [vmem:[%s6774_s29 + $0x1c0] sm:$0xff]  ;;  %v9061_v40 = vld [vmem:[%s6774_s29 + $0x1c8] sm:$0xff] }
 0x378   : > { %v4140_v55 = vadd.f32 %v4076_v23, %v4012_v1  ;;  %v3929_v53 = vsel %vm3900_vm1, %v10160_v14, %v3861_v52  ;;  %v4201_v11 = vmul.f32 %v3960_v59, %v9007_v50  ;;  %v4204_v47 = vmul.f32 %v3912_v0, %v3560_v34  ;;  %4531 = vrot.lane.b32.xlu1 %v10167_v29, %s6453_s8  ;;  %v3564_v35 = vld [vmem:[%s6783_s19 + $0x198] sm:$0xff]  ;;  %v3893_v1 = vpop.permute.xlu0 %3892 }
 0x379   : > { %4657 = vrot.lane.b32.xlu0 %v10165_v54, %s6454_s6  ;;  %v4142_v31 = vadd.f32 %v4078_v39, %v4014_v30  ;;  %v4267_v19 = vadd.f32 %v4203_v49, %v4139_v33  ;;  %v4143_v8 = vadd.f32 %v4079_v12, %v4015_v57  ;;  %v4266_v23 = vadd.f32 %v4202_v48, %v4138_v15  ;;  %v9035_v46 = vpop.permute.xlu1 %3667  ;;  %v10169_v15 = vld [vmem:[#allocation114_spill] sm:$0xff]  ;;  %v9046_v48 = vld [vmem:[%s6774_s29 + $0x1a0] sm:$0xff]  ;;  %v9049_v49 = vld [vmem:[%s6774_s29 + $0x1a8] sm:$0xff] }
 0x37a   : > { %v4268_v58 = vadd.f32 %v4204_v47, %v4140_v55  ;;  %v3913_v14 = vsel %vm3900_vm1, %v3861_v52, %v3893_v1  ;;  %v3961_v34 = vsel %vm3900_vm1, %v3893_v1, %v10161_v27  ;;  %v4265_v60 = vadd.f32 %v4201_v11, %v4137_v51  ;;  %10170 = vst [vmem:[#allocation38_spill] sm:$0xff] %v9046_v48  ;;  %v10172_v52 = vld [vmem:[#allocation148_spill] sm:$0xff]  ;;  %v10177_v11 = vld [vmem:[#allocation149_spill] sm:$0xff] }
 0x37b   : > { %v4207_v4 = vmul.f32 %v3929_v53, %v3563_v32  ;;  %v4144_v30 = vadd.f32 %v4080_v62, %v4016_v18  ;;  %v4205_v39 = vmul.f32 %v3961_v34, %v9032_v16  ;;  %v4208_v57 = vmul.f32 %v3913_v14, %v3564_v35  ;;  %10171 = vst [vmem:[#allocation37_spill] sm:$0xff] %v9049_v49  ;;  %v10173_v33 = vld [vmem:[#allocation144_spill] sm:$0xff]  ;;  %v9066_v32 = vld [vmem:[%s6780_s11 + $0x1a0] sm:$0xff]  ;;  %v3439_v53 = vld [vmem:[%s6774_s29 + $0x1b0] sm:$0xff] }
 0x37c   : > { %v3753_v51 = vsel %vm3707_vm0, %v10173_v33, %v10172_v52  ;;  %v5780_v27 = vpack.c.bf16 %v4268_v58, %v4267_v19  ;;  %4627 = vrot.lane.b32.xlu1 %v10167_v29, %s6454_s6  ;;  %v5779_v18 = vpack.c.bf16 %v4266_v23, %v4265_v60  ;;  %10174 = vst [vmem:[#allocation75_spill] sm:$0xff] %v9058_v45  ;;  %10175 = vst [vmem:[#allocation91_spill] sm:$0xff] %v9061_v40  ;;  %v9063_v12 = vpop.permute.xlu0 %3669  ;;  %v10178_v47 = vld [vmem:[#allocation145_spill] sm:$0xff]  ;;  %v9075_v19 = vld [vmem:[%s6780_s11 + $0x1a8] sm:$0xff] }
 0x37d   : > { %4533 = vrot.lane.b32.xlu0 %v10169_v15, %s6453_s8  ;;  %v4271_v0 = vadd.f32 %v4207_v4, %v4143_v8  ;;  %v4272_v59 = vadd.f32 %v4208_v57, %v4144_v30  ;;  %v4269_v62 = vadd.f32 %v4205_v39, %v4141_v6  ;;  %v4270_v55 = vadd.f32 %v4206_v5, %v4142_v31  ;;  %v3863_v1 = vpop.permute.xlu1 %3862  ;;  %v9083_v6 = vld [vmem:[%s6780_s11 + $0x1c0] sm:$0xff]  ;;  %v10181_v5 = vld [vmem:[#allocation61_spill] sm:$0xff]  ;;  %v3440_v23 = vld [vmem:[%s6774_s29 + $0x1b8] sm:$0xff] }
 0x37e   : > { %10176 = vst [vmem:[#allocation83_spill] sm:$0xff] %v9066_v32  ;;  %v3754_v35 = vsel %vm3707_vm0, %v10178_v47, %v10177_v11  ;;  %4500 = vst [vmem:[%s8415_s28 + $0xb8] sm:$0xff] %v5780_v27  ;;  %v3737_v8 = vsel %vm3707_vm0, %v10172_v52, %v9035_v46  ;;  %v4017_v31 = vmul.f32 %v9046_v48, %v10181_v5  ;;  %v3443_v58 = vld [vmem:[%s6774_s29 + $0x1d0] sm:$0xff]  ;;  %v10182_v60 = vld [vmem:[#allocation67_spill] sm:$0xff] }
 0x37f   : > { %10179 = vst [vmem:[#allocation93_spill] sm:$0xff] %v9075_v19  ;;  %4499 = vst [vmem:[%s8415_s28 + $0xb0] sm:$0xff] %v5779_v18  ;;  %v5782_v14 = vpack.c.bf16 %v4272_v59, %v4271_v0  ;;  %v5781_v34 = vpack.c.bf16 %v4270_v55, %v4269_v62  ;;  %v4018_v4 = vmul.f32 %v9049_v49, %v10182_v60  ;;  %v10183_v30 = vld [vmem:[#allocation62_spill] sm:$0xff]  ;;  %v10184_v57 = vld [vmem:[#allocation68_spill] sm:$0xff] }
 0x380   : > { %10180 = vst [vmem:[#allocation85_spill] sm:$0xff] %v9083_v6  ;;  %v4021_v39 = vmul.f32 %v9058_v45, %v10183_v30  ;;  %v4022_v52 = vmul.f32 %v9061_v40, %v10184_v57  ;;  %v3444_v27 = vld [vmem:[%s6774_s29 + $0x1d8] sm:$0xff]  ;;  %v10185_v18 = vld [vmem:[#allocation112_spill] sm:$0xff]  ;;  %v4081_v0 = vmul.f32 %v3753_v51, %v9066_v32  ;;  %v4082_v60 = vmul.f32 %v3737_v8, %v9075_v19  ;;  %v3503_v30 = vld [vmem:[%s6780_s11 + $0x1b0] sm:$0xff]  ;;  %v3865_v40 = vpop.permute.xlu0 %3864 }
 0x381   : > { %4629 = vrot.lane.b32.xlu0 %v10169_v15, %s6454_s6  ;;  %4563 = vrot.lane.b32.xlu1 %v10185_v18, %s6453_s8  ;;  %v10186_v59 = vld [vmem:[#allocation70_spill] sm:$0xff]  ;;  %4502 = vst [vmem:[%s8415_s28 + $0xc8] sm:$0xff] %v5782_v14  ;;  %4501 = vst [vmem:[%s8415_s28 + $0xc0] sm:$0xff] %v5781_v34  ;;  %v4085_v51 = vmul.f32 %v3754_v35, %v9083_v6  ;;  %v10189_v49 = vld [vmem:[#allocation71_spill] sm:$0xff]  ;;  %v3738_v34 = vsel %vm3707_vm0, %v10177_v11, %v9063_v12  ;;  %v3700_v19 = vpop.permute.xlu1 %3699 }
 0x382   : > { %v4019_v5 = vmul.f32 %v3439_v53, %v10186_v59  ;;  %v10187_v48 = vld [vmem:[#allocation150_spill] sm:$0xff]  ;;  %v9112_v45 = vld [vmem:[%s6783_s19 + $0x1a8] sm:$0xff]  ;;  %v4020_v53 = vmul.f32 %v3440_v23, %v10189_v49  ;;  %v10192_v16 = vld [vmem:[#allocation147_spill] sm:$0xff]  ;;  %v4024_v49 = vmul.f32 %v3444_v27, %v7963_v17  ;;  %v3769_v11 = vsel %vm3707_vm0, %v3700_v19, %v10173_v33 }
 0x383   : > { %v10188_v62 = vld [vmem:[#allocation146_spill] sm:$0xff]  ;;  %v10190_v59 = vld [vmem:[#allocation72_spill] sm:$0xff]  ;;  %v3947_v8 = vsel %vm3900_vm1, %v10192_v16, %v10191_v63  ;;  %v3567_v23 = vld [vmem:[%s6783_s19 + $0x1b0] sm:$0xff]  ;;  %v4145_v50 = vadd.f32 %v4081_v0, %v4017_v31  ;;  %v4146_v10 = vadd.f32 %v4082_v60, %v4018_v4  ;;  %v4149_v54 = vadd.f32 %v4085_v51, %v4021_v39 }
 0x384   : > { %v3946_v55 = vsel %vm3900_vm1, %v10188_v62, %v10187_v48  ;;  %v3504_v57 = vld [vmem:[%s6780_s11 + $0x1b8] sm:$0xff]  ;;  %v4023_v32 = vmul.f32 %v3443_v58, %v10190_v59  ;;  %v9122_v14 = vld [vmem:[%s6780_s11 + $0x1c8] sm:$0xff]  ;;  %v3930_v58 = vsel %vm3900_vm1, %v10187_v48, %v3863_v1  ;;  %v3721_v59 = vsel %vm3707_vm0, %v9035_v46, %v3700_v19  ;;  %v3507_v17 = vld [vmem:[%s6780_s11 + $0x1d0] sm:$0xff]  ;;  %v3702_v19 = vpop.permute.xlu0 %3701 }
 0x385   : > { %v9129_v35 = vld [vmem:[%s6783_s19 + $0x1c8] sm:$0xff]  ;;  %v4083_v15 = vmul.f32 %v3721_v59, %v3503_v30  ;;  %v4084_v28 = vmul.f32 %v3769_v11, %v3504_v57  ;;  %4659 = vrot.lane.b32.xlu1 %v10185_v18, %s6454_s6  ;;  %v3508_v27 = vld [vmem:[%s6780_s11 + $0x1d8] sm:$0xff]  ;;  %v4210_v48 = vmul.f32 %v3946_v55, %v9112_v45  ;;  %v4086_v46 = vmul.f32 %v3738_v34, %v9122_v14  ;;  %v9151_v29 = vld [vmem:[%s6783_s19 + $0x1a0] sm:$0xff]  ;;  %v3895_v11 = vpop.permute.xlu1 %3894 }
 0x386   : > { %v10193_v6 = vld [vmem:[#allocation116_spill] sm:$0xff]  ;;  %v3568_v33 = vld [vmem:[%s6783_s19 + $0x1b8] sm:$0xff]  ;;  %v4214_v30 = vmul.f32 %v3947_v8, %v9129_v35  ;;  %v4211_v57 = vmul.f32 %v3930_v58, %v3567_v23  ;;  %v3722_v31 = vsel %vm3707_vm0, %v9063_v12, %v3702_v19  ;;  %v3770_v4 = vsel %vm3707_vm0, %v3702_v19, %v10178_v47  ;;  %v9176_v8 = vld [vmem:[%s6783_s19 + $0x1c0] sm:$0xff] }
 0x387   : > { %4565 = vrot.lane.b32.xlu0 %v10193_v6, %s6453_s8  ;;  %v4147_v59 = vadd.f32 %v4083_v15, %v4019_v5  ;;  %v3914_v0 = vsel %vm3900_vm1, %v3863_v1, %v3895_v11  ;;  %v3962_v39 = vsel %vm3900_vm1, %v3895_v11, %v10188_v62  ;;  %v4087_v55 = vmul.f32 %v3722_v31, %v3507_v17  ;;  %v3571_v5 = vld [vmem:[%s6783_s19 + $0x1d0] sm:$0xff]  ;;  %v10194_v1 = vld [vmem:[#allocation118_spill] sm:$0xff] }
 0x388   : > { %v4088_v60 = vmul.f32 %v3770_v4, %v3508_v27  ;;  %v4148_v15 = vadd.f32 %v4084_v28, %v4020_v53  ;;  %v3931_v12 = vsel %vm3900_vm1, %v10191_v63, %v3865_v40  ;;  %v4209_v47 = vmul.f32 %v3962_v39, %v9151_v29  ;;  %v3572_v62 = vld [vmem:[%s6783_s19 + $0x1d8] sm:$0xff]  ;;  %v3897_v17 = vpop.permute.xlu0 %3896 }
 0x389   : > { %v4212_v51 = vmul.f32 %v3914_v0, %v3568_v33  ;;  %4535 = vrot.lane.b32.xlu1 %v10194_v1, %s6453_s8  ;;  %v4150_v34 = vadd.f32 %v4086_v46, %v4022_v52  ;;  %v4275_v23 = vadd.f32 %v4211_v57, %v4147_v59  ;;  %v4151_v58 = vadd.f32 %v4087_v55, %v4023_v32  ;;  %v3672_v53 = vpop.permute.xlu1 %3671  ;;  %v9191_v59 = vld [vmem:[%s6780_s11 + $0x1e8] sm:$0xff]  ;;  %v10196_v4 = vld [vmem:[#allocation154_spill] sm:$0xff] }
 0x38a   : > { %v4274_v27 = vadd.f32 %v4210_v48, %v4146_v10  ;;  %v3915_v19 = vsel %vm3900_vm1, %v3865_v40, %v3897_v17  ;;  %v3963_v63 = vsel %vm3900_vm1, %v3897_v17, %v10192_v16  ;;  %v4273_v33 = vadd.f32 %v4209_v47, %v4145_v50  ;;  %v10195_v10 = vld [vmem:[#allocation122_spill] sm:$0xff] }
 0x38b   : > { %4661 = vrot.lane.b32.xlu0 %v10193_v6, %s6454_s6  ;;  %v4276_v28 = vadd.f32 %v4212_v51, %v4148_v15  ;;  %v4215_v11 = vmul.f32 %v3931_v12, %v3571_v5  ;;  %v4152_v31 = vadd.f32 %v4088_v60, %v4024_v49  ;;  %v4213_v52 = vmul.f32 %v3963_v63, %v9176_v8  ;;  %v3447_v60 = vld [vmem:[%s6774_s29 + $0x1f0] sm:$0xff]  ;;  %v10197_v15 = vld [vmem:[#allocation120_spill] sm:$0xff]  ;;  %v3448_v17 = vld [vmem:[%s6774_s29 + $0x1f8] sm:$0xff] }
 0x38c   : > { %v4216_v32 = vmul.f32 %v3915_v19, %v3572_v62  ;;  %v5783_v40 = vpack.c.bf16 %v4274_v27, %v4273_v33  ;;  %v4510_v57 = vpop.permute.xlu0 %4509  ;;  %v4278_v49 = vadd.f32 %v4214_v30, %v4150_v34  ;;  %v3739_v0 = vsel %vm3707_vm0, %v10196_v4, %v3672_v53  ;;  %v9200_v30 = vld [vmem:[%s6774_s29 + $0x1e8] sm:$0xff]  ;;  %v3511_v51 = vld [vmem:[%s6780_s11 + $0x1f0] sm:$0xff]  ;;  %v3512_v62 = vld [vmem:[%s6780_s11 + $0x1f8] sm:$0xff] }
 0x38d   : > { %v5784_v48 = vpack.c.bf16 %v4276_v28, %v4275_v23  ;;  %4631 = vrot.lane.b32.xlu1 %v10194_v1, %s6454_s6  ;;  %v4279_v46 = vadd.f32 %v4215_v11, %v4151_v58  ;;  %v4277_v50 = vadd.f32 %v4213_v52, %v4149_v54  ;;  %v3867_v39 = vpop.permute.xlu1 %3866  ;;  %v10198_v5 = vld [vmem:[#allocation152_spill] sm:$0xff]  ;;  %v4090_v47 = vmul.f32 %v3739_v0, %v9191_v59  ;;  %v9215_v23 = vld [vmem:[%s6780_s11 + $0x1e0] sm:$0xff]  ;;  %v10200_v28 = vld [vmem:[#allocation153_spill] sm:$0xff] }
 0x38e   : > { %v4280_v16 = vadd.f32 %v4216_v32, %v4152_v31  ;;  %4503 = vst [vmem:[%s8415_s28 + $0xd0] sm:$0xff] %v5783_v40  ;;  %v3755_v12 = vsel %vm3707_vm0, %v10198_v5, %v10196_v4  ;;  %v9218_v58 = vld [vmem:[%s6774_s29 + $0x1e0] sm:$0xff]  ;;  %v9226_v33 = vld [vmem:[%s6783_s19 + $0x1e8] sm:$0xff]  ;;  %v10201_v11 = vld [vmem:[#allocation45_spill] sm:$0xff] }
 0x38f   : > { %4537 = vrot.lane.b32.xlu0 %v10195_v10, %s6453_s8  ;;  %4504 = vst [vmem:[%s8415_s28 + $0xd8] sm:$0xff] %v5784_v48  ;;  %v5785_v54 = vpack.c.bf16 %v4278_v49, %v4277_v50  ;;  %v10199_v27 = vld [vmem:[#allocation155_spill] sm:$0xff]  ;;  %v4026_v31 = vmul.f32 %v9200_v30, %v10201_v11  ;;  %v3575_v52 = vld [vmem:[%s6783_s19 + $0x1f0] sm:$0xff]  ;;  %v4089_v4 = vmul.f32 %v3755_v12, %v9215_v23 }
 0x390   : > { %v5786_v55 = vpack.c.bf16 %v4280_v16, %v4279_v46  ;;  %v4606_v34 = vpop.permute.xlu0 %4605  ;;  %v3948_v19 = vsel %vm3900_vm1, %v10200_v28, %v10199_v27  ;;  %v3932_v32 = vsel %vm3900_vm1, %v10199_v27, %v3867_v39  ;;  %v10202_v46 = vld [vmem:[#allocation124_spill] sm:$0xff]  ;;  %v4027_v16 = vmul.f32 %v3447_v60, %v7973_v61  ;;  %v10203_v0 = vld [vmem:[#allocation73_spill] sm:$0xff]  ;;  %v3576_v27 = vld [vmem:[%s6783_s19 + $0x1f8] sm:$0xff] }
 0x391   : > { %4567 = vrot.lane.b32.xlu1 %v10197_v15, %s6453_s8  ;;  %4505 = vst [vmem:[%s8415_s28 + $0xe0] sm:$0xff] %v5785_v54  ;;  %v3704_v63 = vpop.permute.xlu1 %3703  ;;  %v4154_v54 = vadd.f32 %v4090_v47, %v4026_v31  ;;  %v4218_v61 = vmul.f32 %v3948_v19, %v9226_v33  ;;  %v4219_v60 = vmul.f32 %v3932_v32, %v3575_v52  ;;  %v6049_v31 = vld [vmem:[%s6780_s11 + $0x8] sm:$0xff] }
 0x392   : > { %4506 = vst [vmem:[%s8415_s28 + $0xe8] sm:$0xff] %v5786_v55  ;;  %v3723_v48 = vsel %vm3707_vm0, %v3672_v53, %v3704_v63  ;;  %v3771_v40 = vsel %vm3707_vm0, %v3704_v63, %v10198_v5  ;;  %v4025_v53 = vmul.f32 %v9218_v58, %v10203_v0  ;;  %v4028_v55 = vmul.f32 %v3448_v17, %v7979_v36  ;;  %v9249_v5 = vld [vmem:[%s6783_s19 + $0x1e0] sm:$0xff] }
 0x393   : > { %4633 = vrot.lane.b32.xlu0 %v10195_v10, %s6454_s6  ;;  %v4091_v50 = vmul.f32 %v3723_v48, %v3511_v51  ;;  %v4092_v49 = vmul.f32 %v3771_v40, %v3512_v62  ;;  %v6048_v17 = vld [vmem:[%s6780_s11] sm:$0xff] }
 0x394   : > { %v4542_v63 = vpop.permute.xlu0 %4541 }
 0x395   : > { %4663 = vrot.lane.b32.xlu1 %v10197_v15, %s6454_s6  ;;  %v4155_v51 = vadd.f32 %v4091_v50, %v4027_v16  ;;  %v3899_v62 = vpop.permute.xlu1 %3898  ;;  %v4573_v12 = vsel %vm3707_vm0, %v4510_v57, %v4542_v63  ;;  %v4589_v11 = vsel %vm3707_vm0, %v4542_v63, %v4510_v57  ;;  %v4156_v32 = vadd.f32 %v4092_v49, %v4028_v55  ;;  %v10204_v57 = vld [vmem:[#allocation126_spill] sm:$0xff]  ;;  %v6050_v16 = vld [vmem:[%s6774_s29] sm:$0xff]  ;;  %v6051_v50 = vld [vmem:[%s6774_s29 + $0x8] sm:$0xff] }
 0x396   : > { %v3916_v36 = vsel %vm3900_vm1, %v3867_v39, %v3899_v62  ;;  %v3964_v47 = vsel %vm3900_vm1, %v3899_v62, %v10200_v28  ;;  %v4733_v19 = vmul.f32 %v6048_v17, %v4573_v12  ;;  %v4734_v52 = vmul.f32 %v6049_v31, %v4589_v11 }
 0x397   : > { %4569 = vrot.lane.b32.xlu0 %v10202_v46, %s6453_s8  ;;  %v4217_v48 = vmul.f32 %v3964_v47, %v9249_v5  ;;  %v4220_v40 = vmul.f32 %v3916_v36, %v3576_v27  ;;  %v4153_v39 = vadd.f32 %v4089_v4, %v4025_v53  ;;  %v4701_v28 = vmul.f32 %v6050_v16, %v7987_v43  ;;  %v6052_v43 = vld [vmem:[%s6783_s19] sm:$0xff] }
 0x398   : > { %v4702_v0 = vmul.f32 %v6051_v50, %v7993_v56  ;;  %v4283_v63 = vadd.f32 %v4219_v60, %v4155_v51  ;;  %v4638_v62 = vpop.permute.xlu0 %4637  ;;  %v4282_v12 = vadd.f32 %v4218_v61, %v4154_v54  ;;  %v6053_v60 = vld [vmem:[%s6783_s19 + $0x8] sm:$0xff]  ;;  %v6054_v16 = vld [vmem:[%s6780_s11 + $0x20] sm:$0xff] }
 0x399   : > { %4539 = vrot.lane.b32.xlu1 %v10204_v57, %s6453_s8  ;;  %v4284_v11 = vadd.f32 %v4220_v40, %v4156_v32  ;;  %v4512_v49 = vpop.permute.xlu1 %4511  ;;  %v4669_v55 = vsel %vm3900_vm1, %v4606_v34, %v4638_v62  ;;  %v4685_v27 = vsel %vm3900_vm1, %v4638_v62, %v4606_v34  ;;  %v4281_v4 = vadd.f32 %v4217_v48, %v4153_v39  ;;  %v6055_v50 = vld [vmem:[%s6780_s11 + $0x28] sm:$0xff]  ;;  %v6056_v62 = vld [vmem:[%s6774_s29 + $0x20] sm:$0xff] }
 0x39a   : > { %v4765_v53 = vadd.f32 %v4733_v19, %v4701_v28  ;;  %v4766_v36 = vadd.f32 %v4734_v52, %v4702_v0  ;;  %v4797_v56 = vmul.f32 %v6052_v43, %v4685_v27  ;;  %v4798_v51 = vmul.f32 %v6053_v60, %v4669_v55  ;;  %v10207_v52 = vld [vmem:[#allocation128_spill] sm:$0xff]  ;;  %v6058_v43 = vld [vmem:[%s6780_s11 + $0x40] sm:$0xff] }
 0x39b   : > { %4665 = vrot.lane.b32.xlu0 %v10202_v46, %s6454_s6  ;;  %v5788_v54 = vpack.c.bf16 %v4284_v11, %v4283_v63  ;;  %v5787_v61 = vpack.c.bf16 %v4282_v12, %v4281_v4  ;;  %v4703_v12 = vmul.f32 %v6056_v62, %v10070_v7  ;;  %v6057_v11 = vld [vmem:[%s6774_s29 + $0x28] sm:$0xff] }
 0x39c   : > { %v4829_v47 = vadd.f32 %v4797_v56, %v4765_v53  ;;  %v4830_v17 = vadd.f32 %v4798_v51, %v4766_v36  ;;  %v4514_v34 = vpop.permute.xlu0 %4513  ;;  %v6059_v7 = vld [vmem:[%s6780_s11 + $0x48] sm:$0xff] }
 0x39d   : > { %4635 = vrot.lane.b32.xlu1 %v10204_v57, %s6454_s6  ;;  %4508 = vst [vmem:[%s8415_s28 + $0xf8] sm:$0xff] %v5788_v54  ;;  %v4608_v19 = vpop.permute.xlu1 %4607  ;;  %4507 = vst [vmem:[%s8415_s28 + $0xf0] sm:$0xff] %v5787_v61  ;;  %s6260_s28 = sshll.u32 %s6455_s30, 4  ;;  %s6261_s28 = int_to_ptr.vmem [resolvable:$false] %s6260_s28 }
 0x39e   : > { %v5789_v31 = vpack.c.bf16 %v4830_v17, %v4829_v47  ;;  %s6262_s25 = scalar_lea.vmem %s6261_s28, 8192  ;;  %p6263_p11 = scmp.lt.s32.totalorder %s9303_s24, %s6261_s28 }
 0x39f   : > { %p6264_p13 = scmp.lt.s32.totalorder %s6262_s25, %s6256_s22 }
 0x3a0   : > { %4957 = vst [vmem:[%s9288_s12] sm:$0xff] %v5789_v31  ;;  %v9291_v32 = vpop.permute.xlu0 %4609 }
 0x3a1   : > { %4571 = vrot.lane.b32.xlu1 %v10207_v52, %s6453_s8  ;;  %v4544_v48 = vpop.permute.xlu1 %4543  ;;  %s10209_s8 = sld [smem:[#allocation34_spill]]  ;;  %p6265_p8 = por %p6264_p13, %p6263_p11 }
 0x3a2   : > { %v4574_v40 = vsel %vm3707_vm0, %v4512_v49, %v4544_v48  ;;  %v4590_v39 = vsel %vm3707_vm0, %v4544_v48, %v4512_v49  ;;  %v4704_v49 = vmul.f32 %v6057_v11, %v10080_v22 }
 0x3a3   : > { %v4735_v28 = vmul.f32 %v6054_v16, %v4574_v40  ;;  %v4736_v0 = vmul.f32 %v6055_v50, %v4590_v39 }
 0x3a5   : > { %4667 = vrot.lane.b32.xlu1 %v10207_v52, %s6454_s6  ;;  %v4546_v63 = vpop.permute.xlu0 %4545  ;;  %v4640_v55 = vpop.permute.xlu1 %4639  ;;  %s5086_s6 = scalar_lea.sflag [#allocation4], %s6759_s4 }
 0x3a6   : > { %v4575_v27 = vsel %vm3707_vm0, %v4514_v34, %v4546_v63  ;;  %v4591_v4 = vsel %vm3707_vm0, %v4546_v63, %v4514_v34  ;;  %v4670_v53 = vsel %vm3900_vm1, %v4608_v19, %v4640_v55  ;;  %v4686_v36 = vsel %vm3900_vm1, %v4640_v55, %v4608_v19 }
 0x3a7   : > { %v4737_v56 = vmul.f32 %v6058_v43, %v4575_v27  ;;  %v4738_v60 = vmul.f32 %v6059_v7, %v4591_v4  ;;  %p10210_p2 = scmp.ne.s32.totalorder %s10209_s8, 0 }
 0x3a9   : > { %p6258_p7 = pnand %p6257_p6, %p10210_p2 }
 0x3ab   : > { %p6259_p3 = pneg %p6258_p7 }
 0x3ad   : > { %p6266_p12 = pnand %p6265_p8, %p6259_p3 }
 0x3af   : > { %6269 = shalt.err (!%p6266_p12)
}
 0x3b0   : > { %s6270_s17 = scalar_lea.hbm %s9308_s5, 4096  ;;  %s6274_s9 = scalar_lea.hbm %s10208_s23, 16384 }
 0x3b1   : > { %p6271_p1 = scmp.ne.s32.totalorder %s9308_s5, %s6270_s17  ;;  %p6275_p9 = scmp.lt.s32.totalorder %s9308_s5, %s10208_s23 }
 0x3b2   : > { %p6276_p4 = scmp.lt.s32.totalorder %s6274_s9, %s6270_s17 }
 0x3b3   : > { %p6272_p0 = pnand %p6271_p1, %p10210_p2 }
 0x3b4   : > { %p6277_p10 = por %p6276_p4, %p6275_p9 }
 0x3b5   : > { %p6273_p5 = pneg %p6272_p0 }
 0x3b7   : > { %p6278_p6 = pnand %p6277_p10, %p6273_p5 }
 0x3b9   : > { %6281 = shalt.err (!%p6278_p6)
}
 0x3ba   : > { %s6456_s22 = smov 256   ;;  %s6457_s28 = smov 16   ;;  %v4767_v22 = vadd.f32 %v4735_v28, %v4703_v12  ;;  %v4768_v51 = vadd.f32 %v4736_v0, %v4704_v49  ;;  %v6060_v54 = vld [vmem:[%s6783_s19 + $0x20] sm:$0xff]  ;;  %v6061_v47 = vld [vmem:[%s6783_s19 + $0x28] sm:$0xff]  ;;  %v4642_v40 = vpop.permute.xlu0 %4641  ;;  %v4516_v50 = vpop.permute.xlu1 %4515 }
 0x3bb   : > { %5836 = dma.vmem_to_hbm [thread:$0]  (%p10210_p2), %s9303_s24, 4096, %s9308_s5, %s5086_s6, %s6456_s22, %s6456_s22, %s6457_s28   ;;  %v4799_v61 = vmul.f32 %v6060_v54, %v4686_v36  ;;  %v4800_v17 = vmul.f32 %v6061_v47, %v4670_v53  ;;  %v4671_v28 = vsel %vm3900_vm1, %v9291_v32, %v4642_v40  ;;  %v4687_v0 = vsel %vm3900_vm1, %v4642_v40, %v9291_v32 }
 0x3bc   : > { %v6062_v34 = vld [vmem:[%s6774_s29 + $0x40] sm:$0xff]  ;;  %v6063_v31 = vld [vmem:[%s6774_s29 + $0x48] sm:$0xff]  ;;  %s5822_s4 = sshll.u32 %s10205_s7, 5  ;;  %s5131_s7 = sshll.u32 %s9288_s12, 4  ;;  %s9592_s7 = int_to_ptr.vmem [resolvable:$true] %s5131_s7 }
 0x3bd   : > { %v4705_v19 = vmul.f32 %v6062_v34, %v10071_v41  ;;  %v4706_v48 = vmul.f32 %v6063_v31, %v10085_v38  ;;  %v4831_v39 = vadd.f32 %v4799_v61, %v4767_v22  ;;  %v4832_v16 = vadd.f32 %v4800_v17, %v4768_v51  ;;  %v6064_v41 = vld [vmem:[%s6783_s19 + $0x40] sm:$0xff]  ;;  %v6065_v38 = vld [vmem:[%s6783_s19 + $0x48] sm:$0xff]  ;;  %s10233_s6 = sld [smem:[#allocation161_spill]]  ;;  %s6282_s21 = scalar_lea.vmem %s9592_s7, 2048 }
 0x3be   : > { %v4801_v12 = vmul.f32 %v6064_v41, %v4687_v0  ;;  %v4802_v11 = vmul.f32 %v6065_v38, %v4671_v28  ;;  %v4518_v4 = vpop.permute.xlu0 %4517  ;;  %v4612_v53 = vpop.permute.xlu1 %4611  ;;  %v6067_v51 = vld [vmem:[%s6780_s11 + $0x68] sm:$0xff]  ;;  %v6068_v47 = vld [vmem:[%s6774_s29 + $0x60] sm:$0xff]  ;;  %s10234_s20 = sld [smem:[#allocation162_spill]]  ;;  %p6283_p7 = scmp.ne.s32.totalorder %s9592_s7, %s6282_s21 }
 0x3bf   : > { %v4769_v63 = vadd.f32 %v4737_v56, %v4705_v19  ;;  %v4770_v62 = vadd.f32 %v4738_v60, %v4706_v48  ;;  %v5790_v49 = vpack.c.bf16 %v4832_v16, %v4831_v39  ;;  %v6066_v60 = vld [vmem:[%s6780_s11 + $0x60] sm:$0xff]  ;;  %v4707_v17 = vmul.f32 %v6068_v47, %v10086_v26  ;;  %v6069_v34 = vld [vmem:[%s6774_s29 + $0x68] sm:$0xff]  ;;  %s6458_s30 = smov [#allocation12]  }
 0x3c0   : > { %v4708_v19 = vmul.f32 %v6069_v34, %v10096_v24  ;;  %v6070_v26 = vld [vmem:[%s6780_s11 + $0x80] sm:$0xff]  ;;  %v6071_v28 = vld [vmem:[%s6780_s11 + $0x88] sm:$0xff]  ;;  %p6284_p3 = pnand %p6283_p7, %p10210_p2  ;;  %s6286_s22 = sshll.u32 %s6458_s30, 4  ;;  %s6287_s22 = int_to_ptr.vmem [resolvable:$false] %s6286_s22 }
 0x3c1   : > { %v4833_v55 = vadd.f32 %v4801_v12, %v4769_v63  ;;  %v4834_v27 = vadd.f32 %v4802_v11, %v4770_v62  ;;  %4958 = vst [vmem:[%s9288_s12 + $0x8] sm:$0xff] %v5790_v49  ;;  %v6072_v62 = vld [vmem:[%s6783_s19 + $0x60] sm:$0xff]  ;;  %v6073_v12 = vld [vmem:[%s6783_s19 + $0x68] sm:$0xff]  ;;  %s6288_s28 = scalar_lea.vmem %s6287_s22, 4096  ;;  %p6289_p13 = scmp.lt.s32.totalorder %s9592_s7, %s6287_s22 }
 0x3c2   : > { %v4614_v43 = vpop.permute.xlu0 %4613  ;;  %v4548_v32 = vpop.permute.xlu1 %4547  ;;  %v6074_v11 = vld [vmem:[%s6774_s29 + $0x80] sm:$0xff]  ;;  %p6285_p11 = pneg %p6284_p3  ;;  %p6290_p8 = scmp.lt.s32.totalorder %s6288_s28, %s6282_s21 }
 0x3c3   : > { %v5791_v36 = vpack.c.bf16 %v4834_v27, %v4833_v55  ;;  %v4576_v56 = vsel %vm3707_vm0, %v4516_v50, %v4548_v32  ;;  %v4592_v7 = vsel %vm3707_vm0, %v4548_v32, %v4516_v50  ;;  %v4709_v49 = vmul.f32 %v6074_v11, %v10087_v25  ;;  %v6075_v55 = vld [vmem:[%s6774_s29 + $0x88] sm:$0xff] }
 0x3c4   : > { %v4739_v22 = vmul.f32 %v6066_v60, %v4576_v56  ;;  %v4740_v54 = vmul.f32 %v6067_v51, %v4592_v7  ;;  %v4710_v27 = vmul.f32 %v6075_v55, %v10101_v20  ;;  %v6076_v51 = vld [vmem:[%s6783_s19 + $0x80] sm:$0xff]  ;;  %p6291_p12 = por %p6290_p8, %p6289_p13 }
 0x3c5   : > { %4959 = vst [vmem:[%s9288_s12 + $0x10] sm:$0xff] %v5791_v36 }
 0x3c6   : > { %v4550_v61 = vpop.permute.xlu0 %4549  ;;  %v4644_v31 = vpop.permute.xlu1 %4643  ;;  %v4771_v24 = vadd.f32 %v4739_v22, %v4707_v17  ;;  %v4772_v63 = vadd.f32 %v4740_v54, %v4708_v19  ;;  %v6077_v54 = vld [vmem:[%s6783_s19 + $0x88] sm:$0xff]  ;;  %p6292_p1 = pnand %p6291_p12, %p6285_p11 }
 0x3c7   : > { %v4577_v48 = vsel %vm3707_vm0, %v4518_v4, %v4550_v61  ;;  %v4593_v40 = vsel %vm3707_vm0, %v4550_v61, %v4518_v4  ;;  %v4672_v39 = vsel %vm3900_vm1, %v4612_v53, %v4644_v31  ;;  %v4688_v16 = vsel %vm3900_vm1, %v4644_v31, %v4612_v53 }
 0x3c8   : > { %v4741_v50 = vmul.f32 %v6070_v26, %v4577_v48  ;;  %v4742_v0 = vmul.f32 %v6071_v28, %v4593_v40  ;;  %v4803_v41 = vmul.f32 %v6072_v62, %v4688_v16  ;;  %v4804_v38 = vmul.f32 %v6073_v12, %v4672_v39  ;;  %v6078_v16 = vld [vmem:[%s6780_s11 + $0xa0] sm:$0xff]  ;;  %v6081_v62 = vld [vmem:[%s6774_s29 + $0xa8] sm:$0xff] }
 0x3ca   : > { %v4646_v4 = vpop.permute.xlu0 %4645  ;;  %v4835_v53 = vadd.f32 %v4803_v41, %v4771_v24  ;;  %v4836_v36 = vadd.f32 %v4804_v38, %v4772_v63  ;;  %v4520_v32 = vpop.permute.xlu1 %4519  ;;  %v4773_v60 = vadd.f32 %v4741_v50, %v4709_v49  ;;  %v4774_v22 = vadd.f32 %v4742_v0, %v4710_v27  ;;  %v6079_v50 = vld [vmem:[%s6780_s11 + $0xa8] sm:$0xff]  ;;  %v6080_v24 = vld [vmem:[%s6774_s29 + $0xa0] sm:$0xff] }
 0x3cb   : > { %v4673_v56 = vsel %vm3900_vm1, %v4614_v43, %v4646_v4  ;;  %v4689_v7 = vsel %vm3900_vm1, %v4646_v4, %v4614_v43  ;;  %v4711_v63 = vmul.f32 %v6080_v24, %v10102_v21  ;;  %v4712_v41 = vmul.f32 %v6081_v62, %v10112_v3  ;;  %v6082_v21 = vld [vmem:[%s6780_s11 + $0xc0] sm:$0xff]  ;;  %v6083_v4 = vld [vmem:[%s6780_s11 + $0xc8] sm:$0xff] }
 0x3cc   : > { %v4805_v25 = vmul.f32 %v6076_v51, %v4689_v7  ;;  %v4806_v20 = vmul.f32 %v6077_v54, %v4673_v56  ;;  %v5792_v61 = vpack.c.bf16 %v4836_v36, %v4835_v53  ;;  %v6085_v7 = vld [vmem:[%s6783_s19 + $0xa8] sm:$0xff] }
 0x3cd   : > { %v10211_v54 = vld [vmem:[#allocation92_spill] sm:$0xff] }
 0x3ce   : > { %v4837_v47 = vadd.f32 %v4805_v25, %v4773_v60  ;;  %v4838_v17 = vadd.f32 %v4806_v20, %v4774_v22  ;;  %v4522_v34 = vpop.permute.xlu0 %4521  ;;  %4960 = vst [vmem:[%s9288_s12 + $0x18] sm:$0xff] %v5792_v61  ;;  %v4616_v19 = vpop.permute.xlu1 %4615  ;;  %v6086_v22 = vld [vmem:[%s6774_s29 + $0xc0] sm:$0xff]  ;;  %v6087_v25 = vld [vmem:[%s6774_s29 + $0xc8] sm:$0xff] }
 0x3cf   : > { %v4713_v51 = vmul.f32 %v6086_v22, %v10103_v37  ;;  %v4714_v20 = vmul.f32 %v6087_v25, %v10211_v54  ;;  %v6094_v25 = vld [vmem:[%s6780_s11 + $0x100] sm:$0xff] }
 0x3d0   : > { %v5793_v31 = vpack.c.bf16 %v4838_v17, %v4837_v47 }
 0x3d2   : > { %4961 = vst [vmem:[%s9288_s12 + $0x20] sm:$0xff] %v5793_v31  ;;  %v4618_v48 = vpop.permute.xlu0 %4617  ;;  %v4552_v43 = vpop.permute.xlu1 %4551 }
 0x3d3   : > { %v4578_v40 = vsel %vm3707_vm0, %v4520_v32, %v4552_v43  ;;  %v4594_v39 = vsel %vm3707_vm0, %v4552_v43, %v4520_v32  ;;  %v6084_v32 = vld [vmem:[%s6783_s19 + $0xa0] sm:$0xff] }
 0x3d4   : > { %v4743_v26 = vmul.f32 %v6078_v16, %v4578_v40  ;;  %v4744_v28 = vmul.f32 %v6079_v50, %v4594_v39  ;;  %v6088_v39 = vld [vmem:[%s6783_s19 + $0xc0] sm:$0xff]  ;;  %v6089_v16 = vld [vmem:[%s6783_s19 + $0xc8] sm:$0xff] }
 0x3d6   : > { %v4554_v0 = vpop.permute.xlu0 %4553  ;;  %v4648_v12 = vpop.permute.xlu1 %4647  ;;  %v4775_v3 = vadd.f32 %v4743_v26, %v4711_v63  ;;  %v4776_v36 = vadd.f32 %v4744_v28, %v4712_v41 }
 0x3d7   : > { %v4579_v38 = vsel %vm3707_vm0, %v4522_v34, %v4554_v0  ;;  %v4595_v11 = vsel %vm3707_vm0, %v4554_v0, %v4522_v34  ;;  %v4674_v49 = vsel %vm3900_vm1, %v4616_v19, %v4648_v12  ;;  %v4690_v55 = vsel %vm3900_vm1, %v4648_v12, %v4616_v19 }
 0x3d8   : > { %v4745_v27 = vmul.f32 %v6082_v21, %v4579_v38  ;;  %v4746_v53 = vmul.f32 %v6083_v4, %v4595_v11  ;;  %v4807_v56 = vmul.f32 %v6084_v32, %v4690_v55  ;;  %v4808_v60 = vmul.f32 %v6085_v7, %v4674_v49  ;;  %v6090_v11 = vld [vmem:[%s6780_s11 + $0xe0] sm:$0xff]  ;;  %v6091_v55 = vld [vmem:[%s6780_s11 + $0xe8] sm:$0xff] }
 0x3d9   : > { %v6092_v4 = vld [vmem:[%s6774_s29 + $0xe0] sm:$0xff] }
 0x3da   : > { %v4650_v61 = vpop.permute.xlu0 %4649  ;;  %v4839_v47 = vadd.f32 %v4807_v56, %v4775_v3  ;;  %v4840_v17 = vadd.f32 %v4808_v60, %v4776_v36  ;;  %v4524_v34 = vpop.permute.xlu1 %4523  ;;  %v4777_v43 = vadd.f32 %v4745_v27, %v4713_v51  ;;  %v4778_v40 = vadd.f32 %v4746_v53, %v4714_v20  ;;  %v10212_v53 = vld [vmem:[#allocation94_spill] sm:$0xff]  ;;  %v6093_v36 = vld [vmem:[%s6774_s29 + $0xe8] sm:$0xff] }
 0x3db   : > { %v4675_v19 = vsel %vm3900_vm1, %v4618_v48, %v4650_v61  ;;  %v4691_v31 = vsel %vm3900_vm1, %v4650_v61, %v4618_v48  ;;  %v4715_v3 = vmul.f32 %v6092_v4, %v10212_v53  ;;  %v4716_v32 = vmul.f32 %v6093_v36, %v10130_v13  ;;  %v6095_v20 = vld [vmem:[%s6780_s11 + $0x108] sm:$0xff] }
 0x3dc   : > { %v4809_v37 = vmul.f32 %v6088_v39, %v4691_v31  ;;  %v4810_v26 = vmul.f32 %v6089_v16, %v4675_v19  ;;  %v5794_v50 = vpack.c.bf16 %v4840_v17, %v4839_v47  ;;  %v6096_v17 = vld [vmem:[%s6783_s19 + $0xe0] sm:$0xff]  ;;  %v6097_v19 = vld [vmem:[%s6783_s19 + $0xe8] sm:$0xff] }
 0x3de   : > { %v4841_v28 = vadd.f32 %v4809_v37, %v4777_v43  ;;  %v4842_v0 = vadd.f32 %v4810_v26, %v4778_v40  ;;  %v4526_v24 = vpop.permute.xlu0 %4525  ;;  %4962 = vst [vmem:[%s9288_s12 + $0x28] sm:$0xff] %v5794_v50  ;;  %v4620_v63 = vpop.permute.xlu1 %4619  ;;  %v6098_v43 = vld [vmem:[%s6774_s29 + $0x100] sm:$0xff]  ;;  %v10213_v40 = vld [vmem:[#allocation98_spill] sm:$0xff]  ;;  %v6099_v37 = vld [vmem:[%s6774_s29 + $0x108] sm:$0xff] }
 0x3df   : > { %v4717_v39 = vmul.f32 %v6098_v43, %v10213_v40  ;;  %v4718_v16 = vmul.f32 %v6099_v37, %v10139_v2  ;;  %v6107_v43 = vld [vmem:[%s6780_s11 + $0x148] sm:$0xff]  ;;  %v6108_v37 = vld [vmem:[%s6783_s19 + $0x120] sm:$0xff] }
 0x3e0   : > { %v5795_v62 = vpack.c.bf16 %v4842_v0, %v4841_v28 }
 0x3e2   : > { %4963 = vst [vmem:[%s9288_s12 + $0x30] sm:$0xff] %v5795_v62  ;;  %v4622_v41 = vpop.permute.xlu0 %4621  ;;  %v4556_v48 = vpop.permute.xlu1 %4555 }
 0x3e3   : > { %v4580_v12 = vsel %vm3707_vm0, %v4524_v34, %v4556_v48  ;;  %v4596_v38 = vsel %vm3707_vm0, %v4556_v48, %v4524_v34 }
 0x3e4   : > { %v4747_v49 = vmul.f32 %v6090_v11, %v4580_v12  ;;  %v4748_v21 = vmul.f32 %v6091_v55, %v4596_v38  ;;  %v6100_v12 = vld [vmem:[%s6783_s19 + $0x100] sm:$0xff]  ;;  %v6101_v11 = vld [vmem:[%s6783_s19 + $0x108] sm:$0xff] }
 0x3e6   : > { %v4558_v27 = vpop.permute.xlu0 %4557  ;;  %v4652_v56 = vpop.permute.xlu1 %4651  ;;  %v4779_v13 = vadd.f32 %v4747_v49, %v4715_v3  ;;  %v4780_v47 = vadd.f32 %v4748_v21, %v4716_v32 }
 0x3e7   : > { %v4581_v7 = vsel %vm3707_vm0, %v4526_v24, %v4558_v27  ;;  %v4597_v60 = vsel %vm3707_vm0, %v4558_v27, %v4526_v24  ;;  %v4676_v22 = vsel %vm3900_vm1, %v4620_v63, %v4652_v56  ;;  %v4692_v51 = vsel %vm3900_vm1, %v4652_v56, %v4620_v63  ;;  %v6102_v56 = vld [vmem:[%s6780_s11 + $0x120] sm:$0xff] }
 0x3e8   : > { %v4749_v54 = vmul.f32 %v6094_v25, %v4581_v7  ;;  %v4750_v61 = vmul.f32 %v6095_v20, %v4597_v60  ;;  %v4811_v34 = vmul.f32 %v6096_v17, %v4692_v51  ;;  %v4812_v31 = vmul.f32 %v6097_v19, %v4676_v22  ;;  %v6103_v60 = vld [vmem:[%s6780_s11 + $0x128] sm:$0xff]  ;;  %v6104_v25 = vld [vmem:[%s6774_s29 + $0x120] sm:$0xff] }
 0x3e9   : > { %v6105_v20 = vld [vmem:[%s6774_s29 + $0x128] sm:$0xff] }
 0x3ea   : > { %v4654_v26 = vpop.permute.xlu0 %4653  ;;  %v4843_v50 = vadd.f32 %v4811_v34, %v4779_v13  ;;  %v4844_v28 = vadd.f32 %v4812_v31, %v4780_v47  ;;  %v4528_v0 = vpop.permute.xlu1 %4527  ;;  %v4781_v62 = vadd.f32 %v4749_v54, %v4717_v39  ;;  %v4782_v48 = vadd.f32 %v4750_v61, %v4718_v16 }
 0x3eb   : > { %v4677_v24 = vsel %vm3900_vm1, %v4622_v41, %v4654_v26  ;;  %v4693_v63 = vsel %vm3900_vm1, %v4654_v26, %v4622_v41  ;;  %v4719_v54 = vmul.f32 %v6104_v25, %v10140_v44  ;;  %v4720_v61 = vmul.f32 %v6105_v20, %v10153_v9  ;;  %v6106_v44 = vld [vmem:[%s6780_s11 + $0x140] sm:$0xff]  ;;  %v6109_v26 = vld [vmem:[%s6783_s19 + $0x128] sm:$0xff] }
 0x3ec   : > { %v4813_v38 = vmul.f32 %v6100_v12, %v4693_v63  ;;  %v4814_v2 = vmul.f32 %v6101_v11, %v4677_v24  ;;  %v5796_v49 = vpack.c.bf16 %v4844_v28, %v4843_v50  ;;  %v6110_v28 = vld [vmem:[%s6774_s29 + $0x140] sm:$0xff]  ;;  %v6111_v63 = vld [vmem:[%s6774_s29 + $0x148] sm:$0xff] }
 0x3ee   : > { %v4845_v55 = vadd.f32 %v4813_v38, %v4781_v62  ;;  %v4846_v21 = vadd.f32 %v4814_v2, %v4782_v48  ;;  %v4530_v27 = vpop.permute.xlu0 %4529  ;;  %4964 = vst [vmem:[%s9288_s12 + $0x38] sm:$0xff] %v5796_v49  ;;  %v4624_v4 = vpop.permute.xlu1 %4623  ;;  %v10215_v62 = vld [vmem:[#allocation108_spill] sm:$0xff] }
 0x3ef   : > { %v4722_v48 = vmul.f32 %v6111_v63, %v10215_v62 }
 0x3f0   : > { %v5797_v53 = vpack.c.bf16 %v4846_v21, %v4845_v55 }
 0x3f2   : > { %4965 = vst [vmem:[%s9288_s12 + $0x40] sm:$0xff] %v5797_v53  ;;  %v4626_v3 = vpop.permute.xlu0 %4625  ;;  %v4560_v41 = vpop.permute.xlu1 %4559 }
 0x3f3   : > { %v4582_v36 = vsel %vm3707_vm0, %v4528_v0, %v4560_v41  ;;  %v4598_v32 = vsel %vm3707_vm0, %v4560_v41, %v4528_v0  ;;  %v10214_v0 = vld [vmem:[#allocation106_spill] sm:$0xff]  ;;  %v6113_v41 = vld [vmem:[%s6783_s19 + $0x148] sm:$0xff] }
 0x3f4   : > { %v4751_v7 = vmul.f32 %v6102_v56, %v4582_v36  ;;  %v4752_v22 = vmul.f32 %v6103_v60, %v4598_v32  ;;  %v4721_v24 = vmul.f32 %v6110_v28, %v10214_v0  ;;  %v10220_v0 = vld [vmem:[#allocation89_spill] sm:$0xff] }
 0x3f6   : > { %v4562_v51 = vpop.permute.xlu0 %4561  ;;  %v4656_v13 = vpop.permute.xlu1 %4655  ;;  %v4783_v9 = vadd.f32 %v4751_v7, %v4719_v54  ;;  %v4784_v39 = vadd.f32 %v4752_v22, %v4720_v61  ;;  %v10216_v61 = vld [vmem:[#allocation74_spill] sm:$0xff] }
 0x3f7   : > { %v4583_v47 = vsel %vm3707_vm0, %v4530_v27, %v4562_v51  ;;  %v4599_v17 = vsel %vm3707_vm0, %v4562_v51, %v4530_v27  ;;  %v4678_v34 = vsel %vm3900_vm1, %v4624_v4, %v4656_v13  ;;  %v4694_v19 = vsel %vm3900_vm1, %v4656_v13, %v4624_v4  ;;  %v6112_v4 = vld [vmem:[%s6783_s19 + $0x140] sm:$0xff] }
 0x3f8   : > { %v4753_v31 = vmul.f32 %v6106_v44, %v4583_v47  ;;  %v4754_v40 = vmul.f32 %v6107_v43, %v4599_v17  ;;  %v4815_v16 = vmul.f32 %v6108_v37, %v4694_v19  ;;  %v4816_v50 = vmul.f32 %v6109_v26, %v4678_v34  ;;  %v10217_v47 = vld [vmem:[#allocation76_spill] sm:$0xff]  ;;  %v6114_v19 = vld [vmem:[%s6774_s29 + $0x160] sm:$0xff]  ;;  %v10218_v44 = vld [vmem:[#allocation110_spill] sm:$0xff] }
 0x3f9   : > { %v6115_v43 = vld [vmem:[%s6774_s29 + $0x168] sm:$0xff] }
 0x3fa   : > { %v4658_v12 = vpop.permute.xlu0 %4657  ;;  %v4847_v38 = vadd.f32 %v4815_v16, %v4783_v9  ;;  %v4848_v11 = vadd.f32 %v4816_v50, %v4784_v39  ;;  %v4532_v2 = vpop.permute.xlu1 %4531  ;;  %v4785_v21 = vadd.f32 %v4753_v31, %v4721_v24  ;;  %v4786_v27 = vadd.f32 %v4754_v40, %v4722_v48  ;;  %v10219_v50 = vld [vmem:[#allocation87_spill] sm:$0xff] }
 0x3fb   : > { %v4679_v49 = vsel %vm3900_vm1, %v4626_v3, %v4658_v12  ;;  %v4695_v55 = vsel %vm3900_vm1, %v4658_v12, %v4626_v3  ;;  %v4723_v31 = vmul.f32 %v6114_v19, %v10218_v44  ;;  %v4724_v40 = vmul.f32 %v6115_v43, %v10185_v18  ;;  %v10221_v18 = vld [vmem:[#allocation35_spill] sm:$0xff]  ;;  %v10227_v43 = vld [vmem:[#allocation93_spill] sm:$0xff] }
 0x3fc   : > { %v4817_v53 = vmul.f32 %v6112_v4, %v4695_v55  ;;  %v4818_v36 = vmul.f32 %v6113_v41, %v4679_v49  ;;  %v5798_v32 = vpack.c.bf16 %v4848_v11, %v4847_v38  ;;  %v10222_v12 = vld [vmem:[#allocation79_spill] sm:$0xff]  ;;  %v6117_v55 = vld [vmem:[%s6774_s29 + $0x188] sm:$0xff] }
 0x3fd   : > { %v6116_v11 = vld [vmem:[%s6774_s29 + $0x180] sm:$0xff]  ;;  %s5742_s29 = sshll.u32 %s10206_s3, 6  ;;  %s5150_s3 = sshll.u32 %s8196_s26, 4  ;;  %s9599_s3 = int_to_ptr.vmem [resolvable:$true] %s5150_s3 }
 0x3fe   : > { %v4849_v56 = vadd.f32 %v4817_v53, %v4785_v21  ;;  %v4850_v7 = vadd.f32 %v4818_v36, %v4786_v27  ;;  %v4534_v60 = vpop.permute.xlu0 %4533  ;;  %4966 = vst [vmem:[%s9288_s12 + $0x48] sm:$0xff] %v5798_v32  ;;  %v4628_v22 = vpop.permute.xlu1 %4627  ;;  %v4726_v21 = vmul.f32 %v6117_v55, %v10193_v6  ;;  %v10226_v44 = vld [vmem:[#allocation83_spill] sm:$0xff]  ;;  %s5128_s11 = sadd.s32 %s5822_s4, %s5742_s29  ;;  %s5091_s26 = scalar_lea.sflag [#allocation13], %s6770_s16 }
 0x3ff   : > { %s5743_s19 = sshll.u32 %s5128_s11, 6 }
 0x400   : > { %v5799_v51 = vpack.c.bf16 %v4850_v7, %v4849_v56  ;;  %s9590_s25 = scalar_lea.hbm %s10233_s6, %s5743_s19  ;;  %s9597_s9 = scalar_lea.hbm %s10234_s20, %s5743_s19 }
 0x402   : > { %4967 = vst [vmem:[%s9288_s12 + $0x50] sm:$0xff] %v5799_v51  ;;  %v4630_v25 = vpop.permute.xlu0 %4629  ;;  %v4564_v54 = vpop.permute.xlu1 %4563  ;;  %v10225_v51 = vld [vmem:[#allocation81_spill] sm:$0xff] }
 0x403   : > { %v4584_v3 = vsel %vm3707_vm0, %v4532_v2, %v4564_v54  ;;  %v4600_v20 = vsel %vm3707_vm0, %v4564_v54, %v4532_v2  ;;  %v10223_v2 = vld [vmem:[#allocation114_spill] sm:$0xff] }
 0x404   : > { %v4755_v13 = vmul.f32 %v4584_v3, %v10216_v61  ;;  %v4756_v17 = vmul.f32 %v4600_v20, %v10217_v47  ;;  %v4725_v49 = vmul.f32 %v6116_v11, %v10223_v2  ;;  %v10231_v11 = vld [vmem:[#allocation75_spill] sm:$0xff] }
 0x405   : > { %v4729_v2 = vmul.f32 %v10231_v11, %v10195_v10 }
 0x406   : > { %v4566_v34 = vpop.permute.xlu0 %4565  ;;  %v4660_v9 = vpop.permute.xlu1 %4659  ;;  %v4787_v63 = vadd.f32 %v4755_v13, %v4723_v31  ;;  %v4788_v62 = vadd.f32 %v4756_v17, %v4724_v40 }
 0x407   : > { %v4585_v39 = vsel %vm3707_vm0, %v4534_v60, %v4566_v34  ;;  %v4601_v37 = vsel %vm3707_vm0, %v4566_v34, %v4534_v60  ;;  %v4680_v16 = vsel %vm3900_vm1, %v4628_v22, %v4660_v9  ;;  %v4696_v26 = vsel %vm3900_vm1, %v4660_v9, %v4628_v22  ;;  %v10224_v60 = vld [vmem:[#allocation36_spill] sm:$0xff] }
 0x408   : > { %v4757_v28 = vmul.f32 %v4585_v39, %v10219_v50  ;;  %v4758_v24 = vmul.f32 %v4601_v37, %v10220_v0  ;;  %v4819_v48 = vmul.f32 %v4696_v26, %v10221_v18  ;;  %v4820_v38 = vmul.f32 %v4680_v16, %v10222_v12  ;;  %v10228_v39 = vld [vmem:[#allocation38_spill] sm:$0xff]  ;;  %v10229_v16 = vld [vmem:[#allocation37_spill] sm:$0xff] }
 0x409   : > { %v4727_v37 = vmul.f32 %v10228_v39, %v10194_v1  ;;  %v4728_v26 = vmul.f32 %v10229_v16, %v10197_v15 }
 0x40a   : > { %v4662_v27 = vpop.permute.xlu0 %4661  ;;  %v4851_v4 = vadd.f32 %v4819_v48, %v4787_v63  ;;  %v4852_v53 = vadd.f32 %v4820_v38, %v4788_v62  ;;  %v4536_v41 = vpop.permute.xlu1 %4535  ;;  %v4789_v56 = vadd.f32 %v4757_v28, %v4725_v49  ;;  %v4790_v7 = vadd.f32 %v4758_v24, %v4726_v21  ;;  %v10230_v62 = vld [vmem:[#allocation85_spill] sm:$0xff]  ;;  %v10232_v49 = vld [vmem:[#allocation91_spill] sm:$0xff] }
 0x40b   : > { %v4681_v36 = vsel %vm3900_vm1, %v4630_v25, %v4662_v27  ;;  %v4697_v32 = vsel %vm3900_vm1, %v4662_v27, %v4630_v25  ;;  %v4730_v55 = vmul.f32 %v10232_v49, %v10202_v46 }
 0x40c   : > { %v4821_v22 = vmul.f32 %v4697_v32, %v10224_v60  ;;  %v4822_v54 = vmul.f32 %v4681_v36, %v10225_v51  ;;  %v5800_v3 = vpack.c.bf16 %v4852_v53, %v4851_v4 }
 0x40e   : > { %v4853_v20 = vadd.f32 %v4821_v22, %v4789_v56  ;;  %v4854_v6 = vadd.f32 %v4822_v54, %v4790_v7  ;;  %v4538_v61 = vpop.permute.xlu0 %4537  ;;  %4968 = vst [vmem:[%s9288_s12 + $0x58] sm:$0xff] %v5800_v3  ;;  %v4632_v13 = vpop.permute.xlu1 %4631  ;;  %v4731_v3 = vmul.f32 %v9218_v58, %v10204_v57 }
 0x410   : > { %v5801_v47 = vpack.c.bf16 %v4854_v6, %v4853_v20  ;;  %v4732_v20 = vmul.f32 %v9200_v30, %v10207_v52 }
 0x412   : > { %4969 = vst [vmem:[%s9288_s12 + $0x60] sm:$0xff] %v5801_v47  ;;  %v4634_v17 = vpop.permute.xlu0 %4633  ;;  %v4568_v34 = vpop.permute.xlu1 %4567 }
 0x413   : > { %v4586_v19 = vsel %vm3707_vm0, %v4536_v41, %v4568_v34  ;;  %v4602_v25 = vsel %vm3707_vm0, %v4568_v34, %v4536_v41 }
 0x414   : > { %v4759_v31 = vmul.f32 %v4586_v19, %v10226_v44  ;;  %v4760_v40 = vmul.f32 %v4602_v25, %v10227_v43 }
 0x416   : > { %v4570_v9 = vpop.permute.xlu0 %4569  ;;  %v4664_v50 = vpop.permute.xlu1 %4663  ;;  %v4791_v48 = vadd.f32 %v4759_v31, %v4727_v37  ;;  %v4792_v12 = vadd.f32 %v4760_v40, %v4728_v26 }
 0x417   : > { %v4587_v28 = vsel %vm3707_vm0, %v4538_v61, %v4570_v9  ;;  %v4603_v0 = vsel %vm3707_vm0, %v4570_v9, %v4538_v61  ;;  %v4682_v24 = vsel %vm3900_vm1, %v4632_v13, %v4664_v50  ;;  %v4698_v63 = vsel %vm3900_vm1, %v4664_v50, %v4632_v13 }
 0x418   : > { %v4761_v18 = vmul.f32 %v4587_v28, %v10230_v62  ;;  %v4762_v1 = vmul.f32 %v4603_v0, %v9122_v14  ;;  %v4823_v15 = vmul.f32 %v4698_v63, %v9151_v29  ;;  %v4824_v38 = vmul.f32 %v4682_v24, %v9112_v45 }
 0x41a   : > { %v4666_v21 = vpop.permute.xlu0 %4665  ;;  %v4855_v27 = vadd.f32 %v4823_v15, %v4791_v48  ;;  %v4856_v4 = vadd.f32 %v4824_v38, %v4792_v12  ;;  %v4540_v53 = vpop.permute.xlu1 %4539  ;;  %v4793_v45 = vadd.f32 %v4761_v18, %v4729_v2  ;;  %v4794_v41 = vadd.f32 %v4762_v1, %v4730_v55 }
 0x41b   : > { %v4683_v14 = vsel %vm3900_vm1, %v4634_v17, %v4666_v21  ;;  %v4699_v29 = vsel %vm3900_vm1, %v4666_v21, %v4634_v17 }
 0x41c   : > { %v4825_v10 = vmul.f32 %v4699_v29, %v9176_v8  ;;  %v4826_v36 = vmul.f32 %v4683_v14, %v9129_v35  ;;  %v5802_v46 = vpack.c.bf16 %v4856_v4, %v4855_v27 }
 0x41e   : > { %v4857_v32 = vadd.f32 %v4825_v10, %v4793_v45  ;;  %v4858_v56 = vadd.f32 %v4826_v36, %v4794_v41  ;;  %4970 = vst [vmem:[%s9288_s12 + $0x68] sm:$0xff] %v5802_v46  ;;  %v4636_v7 = vpop.permute.xlu1 %4635 }
 0x420   : > { %v5803_v60 = vpack.c.bf16 %v4858_v56, %v4857_v32 }
 0x422   : > { %4971 = vst [vmem:[%s9288_s12 + $0x70] sm:$0xff] %v5803_v60  ;;  %v4572_v22 = vpop.permute.xlu1 %4571 }
 0x423   : > { %v4588_v51 = vsel %vm3707_vm0, %v4540_v53, %v4572_v22  ;;  %v4604_v54 = vsel %vm3707_vm0, %v4572_v22, %v4540_v53 }
 0x424   : > { %v4763_v8 = vmul.f32 %v4588_v51, %v9215_v23  ;;  %v4764_v35 = vmul.f32 %v4604_v54, %v9191_v59 }
 0x426   : > { %v4668_v6 = vpop.permute.xlu1 %4667  ;;  %v4795_v23 = vadd.f32 %v4763_v8, %v4731_v3  ;;  %v4796_v47 = vadd.f32 %v4764_v35, %v4732_v20 }
 0x427   : > { %v4684_v61 = vsel %vm3900_vm1, %v4636_v7, %v4668_v6  ;;  %v4700_v13 = vsel %vm3900_vm1, %v4668_v6, %v4636_v7 }
 0x428   : > { %v4827_v59 = vmul.f32 %v4700_v13, %v9249_v5  ;;  %v4828_v17 = vmul.f32 %v4684_v61, %v9226_v33 }
 0x42a   : > { %v4859_v58 = vadd.f32 %v4827_v59, %v4795_v23  ;;  %v4860_v30 = vadd.f32 %v4828_v17, %v4796_v47 }
 0x42c   : > { %v5804_v42 = vpack.c.bf16 %v4860_v30, %v4859_v58 }
 0x42e   : > { %4972 = vst [vmem:[%s9288_s12 + $0x78] sm:$0xff] %v5804_v42 }
 0x42f   : > { %6295 = shalt.err (!%p6292_p1)
}
 0x430   : > { %s6296_s12 = scalar_lea.hbm %s9590_s25, 2048  ;;  %s6300_s11 = scalar_lea.hbm %s10233_s6, 8192 }
 0x431   : > { %p6297_p0 = scmp.ne.s32.totalorder %s9590_s25, %s6296_s12  ;;  %p6301_p4 = scmp.lt.s32.totalorder %s9590_s25, %s10233_s6 }
 0x432   : > { %p6302_p10 = scmp.lt.s32.totalorder %s6300_s11, %s6296_s12 }
 0x433   : > { %p6298_p5 = pnand %p6297_p0, %p10210_p2 }
 0x434   : > { %p6303_p6 = por %p6302_p10, %p6301_p4 }
 0x435   : > { %p6299_p9 = pneg %p6298_p5 }
 0x437   : > { %p6304_p7 = pnand %p6303_p6, %p6299_p9 }
 0x439   : > { %6307 = shalt.err (!%p6304_p7)
}
 0x43a   : > { %s6459_s5 = smov 128   ;;  %s6460_s17 = smov 8  }
 0x43b   : > { %5837 = dma.vmem_to_hbm [thread:$0]  (%p10210_p2), %s9592_s7, 2048, %s9590_s25, %s5091_s26, %s6459_s5, %s6459_s5, %s6460_s17  }
 0x43c   : > { %s6308_s27 = scalar_lea.vmem %s9599_s3, 2048  ;;  %s6461_s21 = smov [#allocation14]  }
 0x43d   : > { %p6309_p3 = scmp.ne.s32.totalorder %s9599_s3, %s6308_s27  ;;  %s6312_s30 = sshll.u32 %s6461_s21, 4  ;;  %s6313_s30 = int_to_ptr.vmem [resolvable:$false] %s6312_s30 }
 0x43e   : > { %s6314_s22 = scalar_lea.vmem %s6313_s30, 4096  ;;  %p6315_p8 = scmp.lt.s32.totalorder %s9599_s3, %s6313_s30 }
 0x43f   : > { %p6310_p11 = pnand %p6309_p3, %p10210_p2  ;;  %p6316_p12 = scmp.lt.s32.totalorder %s6314_s22, %s6308_s27 }
 0x441   : > { %p6311_p13 = pneg %p6310_p11  ;;  %p6317_p1 = por %p6316_p12, %p6315_p8 }
 0x443   : > { %p6318_p0 = pnand %p6317_p1, %p6311_p13 }
 0x445   : > { %6321 = shalt.err (!%p6318_p0)
}
 0x446   : > { %s6322_s28 = scalar_lea.hbm %s9597_s9, 2048  ;;  %s6326_s12 = scalar_lea.hbm %s10234_s20, 8192 }
 0x447   : > { %p6323_p5 = scmp.ne.s32.totalorder %s9597_s9, %s6322_s28  ;;  %p6327_p10 = scmp.lt.s32.totalorder %s9597_s9, %s10234_s20 }
 0x448   : > { %p6328_p6 = scmp.lt.s32.totalorder %s6326_s12, %s6322_s28 }
 0x449   : > { %p6324_p9 = pnand %p6323_p5, %p10210_p2 }
 0x44a   : > { %p6329_p7 = por %p6328_p6, %p6327_p10 }
 0x44b   : > { %p6325_p4 = pneg %p6324_p9 }
 0x44d   : > { %p6330_p3 = pnand %p6329_p7, %p6325_p4 }
 0x44f   : > { %6333 = shalt.err (!%p6330_p3)
}
 0x450   : > { %5838 = dma.vmem_to_hbm [thread:$0]  (%p10210_p2), %s9599_s3, 2048, %s9597_s9, %s5091_s26, %s6459_s5, %s6459_s5, %s6460_s17  }
 0x451 PF: > { %s10235_s11 = sld [smem:[#allocation23_spill]]  ;;  %p5872_p11 = scmp.ge.s32.totalorder %s6444_s15, 2 }
 0x452   : > { %s10236_s19 = sld [smem:[#allocation30_spill]] }
 0x457   : > { %s5165_s24 = sand.u32 1, %s10235_s11  }
 0x458   : > { %p10237_p13 = scmp.ne.s32.totalorder %s10236_s19, 0  ;;  %s5166_s27 = scalar_lea.sflag [#allocation4], %s5165_s24 }
 0x45a   : > { %p5860_p8 = pnand %p5872_p11, %p10237_p13 }
 0x45c   : > { %p5861_p12 = pneg %p5860_p8 }
 0x45e   : > { %6395 = dma.done.wait (%p5861_p12), %s5166_s27, 4096  }
 0x45f   : > { %6397 = vsyncadd (%p5861_p12), %s5166_s27, 4294963200  ;;  %s10238_s8 = sadd.s32 4294967294, %s6444_s15  }
 0x460   : > { %s5174_s21 = sand.u32 1, %s10238_s8  }
 0x461   : > { %s5175_s30 = scalar_lea.sflag [#allocation13], %s5174_s21 }
 0x462   : > { %6399 = dma.done.wait (%p5861_p12), %s5175_s30, 4096  }
 0x463   : > { %6401 = vsyncadd (%p5861_p12), %s5175_s30, 4294963200  ;;  %s34_s15 = sadd.s32 1, %s6444_s15   ;;  %s10239_s27 = sld [smem:[#allocation21_spill]] }
 0x464   : > { %p31_p2 = scmp.ge.s32.totalorder %s34_s15, 6   ;;  %s10240_s28 = sld [smem:[#allocation22_spill]] }
 0x465   : > { %s10241_s29 = sld [smem:[#allocation33_spill]]  ;;  %s10244_s9 = smov %s6424_s10 }
 0x466   : > { %s10242_s30 = sld [smem:[#allocation24_spill]]  ;;  %s10245_s10 = smov %s6696_s18 }
 0x467   : > { %s10243_s16 = sld [smem:[#allocation32_spill]]  ;;  %s10246_s11 = smov %s6436_s13 }
 0x468   : > { %s10247_s12 = smov %s6440_s14  ;;  %s10249_s14 = smov %s10255_s1 }
 0x469   :  { %33 = sbr.rel (!%p31_p2) target bundleno = 23 (0x17), region = 162 }
 0x46d   : > { %s10248_s13 = smov %s10243_s16 }
 0x46e   :  { %5189 = vsyncpa [#allocation3], 1 }
 0x46f   :  { %5191 = vsyncpa [#allocation3 + $0x1], 1 }
 0x470   :  { %5192 = vsyncpa [#allocation6], 1 }
 0x471   :  { %5194 = vsyncpa [#allocation6 + $0x1], 1 }
 0x472   :  { %5195 = vsyncpa [#allocation9], 1 }
 0x473   :  { %5197 = vsyncpa [#allocation9 + $0x1], 1 }
 0x474   :  { %5198 = vsyncpa [#allocation4], 1 }
 0x475   :  { %5200 = vsyncpa [#allocation4 + $0x1], 1 }
 0x476   :  { %5201 = vsyncpa [#allocation13], 1 }
 0x477   :  { %5203 = vsyncpa [#allocation13 + $0x1], 1 }

</bundles_post_ra>
